<compile_context>
chip_gen: v5e
topology: v5e:2x2
jax: 0.10.0
libtpu: 0.0.40
codegen_flags: <defaults>
</compile_context>

<pallas_src>
import functools
import math

import jax
import jax.numpy as jnp
import numpy as np
from jax.experimental import pallas as pl
from jax.experimental.pallas import tpu as pltpu


def _round_up(x, m):
    return (x + m - 1) // m * m


# ---------------------------------------------------------------------------
# Fused conv3x3 (stride 1, pad 1) + bias + ReLU + 2x2 max-pool kernel
# ---------------------------------------------------------------------------
def _conv_pool_kernel(x_ref, w_ref, b_ref, o_ref, *, Wq, Mr, Cout, BB):
    # x_ref: (BB, Pq_pad, 4*Cin) bf16 -- quad-packed, zero-padded input
    # w_ref: (4, 4*Cin, 4*Cout) bf16  -- shifted-GEMM weights
    # b_ref: (1, 4*Cout) f32
    # o_ref: (BB, Mr, Cout) f32       -- pooled rows r = yp*Wq + wp
    bias = b_ref[...]
    offs = (0, 1, Wq, Wq + 1)
    for bi in range(BB):
        acc = jnp.dot(x_ref[bi, pl.ds(offs[0], Mr), :], w_ref[0],
                      preferred_element_type=jnp.float32)
        for d in range(1, 4):
            acc = acc + jnp.dot(x_ref[bi, pl.ds(offs[d], Mr), :], w_ref[d],
                                preferred_element_type=jnp.float32)
        z = jnp.maximum(acc + bias, 0.0)                     # (Mr, 4*Cout)
        # 2x2 max-pool == max over the four Cout-wide lane groups.
        p = jnp.maximum(
            jnp.maximum(z[:, 0 * Cout:1 * Cout], z[:, 1 * Cout:2 * Cout]),
            jnp.maximum(z[:, 2 * Cout:3 * Cout], z[:, 3 * Cout:4 * Cout]))
        o_ref[bi] = p


def _pack_conv_weights(w_oihw):
    """(Cout, Cin, 3, 3) conv weight -> (4, 4*Cin, 4*Cout) shifted-GEMM
    weights for the quad-packed conv+pool kernel."""
    Cout, Cin = w_oihw.shape[0], w_oihw.shape[1]
    wt = jnp.transpose(w_oihw, (2, 3, 1, 0))        # (ky, kx, Cin, Cout)
    m = jnp.zeros((2, 2, 4 * Cin, 4 * Cout), w_oihw.dtype)
    for ay in range(2):
        for ax in range(2):
            for dy in range(2):
                for dx in range(2):
                    for by in range(2):
                        for bx in range(2):
                            ky = 2 * ay + by - dy
                            kx = 2 * ax + bx - dx
                            if 0 <= ky < 3 and 0 <= kx < 3:
                                r0 = (2 * by + bx) * Cin
                                c0 = (2 * dy + dx) * Cout
                                m = m.at[ay, ax, r0:r0 + Cin,
                                         c0:c0 + Cout].set(wt[ky, kx])
    return m.reshape(4, 4 * Cin, 4 * Cout)


def conv3x3_relu_pool(x_nhwc, w_oihw, bias):
    """Fused 3x3 conv + bias + ReLU + 2x2 max-pool.

    Returns (B, Mr, Cout); row r = yp*Wq + wp holds pooled pixel (yp, wp).
    Columns wp == Wq-1 and rows with yp >= H//2 are junk (stripped by the
    caller or killed by zero weight rows downstream)."""
    B, H, W, Cin = x_nhwc.shape
    Cout = w_oihw.shape[0]
    Hq, Wq = (H + 2) // 2, (W + 2) // 2
    Pq = Hq * Wq
    Pq_pad = _round_up(Pq, 8) + 8
    Mr = _round_up((H // 2) * Wq, 8)
    BB = math.gcd(B, 8)

    # Quad-pack the zero-padded input: (B, Pq_pad, 4*Cin), bf16.
    xp = jnp.pad(x_nhwc, ((0, 0), (1, 1), (1, 1), (0, 0)))
    xq = xp.reshape(B, Hq, 2, Wq, 2, Cin).transpose(0, 1, 3, 2, 4, 5)
    xq = xq.reshape(B, Pq, 4 * Cin)
    xq = jnp.pad(xq, ((0, 0), (0, Pq_pad - Pq), (0, 0))).astype(jnp.bfloat16)

    wq = _pack_conv_weights(w_oihw).astype(jnp.bfloat16)
    b4 = jnp.tile(bias, 4).reshape(1, 4 * Cout).astype(jnp.float32)

    kernel = functools.partial(_conv_pool_kernel, Wq=Wq, Mr=Mr, Cout=Cout,
                               BB=BB)
    return pl.pallas_call(
        kernel,
        out_shape=jax.ShapeDtypeStruct((B, Mr, Cout), jnp.float32),
        grid=(B // BB,),
        in_specs=[
            pl.BlockSpec((BB, Pq_pad, 4 * Cin), lambda i: (i, 0, 0)),
            pl.BlockSpec((4, 4 * Cin, 4 * Cout), lambda i: (0, 0, 0)),
            pl.BlockSpec((1, 4 * Cout), lambda i: (0, 0)),
        ],
        out_specs=pl.BlockSpec((BB, Mr, Cout), lambda i: (i, 0, 0)),
        compiler_params=pltpu.CompilerParams(
            dimension_semantics=("parallel",)),
    )(xq, wq, b4)


# ---------------------------------------------------------------------------
# Fused MLP kernel:  out = relu(x @ W1 + b1) @ W2 + b2
# ---------------------------------------------------------------------------
def _mlp_kernel(x_ref, w1_ref, b1_ref, w2_ref, b2_ref, o_ref):
    x = x_ref[...].astype(jnp.bfloat16)
    h = jnp.dot(x, w1_ref[...], preferred_element_type=jnp.float32) + b1_ref[...]
    h = jnp.maximum(h, 0.0).astype(jnp.bfloat16)
    o_ref[...] = jnp.dot(h, w2_ref[...],
                         preferred_element_type=jnp.float32) + b2_ref[...]


def mlp(x2, w1, b1, w2, b2):
    B, K = x2.shape
    N1, N2 = w1.shape[1], w2.shape[1]
    B_pad = _round_up(B, 8)
    if B_pad != B:
        x2 = jnp.pad(x2, ((0, B_pad - B), (0, 0)))
    BBF = 8 * math.gcd(B_pad // 8, 16)
    out = pl.pallas_call(
        _mlp_kernel,
        out_shape=jax.ShapeDtypeStruct((B_pad, N2), jnp.float32),
        grid=(B_pad // BBF,),
        in_specs=[
            pl.BlockSpec((BBF, K), lambda i: (i, 0)),
            pl.BlockSpec((K, N1), lambda i: (0, 0)),
            pl.BlockSpec((1, N1), lambda i: (0, 0)),
            pl.BlockSpec((N1, N2), lambda i: (0, 0)),
            pl.BlockSpec((1, N2), lambda i: (0, 0)),
        ],
        out_specs=pl.BlockSpec((BBF, N2), lambda i: (i, 0)),
        compiler_params=pltpu.CompilerParams(
            dimension_semantics=("parallel",)),
    )(x2, w1, b1, w2, b2)
    return out[:B]


# ---------------------------------------------------------------------------
# Full forward pass (mirrors CNN.forward)
# ---------------------------------------------------------------------------
@jax.jit
def cnn_forward(x_nchw, params):
    B = x_nchw.shape[0]
    x = jnp.transpose(x_nchw, (0, 2, 3, 1))                      # NCHW -> NHWC

    # layer1: conv(1->32)+ReLU+pool fused -> (B, 216, 32) -> (B, 14, 14, 32)
    h = conv3x3_relu_pool(x, params["w_conv1"], params["b_conv1"])
    h = h[:, :14 * 15, :].reshape(B, 14, 15, 32)[:, :, :14, :]

    # layer2: conv(32->16)+ReLU+pool fused -> (B, 56, 16); junk columns
    # (wp == 7) are killed below by zero rows in the permuted fc1 weight.
    h = conv3x3_relu_pool(h, params["w_conv2"], params["b_conv2"])
    x_fc = h.reshape(B, 56 * 16)

    # fc1 weight rows are in PyTorch NCHW-flatten order (c*49 + y*7 + w).
    # Permute to the kernel's (yp, wp, c) order and zero-pad the junk wp==7
    # column: no activation transpose / compaction is needed.
    w1r = params["w_fc1"].reshape(16, 7, 7, 256).transpose(1, 2, 0, 3)
    w1p = jnp.zeros((7, 8, 16, 256), params["w_fc1"].dtype)
    w1p = w1p.at[:, :7].set(w1r).reshape(56 * 16, 256).astype(jnp.bfloat16)
    b1 = params["b_fc1"].reshape(1, 256).astype(jnp.float32)

    # fc2: zero-pad 10 -> 128 output columns for lane-dense stores.
    w2p = jnp.zeros((256, 128), params["w_fc2"].dtype)
    w2p = w2p.at[:, :10].set(params["w_fc2"]).astype(jnp.bfloat16)
    b2p = jnp.zeros((1, 128), jnp.float32).at[:, :10].set(
        params["b_fc2"].reshape(1, 10))

    out = mlp(x_fc, w1p, b1, w2p, b2p)                           # (B, 128)
    return out[:, :10]


# ---------------------------------------------------------------------------
# Pure-JAX f32 reference (sanity check for the Pallas path)
# ---------------------------------------------------------------------------
def cnn_reference(x_nchw, params):
    def conv(x, w, b):
        y = jax.lax.conv_general_dilated(
            x, w, (1, 1), "SAME",
            dimension_numbers=("NCHW", "OIHW", "NCHW"))
        return jax.nn.relu(y + b[None, :, None, None])

    def pool(x):
        return jax.lax.reduce_window(x, -jnp.inf, jax.lax.max,
                                     (1, 1, 2, 2), (1, 1, 2, 2), "VALID")

    h = pool(conv(x_nchw, params["w_conv1"], params["b_conv1"]))
    h = pool(conv(h, params["w_conv2"], params["b_conv2"]))
    h = h.reshape(h.shape[0], -1)
    h = jax.nn.relu(h @ params["w_fc1"] + params["b_fc1"])
    return h @ params["w_fc2"] + params["b_fc2"]


if __name__ == "__main__":
    key = jax.random.PRNGKey(0)
    ks = jax.random.split(key, 9)

    params = {
        "w_conv1": 0.10 * jax.random.normal(ks[0], (32, 1, 3, 3), jnp.float32),
        "b_conv1": 0.10 * jax.random.normal(ks[1], (32,), jnp.float32),
        "w_conv2": 0.10 * jax.random.normal(ks[2], (16, 32, 3, 3), jnp.float32),
        "b_conv2": 0.10 * jax.random.normal(ks[3], (16,), jnp.float32),
        "w_fc1": 0.05 * jax.random.normal(ks[4], (784, 256), jnp.float32),
        "b_fc1": 0.05 * jax.random.normal(ks[5], (256,), jnp.float32),
        "w_fc2": 0.05 * jax.random.normal(ks[6], (256, 10), jnp.float32),
        "b_fc2": 0.05 * jax.random.normal(ks[7], (10,), jnp.float32),
    }

    # view(-1, 784) after two 2x2 pools over 16 channels implies 28x28
    # single-channel (MNIST-style) inputs.
    x = jax.random.normal(ks[8], (2, 1, 28, 28), jnp.float32)

    out = jax.block_until_ready(cnn_forward(x, params))
    assert out.shape == (2, 10) and out.dtype == jnp.float32

    ref = jax.block_until_ready(cnn_reference(x, params))
    np.testing.assert_allclose(np.asarray(out), np.asarray(ref),
                               rtol=2e-2, atol=2e-2)

    print("KERNEL_OK")
</pallas_src>

<mosaic_0001>
module attributes {stable_mosaic.version = 11 : i64} {
  func.func @_conv_pool_kernel(%arg0: i32, %arg1: memref<2x240x4xbf16, #tpu.memory_space<vmem>>, %arg2: memref<4x4x128xbf16, #tpu.memory_space<vmem>>, %arg3: memref<1x128xf32, #tpu.memory_space<vmem>>, %arg4: memref<2x216x32xf32, #tpu.memory_space<vmem>>) attributes {dimension_semantics = [#tpu.dimension_semantics<parallel>], iteration_bounds = array<i64: 1>, scalar_prefetch = 0 : i64, scratch_operands = 0 : i64, tpu.core_type = #tpu.core_type<tc>, window_params = [{transform_indices = @transform_0, window_bounds = array<i64: 2, 240, 4>}, {pipeline_mode = #tpu.pipeline_mode<synchronous>, transform_indices = @transform_1, window_bounds = array<i64: 4, 4, 128>}, {pipeline_mode = #tpu.pipeline_mode<synchronous>, transform_indices = @transform_2, window_bounds = array<i64: 1, 128>}, {transform_indices = @transform_3, window_bounds = array<i64: 2, 216, 32>}]} {
    %c0 = arith.constant 0 : index
    %c0_0 = arith.constant 0 : index
    %0 = vector.load %arg3[%c0, %c0_0] : memref<1x128xf32, #tpu.memory_space<vmem>>, vector<1x128xf32>
    %c0_1 = arith.constant 0 : index
    %c0_2 = arith.constant 0 : index
    %c0_3 = arith.constant 0 : index
    %1 = vector.load %arg1[%c0_1, %c0_2, %c0_3] : memref<2x240x4xbf16, #tpu.memory_space<vmem>>, vector<1x216x4xbf16>
    %2 = vector.shape_cast %1 : vector<1x216x4xbf16> to vector<216x4xbf16>
    %c0_4 = arith.constant 0 : index
    %c0_5 = arith.constant 0 : index
    %c0_6 = arith.constant 0 : index
    %3 = vector.load %arg2[%c0_4, %c0_5, %c0_6] : memref<4x4x128xbf16, #tpu.memory_space<vmem>>, vector<1x4x128xbf16>
    %4 = vector.shape_cast %3 : vector<1x4x128xbf16> to vector<4x128xbf16>
    %cst = arith.constant dense<0.000000e+00> : vector<216x128xf32>
    %5 = tpu.matmul %2, %4, %cst {dimension_numbers = #tpu.dot_dimension_numbers<[1], [0], [0], [1], [0, 0, 1, 1], [], []>} : vector<216x4xbf16>, vector<4x128xbf16>, vector<216x128xf32> -> vector<216x128xf32>
    %c0_7 = arith.constant 0 : index
    %c1 = arith.constant 1 : index
    %c0_8 = arith.constant 0 : index
    %6 = vector.load %arg1[%c0_7, %c1, %c0_8] : memref<2x240x4xbf16, #tpu.memory_space<vmem>>, vector<1x216x4xbf16>
    %7 = vector.shape_cast %6 : vector<1x216x4xbf16> to vector<216x4xbf16>
    %c1_9 = arith.constant 1 : index
    %c0_10 = arith.constant 0 : index
    %c0_11 = arith.constant 0 : index
    %8 = vector.load %arg2[%c1_9, %c0_10, %c0_11] : memref<4x4x128xbf16, #tpu.memory_space<vmem>>, vector<1x4x128xbf16>
    %9 = vector.shape_cast %8 : vector<1x4x128xbf16> to vector<4x128xbf16>
    %cst_12 = arith.constant dense<0.000000e+00> : vector<216x128xf32>
    %10 = tpu.matmul %7, %9, %cst_12 {dimension_numbers = #tpu.dot_dimension_numbers<[1], [0], [0], [1], [0, 0, 1, 1], [], []>} : vector<216x4xbf16>, vector<4x128xbf16>, vector<216x128xf32> -> vector<216x128xf32>
    %11 = arith.addf %5, %10 : vector<216x128xf32>
    %c0_13 = arith.constant 0 : index
    %c15 = arith.constant 15 : index
    %c0_14 = arith.constant 0 : index
    %12 = vector.load %arg1[%c0_13, %c15, %c0_14] : memref<2x240x4xbf16, #tpu.memory_space<vmem>>, vector<1x216x4xbf16>
    %13 = vector.shape_cast %12 : vector<1x216x4xbf16> to vector<216x4xbf16>
    %c2 = arith.constant 2 : index
    %c0_15 = arith.constant 0 : index
    %c0_16 = arith.constant 0 : index
    %14 = vector.load %arg2[%c2, %c0_15, %c0_16] : memref<4x4x128xbf16, #tpu.memory_space<vmem>>, vector<1x4x128xbf16>
    %15 = vector.shape_cast %14 : vector<1x4x128xbf16> to vector<4x128xbf16>
    %cst_17 = arith.constant dense<0.000000e+00> : vector<216x128xf32>
    %16 = tpu.matmul %13, %15, %cst_17 {dimension_numbers = #tpu.dot_dimension_numbers<[1], [0], [0], [1], [0, 0, 1, 1], [], []>} : vector<216x4xbf16>, vector<4x128xbf16>, vector<216x128xf32> -> vector<216x128xf32>
    %17 = arith.addf %11, %16 : vector<216x128xf32>
    %c0_18 = arith.constant 0 : index
    %c16 = arith.constant 16 : index
    %c0_19 = arith.constant 0 : index
    %18 = vector.load %arg1[%c0_18, %c16, %c0_19] : memref<2x240x4xbf16, #tpu.memory_space<vmem>>, vector<1x216x4xbf16>
    %19 = vector.shape_cast %18 : vector<1x216x4xbf16> to vector<216x4xbf16>
    %c3 = arith.constant 3 : index
    %c0_20 = arith.constant 0 : index
    %c0_21 = arith.constant 0 : index
    %20 = vector.load %arg2[%c3, %c0_20, %c0_21] : memref<4x4x128xbf16, #tpu.memory_space<vmem>>, vector<1x4x128xbf16>
    %21 = vector.shape_cast %20 : vector<1x4x128xbf16> to vector<4x128xbf16>
    %cst_22 = arith.constant dense<0.000000e+00> : vector<216x128xf32>
    %22 = tpu.matmul %19, %21, %cst_22 {dimension_numbers = #tpu.dot_dimension_numbers<[1], [0], [0], [1], [0, 0, 1, 1], [], []>} : vector<216x4xbf16>, vector<4x128xbf16>, vector<216x128xf32> -> vector<216x128xf32>
    %23 = arith.addf %17, %22 : vector<216x128xf32>
    %24 = vector.broadcast %0 : vector<1x128xf32> to vector<216x128xf32>
    %25 = arith.addf %23, %24 : vector<216x128xf32>
    %cst_23 = arith.constant 0.000000e+00 : f32
    %26 = vector.broadcast %cst_23 : f32 to vector<216x128xf32>
    %27 = arith.maximumf %25, %26 : vector<216x128xf32>
    %28 = vector.extract_strided_slice %27 {offsets = [0, 0], sizes = [216, 32], strides = [1, 1]} : vector<216x128xf32> to vector<216x32xf32>
    %29 = vector.extract_strided_slice %27 {offsets = [0, 32], sizes = [216, 32], strides = [1, 1]} : vector<216x128xf32> to vector<216x32xf32>
    %30 = arith.maximumf %28, %29 : vector<216x32xf32>
    %31 = vector.extract_strided_slice %27 {offsets = [0, 64], sizes = [216, 32], strides = [1, 1]} : vector<216x128xf32> to vector<216x32xf32>
    %32 = vector.extract_strided_slice %27 {offsets = [0, 96], sizes = [216, 32], strides = [1, 1]} : vector<216x128xf32> to vector<216x32xf32>
    %33 = arith.maximumf %31, %32 : vector<216x32xf32>
    %34 = arith.maximumf %30, %33 : vector<216x32xf32>
    %c0_24 = arith.constant 0 : index
    %c0_25 = arith.constant 0 : index
    %c0_26 = arith.constant 0 : index
    %35 = vector.load %arg4[%c0_24, %c0_25, %c0_26] : memref<2x216x32xf32, #tpu.memory_space<vmem>>, vector<1x216x32xf32>
    %36 = vector.shape_cast %35 : vector<1x216x32xf32> to vector<216x32xf32>
    %37 = vector.shape_cast %34 : vector<216x32xf32> to vector<1x216x32xf32>
    tpu.vector_store %arg4[%c0_24, %c0_25, %c0_26], %37 {strides = array<i32>} : memref<2x216x32xf32, #tpu.memory_space<vmem>>, vector<1x216x32xf32>,
    %c1_27 = arith.constant 1 : index
    %c0_28 = arith.constant 0 : index
    %c0_29 = arith.constant 0 : index
    %38 = vector.load %arg1[%c1_27, %c0_28, %c0_29] : memref<2x240x4xbf16, #tpu.memory_space<vmem>>, vector<1x216x4xbf16>
    %39 = vector.shape_cast %38 : vector<1x216x4xbf16> to vector<216x4xbf16>
    %c0_30 = arith.constant 0 : index
    %c0_31 = arith.constant 0 : index
    %c0_32 = arith.constant 0 : index
    %40 = vector.load %arg2[%c0_30, %c0_31, %c0_32] : memref<4x4x128xbf16, #tpu.memory_space<vmem>>, vector<1x4x128xbf16>
    %41 = vector.shape_cast %40 : vector<1x4x128xbf16> to vector<4x128xbf16>
    %cst_33 = arith.constant dense<0.000000e+00> : vector<216x128xf32>
    %42 = tpu.matmul %39, %41, %cst_33 {dimension_numbers = #tpu.dot_dimension_numbers<[1], [0], [0], [1], [0, 0, 1, 1], [], []>} : vector<216x4xbf16>, vector<4x128xbf16>, vector<216x128xf32> -> vector<216x128xf32>
    %c1_34 = arith.constant 1 : index
    %c1_35 = arith.constant 1 : index
    %c0_36 = arith.constant 0 : index
    %43 = vector.load %arg1[%c1_34, %c1_35, %c0_36] : memref<2x240x4xbf16, #tpu.memory_space<vmem>>, vector<1x216x4xbf16>
    %44 = vector.shape_cast %43 : vector<1x216x4xbf16> to vector<216x4xbf16>
    %c1_37 = arith.constant 1 : index
    %c0_38 = arith.constant 0 : index
    %c0_39 = arith.constant 0 : index
    %45 = vector.load %arg2[%c1_37, %c0_38, %c0_39] : memref<4x4x128xbf16, #tpu.memory_space<vmem>>, vector<1x4x128xbf16>
    %46 = vector.shape_cast %45 : vector<1x4x128xbf16> to vector<4x128xbf16>
    %cst_40 = arith.constant dense<0.000000e+00> : vector<216x128xf32>
    %47 = tpu.matmul %44, %46, %cst_40 {dimension_numbers = #tpu.dot_dimension_numbers<[1], [0], [0], [1], [0, 0, 1, 1], [], []>} : vector<216x4xbf16>, vector<4x128xbf16>, vector<216x128xf32> -> vector<216x128xf32>
    %48 = arith.addf %42, %47 : vector<216x128xf32>
    %c1_41 = arith.constant 1 : index
    %c15_42 = arith.constant 15 : index
    %c0_43 = arith.constant 0 : index
    %49 = vector.load %arg1[%c1_41, %c15_42, %c0_43] : memref<2x240x4xbf16, #tpu.memory_space<vmem>>, vector<1x216x4xbf16>
    %50 = vector.shape_cast %49 : vector<1x216x4xbf16> to vector<216x4xbf16>
    %c2_44 = arith.constant 2 : index
    %c0_45 = arith.constant 0 : index
    %c0_46 = arith.constant 0 : index
    %51 = vector.load %arg2[%c2_44, %c0_45, %c0_46] : memref<4x4x128xbf16, #tpu.memory_space<vmem>>, vector<1x4x128xbf16>
    %52 = vector.shape_cast %51 : vector<1x4x128xbf16> to vector<4x128xbf16>
    %cst_47 = arith.constant dense<0.000000e+00> : vector<216x128xf32>
    %53 = tpu.matmul %50, %52, %cst_47 {dimension_numbers = #tpu.dot_dimension_numbers<[1], [0], [0], [1], [0, 0, 1, 1], [], []>} : vector<216x4xbf16>, vector<4x128xbf16>, vector<216x128xf32> -> vector<216x128xf32>
    %54 = arith.addf %48, %53 : vector<216x128xf32>
    %c1_48 = arith.constant 1 : index
    %c16_49 = arith.constant 16 : index
    %c0_50 = arith.constant 0 : index
    %55 = vector.load %arg1[%c1_48, %c16_49, %c0_50] : memref<2x240x4xbf16, #tpu.memory_space<vmem>>, vector<1x216x4xbf16>
    %56 = vector.shape_cast %55 : vector<1x216x4xbf16> to vector<216x4xbf16>
    %c3_51 = arith.constant 3 : index
    %c0_52 = arith.constant 0 : index
    %c0_53 = arith.constant 0 : index
    %57 = vector.load %arg2[%c3_51, %c0_52, %c0_53] : memref<4x4x128xbf16, #tpu.memory_space<vmem>>, vector<1x4x128xbf16>
    %58 = vector.shape_cast %57 : vector<1x4x128xbf16> to vector<4x128xbf16>
    %cst_54 = arith.constant dense<0.000000e+00> : vector<216x128xf32>
    %59 = tpu.matmul %56, %58, %cst_54 {dimension_numbers = #tpu.dot_dimension_numbers<[1], [0], [0], [1], [0, 0, 1, 1], [], []>} : vector<216x4xbf16>, vector<4x128xbf16>, vector<216x128xf32> -> vector<216x128xf32>
    %60 = arith.addf %54, %59 : vector<216x128xf32>
    %61 = vector.broadcast %0 : vector<1x128xf32> to vector<216x128xf32>
    %62 = arith.addf %60, %61 : vector<216x128xf32>
    %cst_55 = arith.constant 0.000000e+00 : f32
    %63 = vector.broadcast %cst_55 : f32 to vector<216x128xf32>
    %64 = arith.maximumf %62, %63 : vector<216x128xf32>
    %65 = vector.extract_strided_slice %64 {offsets = [0, 0], sizes = [216, 32], strides = [1, 1]} : vector<216x128xf32> to vector<216x32xf32>
    %66 = vector.extract_strided_slice %64 {offsets = [0, 32], sizes = [216, 32], strides = [1, 1]} : vector<216x128xf32> to vector<216x32xf32>
    %67 = arith.maximumf %65, %66 : vector<216x32xf32>
    %68 = vector.extract_strided_slice %64 {offsets = [0, 64], sizes = [216, 32], strides = [1, 1]} : vector<216x128xf32> to vector<216x32xf32>
    %69 = vector.extract_strided_slice %64 {offsets = [0, 96], sizes = [216, 32], strides = [1, 1]} : vector<216x128xf32> to vector<216x32xf32>
    %70 = arith.maximumf %68, %69 : vector<216x32xf32>
    %71 = arith.maximumf %67, %70 : vector<216x32xf32>
    %c1_56 = arith.constant 1 : index
    %c0_57 = arith.constant 0 : index
    %c0_58 = arith.constant 0 : index
    %72 = vector.load %arg4[%c1_56, %c0_57, %c0_58] : memref<2x216x32xf32, #tpu.memory_space<vmem>>, vector<1x216x32xf32>
    %73 = vector.shape_cast %72 : vector<1x216x32xf32> to vector<216x32xf32>
    %74 = vector.shape_cast %71 : vector<216x32xf32> to vector<1x216x32xf32>
    tpu.vector_store %arg4[%c1_56, %c0_57, %c0_58], %74 {strides = array<i32>} : memref<2x216x32xf32, #tpu.memory_space<vmem>>, vector<1x216x32xf32>,
    return
  }
  func.func @transform_0(%arg0: i32) -> (i32, i32, i32) {
    %c0_i32 = arith.constant 0 : i32
    %c0_i32_0 = arith.constant 0 : i32
    %c0_i32_1 = arith.constant 0 : i32
    return %arg0, %c0_i32, %c0_i32_0 : i32, i32, i32
  }
  func.func @transform_1(%arg0: i32) -> (i32, i32, i32) {
    %c0_i32 = arith.constant 0 : i32
    %c0_i32_0 = arith.constant 0 : i32
    %c0_i32_1 = arith.constant 0 : i32
    %c0_i32_2 = arith.constant 0 : i32
    return %c0_i32, %c0_i32_0, %c0_i32_1 : i32, i32, i32
  }
  func.func @transform_2(%arg0: i32) -> (i32, i32) {
    %c0_i32 = arith.constant 0 : i32
    %c0_i32_0 = arith.constant 0 : i32
    %c0_i32_1 = arith.constant 0 : i32
    return %c0_i32, %c0_i32_0 : i32, i32
  }
  func.func @transform_3(%arg0: i32) -> (i32, i32, i32) {
    %c0_i32 = arith.constant 0 : i32
    %c0_i32_0 = arith.constant 0 : i32
    %c0_i32_1 = arith.constant 0 : i32
    return %arg0, %c0_i32, %c0_i32_0 : i32, i32, i32
  }
}

module attributes {stable_mosaic.version = 11 : i64} {
  func.func @_conv_pool_kernel(%arg0: i32, %arg1: memref<2x72x128xbf16, #tpu.memory_space<vmem>>, %arg2: memref<4x128x64xbf16, #tpu.memory_space<vmem>>, %arg3: memref<1x64xf32, #tpu.memory_space<vmem>>, %arg4: memref<2x56x16xf32, #tpu.memory_space<vmem>>) attributes {dimension_semantics = [#tpu.dimension_semantics<parallel>], iteration_bounds = array<i64: 1>, scalar_prefetch = 0 : i64, scratch_operands = 0 : i64, tpu.core_type = #tpu.core_type<tc>, window_params = [{transform_indices = @transform_0, window_bounds = array<i64: 2, 72, 128>}, {pipeline_mode = #tpu.pipeline_mode<synchronous>, transform_indices = @transform_1, window_bounds = array<i64: 4, 128, 64>}, {pipeline_mode = #tpu.pipeline_mode<synchronous>, transform_indices = @transform_2, window_bounds = array<i64: 1, 64>}, {transform_indices = @transform_3, window_bounds = array<i64: 2, 56, 16>}]} {
    %c0 = arith.constant 0 : index
    %c0_0 = arith.constant 0 : index
    %0 = vector.load %arg3[%c0, %c0_0] : memref<1x64xf32, #tpu.memory_space<vmem>>, vector<1x64xf32>
    %c0_1 = arith.constant 0 : index
    %c0_2 = arith.constant 0 : index
    %c0_3 = arith.constant 0 : index
    %1 = vector.load %arg1[%c0_1, %c0_2, %c0_3] : memref<2x72x128xbf16, #tpu.memory_space<vmem>>, vector<1x56x128xbf16>
    %2 = vector.shape_cast %1 : vector<1x56x128xbf16> to vector<56x128xbf16>
    %c0_4 = arith.constant 0 : index
    %c0_5 = arith.constant 0 : index
    %c0_6 = arith.constant 0 : index
    %3 = vector.load %arg2[%c0_4, %c0_5, %c0_6] : memref<4x128x64xbf16, #tpu.memory_space<vmem>>, vector<1x128x64xbf16>
    %4 = vector.shape_cast %3 : vector<1x128x64xbf16> to vector<128x64xbf16>
    %cst = arith.constant dense<0.000000e+00> : vector<56x64xf32>
    %5 = tpu.matmul %2, %4, %cst {dimension_numbers = #tpu.dot_dimension_numbers<[1], [0], [0], [1], [0, 0, 1, 1], [], []>} : vector<56x128xbf16>, vector<128x64xbf16>, vector<56x64xf32> -> vector<56x64xf32>
    %c0_7 = arith.constant 0 : index
    %c1 = arith.constant 1 : index
    %c0_8 = arith.constant 0 : index
    %6 = vector.load %arg1[%c0_7, %c1, %c0_8] : memref<2x72x128xbf16, #tpu.memory_space<vmem>>, vector<1x56x128xbf16>
    %7 = vector.shape_cast %6 : vector<1x56x128xbf16> to vector<56x128xbf16>
    %c1_9 = arith.constant 1 : index
    %c0_10 = arith.constant 0 : index
    %c0_11 = arith.constant 0 : index
    %8 = vector.load %arg2[%c1_9, %c0_10, %c0_11] : memref<4x128x64xbf16, #tpu.memory_space<vmem>>, vector<1x128x64xbf16>
    %9 = vector.shape_cast %8 : vector<1x128x64xbf16> to vector<128x64xbf16>
    %cst_12 = arith.constant dense<0.000000e+00> : vector<56x64xf32>
    %10 = tpu.matmul %7, %9, %cst_12 {dimension_numbers = #tpu.dot_dimension_numbers<[1], [0], [0], [1], [0, 0, 1, 1], [], []>} : vector<56x128xbf16>, vector<128x64xbf16>, vector<56x64xf32> -> vector<56x64xf32>
    %11 = arith.addf %5, %10 : vector<56x64xf32>
    %c0_13 = arith.constant 0 : index
    %c8 = arith.constant 8 : index
    %c0_14 = arith.constant 0 : index
    %12 = vector.load %arg1[%c0_13, %c8, %c0_14] : memref<2x72x128xbf16, #tpu.memory_space<vmem>>, vector<1x56x128xbf16>
    %13 = vector.shape_cast %12 : vector<1x56x128xbf16> to vector<56x128xbf16>
    %c2 = arith.constant 2 : index
    %c0_15 = arith.constant 0 : index
    %c0_16 = arith.constant 0 : index
    %14 = vector.load %arg2[%c2, %c0_15, %c0_16] : memref<4x128x64xbf16, #tpu.memory_space<vmem>>, vector<1x128x64xbf16>
    %15 = vector.shape_cast %14 : vector<1x128x64xbf16> to vector<128x64xbf16>
    %cst_17 = arith.constant dense<0.000000e+00> : vector<56x64xf32>
    %16 = tpu.matmul %13, %15, %cst_17 {dimension_numbers = #tpu.dot_dimension_numbers<[1], [0], [0], [1], [0, 0, 1, 1], [], []>} : vector<56x128xbf16>, vector<128x64xbf16>, vector<56x64xf32> -> vector<56x64xf32>
    %17 = arith.addf %11, %16 : vector<56x64xf32>
    %c0_18 = arith.constant 0 : index
    %c9 = arith.constant 9 : index
    %c0_19 = arith.constant 0 : index
    %18 = vector.load %arg1[%c0_18, %c9, %c0_19] : memref<2x72x128xbf16, #tpu.memory_space<vmem>>, vector<1x56x128xbf16>
    %19 = vector.shape_cast %18 : vector<1x56x128xbf16> to vector<56x128xbf16>
    %c3 = arith.constant 3 : index
    %c0_20 = arith.constant 0 : index
    %c0_21 = arith.constant 0 : index
    %20 = vector.load %arg2[%c3, %c0_20, %c0_21] : memref<4x128x64xbf16, #tpu.memory_space<vmem>>, vector<1x128x64xbf16>
    %21 = vector.shape_cast %20 : vector<1x128x64xbf16> to vector<128x64xbf16>
    %cst_22 = arith.constant dense<0.000000e+00> : vector<56x64xf32>
    %22 = tpu.matmul %19, %21, %cst_22 {dimension_numbers = #tpu.dot_dimension_numbers<[1], [0], [0], [1], [0, 0, 1, 1], [], []>} : vector<56x128xbf16>, vector<128x64xbf16>, vector<56x64xf32> -> vector<56x64xf32>
    %23 = arith.addf %17, %22 : vector<56x64xf32>
    %24 = vector.broadcast %0 : vector<1x64xf32> to vector<56x64xf32>
    %25 = arith.addf %23, %24 : vector<56x64xf32>
    %cst_23 = arith.constant 0.000000e+00 : f32
    %26 = vector.broadcast %cst_23 : f32 to vector<56x64xf32>
    %27 = arith.maximumf %25, %26 : vector<56x64xf32>
    %28 = vector.extract_strided_slice %27 {offsets = [0, 0], sizes = [56, 16], strides = [1, 1]} : vector<56x64xf32> to vector<56x16xf32>
    %29 = vector.extract_strided_slice %27 {offsets = [0, 16], sizes = [56, 16], strides = [1, 1]} : vector<56x64xf32> to vector<56x16xf32>
    %30 = arith.maximumf %28, %29 : vector<56x16xf32>
    %31 = vector.extract_strided_slice %27 {offsets = [0, 32], sizes = [56, 16], strides = [1, 1]} : vector<56x64xf32> to vector<56x16xf32>
    %32 = vector.extract_strided_slice %27 {offsets = [0, 48], sizes = [56, 16], strides = [1, 1]} : vector<56x64xf32> to vector<56x16xf32>
    %33 = arith.maximumf %31, %32 : vector<56x16xf32>
    %34 = arith.maximumf %30, %33 : vector<56x16xf32>
    %c0_24 = arith.constant 0 : index
    %c0_25 = arith.constant 0 : index
    %c0_26 = arith.constant 0 : index
    %35 = vector.load %arg4[%c0_24, %c0_25, %c0_26] : memref<2x56x16xf32, #tpu.memory_space<vmem>>, vector<1x56x16xf32>
    %36 = vector.shape_cast %35 : vector<1x56x16xf32> to vector<56x16xf32>
    %37 = vector.shape_cast %34 : vector<56x16xf32> to vector<1x56x16xf32>
    tpu.vector_store %arg4[%c0_24, %c0_25, %c0_26], %37 {strides = array<i32>} : memref<2x56x16xf32, #tpu.memory_space<vmem>>, vector<1x56x16xf32>,
    %c1_27 = arith.constant 1 : index
    %c0_28 = arith.constant 0 : index
    %c0_29 = arith.constant 0 : index
    %38 = vector.load %arg1[%c1_27, %c0_28, %c0_29] : memref<2x72x128xbf16, #tpu.memory_space<vmem>>, vector<1x56x128xbf16>
    %39 = vector.shape_cast %38 : vector<1x56x128xbf16> to vector<56x128xbf16>
    %c0_30 = arith.constant 0 : index
    %c0_31 = arith.constant 0 : index
    %c0_32 = arith.constant 0 : index
    %40 = vector.load %arg2[%c0_30, %c0_31, %c0_32] : memref<4x128x64xbf16, #tpu.memory_space<vmem>>, vector<1x128x64xbf16>
    %41 = vector.shape_cast %40 : vector<1x128x64xbf16> to vector<128x64xbf16>
    %cst_33 = arith.constant dense<0.000000e+00> : vector<56x64xf32>
    %42 = tpu.matmul %39, %41, %cst_33 {dimension_numbers = #tpu.dot_dimension_numbers<[1], [0], [0], [1], [0, 0, 1, 1], [], []>} : vector<56x128xbf16>, vector<128x64xbf16>, vector<56x64xf32> -> vector<56x64xf32>
    %c1_34 = arith.constant 1 : index
    %c1_35 = arith.constant 1 : index
    %c0_36 = arith.constant 0 : index
    %43 = vector.load %arg1[%c1_34, %c1_35, %c0_36] : memref<2x72x128xbf16, #tpu.memory_space<vmem>>, vector<1x56x128xbf16>
    %44 = vector.shape_cast %43 : vector<1x56x128xbf16> to vector<56x128xbf16>
    %c1_37 = arith.constant 1 : index
    %c0_38 = arith.constant 0 : index
    %c0_39 = arith.constant 0 : index
    %45 = vector.load %arg2[%c1_37, %c0_38, %c0_39] : memref<4x128x64xbf16, #tpu.memory_space<vmem>>, vector<1x128x64xbf16>
    %46 = vector.shape_cast %45 : vector<1x128x64xbf16> to vector<128x64xbf16>
    %cst_40 = arith.constant dense<0.000000e+00> : vector<56x64xf32>
    %47 = tpu.matmul %44, %46, %cst_40 {dimension_numbers = #tpu.dot_dimension_numbers<[1], [0], [0], [1], [0, 0, 1, 1], [], []>} : vector<56x128xbf16>, vector<128x64xbf16>, vector<56x64xf32> -> vector<56x64xf32>
    %48 = arith.addf %42, %47 : vector<56x64xf32>
    %c1_41 = arith.constant 1 : index
    %c8_42 = arith.constant 8 : index
    %c0_43 = arith.constant 0 : index
    %49 = vector.load %arg1[%c1_41, %c8_42, %c0_43] : memref<2x72x128xbf16, #tpu.memory_space<vmem>>, vector<1x56x128xbf16>
    %50 = vector.shape_cast %49 : vector<1x56x128xbf16> to vector<56x128xbf16>
    %c2_44 = arith.constant 2 : index
    %c0_45 = arith.constant 0 : index
    %c0_46 = arith.constant 0 : index
    %51 = vector.load %arg2[%c2_44, %c0_45, %c0_46] : memref<4x128x64xbf16, #tpu.memory_space<vmem>>, vector<1x128x64xbf16>
    %52 = vector.shape_cast %51 : vector<1x128x64xbf16> to vector<128x64xbf16>
    %cst_47 = arith.constant dense<0.000000e+00> : vector<56x64xf32>
    %53 = tpu.matmul %50, %52, %cst_47 {dimension_numbers = #tpu.dot_dimension_numbers<[1], [0], [0], [1], [0, 0, 1, 1], [], []>} : vector<56x128xbf16>, vector<128x64xbf16>, vector<56x64xf32> -> vector<56x64xf32>
    %54 = arith.addf %48, %53 : vector<56x64xf32>
    %c1_48 = arith.constant 1 : index
    %c9_49 = arith.constant 9 : index
    %c0_50 = arith.constant 0 : index
    %55 = vector.load %arg1[%c1_48, %c9_49, %c0_50] : memref<2x72x128xbf16, #tpu.memory_space<vmem>>, vector<1x56x128xbf16>
    %56 = vector.shape_cast %55 : vector<1x56x128xbf16> to vector<56x128xbf16>
    %c3_51 = arith.constant 3 : index
    %c0_52 = arith.constant 0 : index
    %c0_53 = arith.constant 0 : index
    %57 = vector.load %arg2[%c3_51, %c0_52, %c0_53] : memref<4x128x64xbf16, #tpu.memory_space<vmem>>, vector<1x128x64xbf16>
    %58 = vector.shape_cast %57 : vector<1x128x64xbf16> to vector<128x64xbf16>
    %cst_54 = arith.constant dense<0.000000e+00> : vector<56x64xf32>
    %59 = tpu.matmul %56, %58, %cst_54 {dimension_numbers = #tpu.dot_dimension_numbers<[1], [0], [0], [1], [0, 0, 1, 1], [], []>} : vector<56x128xbf16>, vector<128x64xbf16>, vector<56x64xf32> -> vector<56x64xf32>
    %60 = arith.addf %54, %59 : vector<56x64xf32>
    %61 = vector.broadcast %0 : vector<1x64xf32> to vector<56x64xf32>
    %62 = arith.addf %60, %61 : vector<56x64xf32>
    %cst_55 = arith.constant 0.000000e+00 : f32
    %63 = vector.broadcast %cst_55 : f32 to vector<56x64xf32>
    %64 = arith.maximumf %62, %63 : vector<56x64xf32>
    %65 = vector.extract_strided_slice %64 {offsets = [0, 0], sizes = [56, 16], strides = [1, 1]} : vector<56x64xf32> to vector<56x16xf32>
    %66 = vector.extract_strided_slice %64 {offsets = [0, 16], sizes = [56, 16], strides = [1, 1]} : vector<56x64xf32> to vector<56x16xf32>
    %67 = arith.maximumf %65, %66 : vector<56x16xf32>
    %68 = vector.extract_strided_slice %64 {offsets = [0, 32], sizes = [56, 16], strides = [1, 1]} : vector<56x64xf32> to vector<56x16xf32>
    %69 = vector.extract_strided_slice %64 {offsets = [0, 48], sizes = [56, 16], strides = [1, 1]} : vector<56x64xf32> to vector<56x16xf32>
    %70 = arith.maximumf %68, %69 : vector<56x16xf32>
    %71 = arith.maximumf %67, %70 : vector<56x16xf32>
    %c1_56 = arith.constant 1 : index
    %c0_57 = arith.constant 0 : index
    %c0_58 = arith.constant 0 : index
    %72 = vector.load %arg4[%c1_56, %c0_57, %c0_58] : memref<2x56x16xf32, #tpu.memory_space<vmem>>, vector<1x56x16xf32>
    %73 = vector.shape_cast %72 : vector<1x56x16xf32> to vector<56x16xf32>
    %74 = vector.shape_cast %71 : vector<56x16xf32> to vector<1x56x16xf32>
    tpu.vector_store %arg4[%c1_56, %c0_57, %c0_58], %74 {strides = array<i32>} : memref<2x56x16xf32, #tpu.memory_space<vmem>>, vector<1x56x16xf32>,
    return
  }
  func.func @transform_0(%arg0: i32) -> (i32, i32, i32) {
    %c0_i32 = arith.constant 0 : i32
    %c0_i32_0 = arith.constant 0 : i32
    %c0_i32_1 = arith.constant 0 : i32
    return %arg0, %c0_i32, %c0_i32_0 : i32, i32, i32
  }
  func.func @transform_1(%arg0: i32) -> (i32, i32, i32) {
    %c0_i32 = arith.constant 0 : i32
    %c0_i32_0 = arith.constant 0 : i32
    %c0_i32_1 = arith.constant 0 : i32
    %c0_i32_2 = arith.constant 0 : i32
    return %c0_i32, %c0_i32_0, %c0_i32_1 : i32, i32, i32
  }
  func.func @transform_2(%arg0: i32) -> (i32, i32) {
    %c0_i32 = arith.constant 0 : i32
    %c0_i32_0 = arith.constant 0 : i32
    %c0_i32_1 = arith.constant 0 : i32
    return %c0_i32, %c0_i32_0 : i32, i32
  }
  func.func @transform_3(%arg0: i32) -> (i32, i32, i32) {
    %c0_i32 = arith.constant 0 : i32
    %c0_i32_0 = arith.constant 0 : i32
    %c0_i32_1 = arith.constant 0 : i32
    return %arg0, %c0_i32, %c0_i32_0 : i32, i32, i32
  }
}

module attributes {stable_mosaic.version = 11 : i64} {
  func.func @_mlp_kernel(%arg0: i32, %arg1: memref<8x896xf32, #tpu.memory_space<vmem>>, %arg2: memref<896x256xbf16, #tpu.memory_space<vmem>>, %arg3: memref<1x256xf32, #tpu.memory_space<vmem>>, %arg4: memref<256x128xbf16, #tpu.memory_space<vmem>>, %arg5: memref<1x128xf32, #tpu.memory_space<vmem>>, %arg6: memref<8x128xf32, #tpu.memory_space<vmem>>) attributes {dimension_semantics = [#tpu.dimension_semantics<parallel>], iteration_bounds = array<i64: 1>, scalar_prefetch = 0 : i64, scratch_operands = 0 : i64, tpu.core_type = #tpu.core_type<tc>, window_params = [{transform_indices = @transform_0, window_bounds = array<i64: 8, 896>}, {pipeline_mode = #tpu.pipeline_mode<synchronous>, transform_indices = @transform_1, window_bounds = array<i64: 896, 256>}, {pipeline_mode = #tpu.pipeline_mode<synchronous>, transform_indices = @transform_2, window_bounds = array<i64: 1, 256>}, {pipeline_mode = #tpu.pipeline_mode<synchronous>, transform_indices = @transform_3, window_bounds = array<i64: 256, 128>}, {pipeline_mode = #tpu.pipeline_mode<synchronous>, transform_indices = @transform_4, window_bounds = array<i64: 1, 128>}, {transform_indices = @transform_5, window_bounds = array<i64: 8, 128>}]} {
    %c0 = arith.constant 0 : index
    %c0_0 = arith.constant 0 : index
    %0 = vector.load %arg1[%c0, %c0_0] : memref<8x896xf32, #tpu.memory_space<vmem>>, vector<8x896xf32>
    %1 = arith.truncf %0 : vector<8x896xf32> to vector<8x896xbf16>
    %c0_1 = arith.constant 0 : index
    %c0_2 = arith.constant 0 : index
    %2 = vector.load %arg2[%c0_1, %c0_2] : memref<896x256xbf16, #tpu.memory_space<vmem>>, vector<896x256xbf16>
    %cst = arith.constant dense<0.000000e+00> : vector<8x256xf32>
    %3 = tpu.matmul %1, %2, %cst {dimension_numbers = #tpu.dot_dimension_numbers<[1], [0], [0], [1], [0, 0, 1, 1], [], []>} : vector<8x896xbf16>, vector<896x256xbf16>, vector<8x256xf32> -> vector<8x256xf32>
    %c0_3 = arith.constant 0 : index
    %c0_4 = arith.constant 0 : index
    %4 = vector.load %arg3[%c0_3, %c0_4] : memref<1x256xf32, #tpu.memory_space<vmem>>, vector<1x256xf32>
    %5 = vector.broadcast %4 : vector<1x256xf32> to vector<8x256xf32>
    %6 = arith.addf %3, %5 : vector<8x256xf32>
    %cst_5 = arith.constant 0.000000e+00 : f32
    %7 = vector.broadcast %cst_5 : f32 to vector<8x256xf32>
    %8 = arith.maximumf %6, %7 : vector<8x256xf32>
    %9 = arith.truncf %8 : vector<8x256xf32> to vector<8x256xbf16>
    %c0_6 = arith.constant 0 : index
    %c0_7 = arith.constant 0 : index
    %10 = vector.load %arg4[%c0_6, %c0_7] : memref<256x128xbf16, #tpu.memory_space<vmem>>, vector<256x128xbf16>
    %cst_8 = arith.constant dense<0.000000e+00> : vector<8x128xf32>
    %11 = tpu.matmul %9, %10, %cst_8 {dimension_numbers = #tpu.dot_dimension_numbers<[1], [0], [0], [1], [0, 0, 1, 1], [], []>} : vector<8x256xbf16>, vector<256x128xbf16>, vector<8x128xf32> -> vector<8x128xf32>
    %c0_9 = arith.constant 0 : index
    %c0_10 = arith.constant 0 : index
    %12 = vector.load %arg5[%c0_9, %c0_10] : memref<1x128xf32, #tpu.memory_space<vmem>>, vector<1x128xf32>
    %13 = vector.broadcast %12 : vector<1x128xf32> to vector<8x128xf32>
    %14 = arith.addf %11, %13 : vector<8x128xf32>
    %c0_11 = arith.constant 0 : index
    %c0_12 = arith.constant 0 : index
    %15 = vector.load %arg6[%c0_11, %c0_12] : memref<8x128xf32, #tpu.memory_space<vmem>>, vector<8x128xf32>
    tpu.vector_store %arg6[%c0_11, %c0_12], %14 {strides = array<i32>} : memref<8x128xf32, #tpu.memory_space<vmem>>, vector<8x128xf32>,
    return
  }
  func.func @transform_0(%arg0: i32) -> (i32, i32) {
    %c0_i32 = arith.constant 0 : i32
    %c0_i32_0 = arith.constant 0 : i32
    return %arg0, %c0_i32 : i32, i32
  }
  func.func @transform_1(%arg0: i32) -> (i32, i32) {
    %c0_i32 = arith.constant 0 : i32
    %c0_i32_0 = arith.constant 0 : i32
    %c0_i32_1 = arith.constant 0 : i32
    return %c0_i32, %c0_i32_0 : i32, i32
  }
  func.func @transform_2(%arg0: i32) -> (i32, i32) {
    %c0_i32 = arith.constant 0 : i32
    %c0_i32_0 = arith.constant 0 : i32
    %c0_i32_1 = arith.constant 0 : i32
    return %c0_i32, %c0_i32_0 : i32, i32
  }
  func.func @transform_3(%arg0: i32) -> (i32, i32) {
    %c0_i32 = arith.constant 0 : i32
    %c0_i32_0 = arith.constant 0 : i32
    %c0_i32_1 = arith.constant 0 : i32
    return %c0_i32, %c0_i32_0 : i32, i32
  }
  func.func @transform_4(%arg0: i32) -> (i32, i32) {
    %c0_i32 = arith.constant 0 : i32
    %c0_i32_0 = arith.constant 0 : i32
    %c0_i32_1 = arith.constant 0 : i32
    return %c0_i32, %c0_i32_0 : i32, i32
  }
  func.func @transform_5(%arg0: i32) -> (i32, i32) {
    %c0_i32 = arith.constant 0 : i32
    %c0_i32_0 = arith.constant 0 : i32
    return %arg0, %c0_i32 : i32, i32
  }
}

</mosaic_0001>

<bundles_post_ra>
// kernel: tile.13
= control target key start
LH: loop header
LB: loop body
LE: loop exit
PB: predicated region body
PF: predicated region fallthrough
CT: control target
= control target key end

     0   :  { %s22_s0 = inlined_call_operand.vmem [shape: f32[32], index: 0, kind: input, shape index: {}]   ;;  %s23_s1 = inlined_call_operand.vmem [shape: f32[4,32], index: 1, kind: output, shape index: {}]  }
   0x1   :  { %v4_v0 = vld [vmem:[%s22_s0] ss:$0 sm:$0xff] }
   0x2   :  { %5 = vst [vmem:[%s23_s1] sm:$0xf] %v4_v0 }

// kernel: tile.14
= control target key start
LH: loop header
LB: loop body
LE: loop exit
PB: predicated region body
PF: predicated region fallthrough
CT: control target
= control target key end

     0   :  { %s37_s8 = smov 32   ;;  %s38_s9 = smov 64   ;;  %vm7_vm0 = vcmask 261120   ;;  %vm13_vm1 = vcmask 1048320   ;;  %vm19_vm2 = vcmask 785920   ;;  %vm25_vm3 = vcmask 523520   ;;  %s55_s0 = inlined_call_operand.vmem [shape: f32[4,32], index: 0, kind: input, shape index: {}]   ;;  %s56_s1 = inlined_call_operand.vmem [shape: f32[1,128], index: 1, kind: output, shape index: {}]  }
   0x1   :  { %v4_v0 = vld [vmem:[%s55_s0] sm:$0xf]  ;;  %s36_s0 = smov 96  }
   0x2   :  { %5 = vst [vmem:[#allocation1] sm:$0xf] %v4_v0 }
   0x9   :  { %v10_v1 = vld [vmem:[#allocation1 + $0x3] sm:$0x1]   ;;  %v22_v2 = vld [vmem:[#allocation1 + $0x1] sm:$0x1]   ;;  %v16_v3 = vld [vmem:[#allocation1 + $0x2] sm:$0x1]  }
   0xa   :  { %11 = vrot.lane.b32.xlu0 %v10_v1, %s36_s0  ;;  %23 = vrot.lane.b32.xlu1 %v22_v2, %s37_s8  ;;  %v6_v4 = vld [vmem:[#allocation1] sm:$0x1]  }
   0xb   :  { %8 = vst.msk [vmem:[#allocation0] sm:$0x1] %vm7_vm0, %v6_v4  }
  0x12   :  { %17 = vrot.lane.b32.xlu0 %v16_v3, %s38_s9 }
  0x7c   :  { %v12_v5 = vpop.permute.xlu0 %11   ;;  %v24_v6 = vpop.permute.xlu1 %23  }
  0x7d   :  { %14 = vst.msk [vmem:[#allocation0] sm:$0x1] %vm13_vm1, %v12_v5  }
  0x84   :  { %v18_v7 = vpop.permute.xlu0 %17  }
  0x85   :  { %20 = vst.msk [vmem:[#allocation0] sm:$0x1] %vm19_vm2, %v18_v7  }
  0x86   :  { %26 = vst.msk [vmem:[#allocation0] sm:$0x1] %vm25_vm3, %v24_v6  }
  0x8d   :  { %v29_v8 = vld [vmem:[#allocation0] sm:$0x1] }
  0x8e   :  { %32 = vst [vmem:[%s56_s1] sm:$0x1] %v29_v8 }

// kernel: cnn_forward.3
= control target key start
LH: loop header
LB: loop body
LE: loop exit
PB: predicated region body
PF: predicated region fallthrough
CT: control target
= control target key end

     0   :  { %vm272_vm0 = vcmask 1041408   ;;  %vm117_vm1 = vsmask.f32 7424  ;;  %vm229_vm2 = vcmask 31744   ;;  %vm565_vm3 = vsmask.f32 4352  ;;  %s4884_s1 = inlined_call_operand.vmem [shape: bf16[4,4,128], index: 1, kind: input, shape index: {}]   ;;  %s4885_s0 = inlined_call_operand.vmem [shape: bf16[2,240,4], index: 0, kind: input, shape index: {}]   ;;  %s4886_s2 = inlined_call_operand.vmem [shape: f32[1,128], index: 2, kind: input, shape index: {}]   ;;  %s4887_s3 = inlined_call_operand.vmem [shape: f32[2,216,32], index: 3, kind: output, shape index: {}]  }
   0x1   :  { %v2799_v0 = vld [vmem:[%s4884_s1 + $0x6] sm:$0x3]  ;;  %v43_v1 = vld [vmem:[%s4884_s1] sm:$0x3]  ;;  %v3138_v2 = vld [vmem:[%s4885_s0 + $0x8] sm:$0xff]   ;;  %s3347_s13 = smov 96  }
   0x2   :  { %v900_v3 = vsel %vm272_vm0, %v2799_v0, 0  ;;  %v385_v4 = vsel %vm272_vm0, %v43_v1, 0  ;;  %v3008_v5 = vld [vmem:[%s4885_s0] sm:$0xff]  ;;  %v3009_v7 = vld [vmem:[%s4885_s0 + $0x8] sm:$0xff]  ;;  %v3297_v40 = vld [vmem:[%s4885_s0 + $0x14] sm:$0xff]   ;;  %s3348_s7 = smov 64  }
   0x3   :  { %v2703_v6 = vld [vmem:[%s4884_s1 + $0x2] sm:$0x3]  ;;  %909 = vmatpush.bf16.msra.mxu3 %v900_v3  ;;  %394 = vmatpush.bf16.msra.mxu1 %v385_v4  ;;  %v2784_v9 = vld [vmem:[%s4884_s1 + $0x4] sm:$0x3]  ;;  %v3166_v10 = vld [vmem:[%s4885_s0 + $0x4] sm:$0x8] }
   0x4   :  { %v274_v8 = vsel %vm272_vm0, %v2703_v6, 0  ;;  %v3295_v11 = vld [vmem:[%s4885_s0 + $0xc] sm:$0xff]   ;;  %v121_v12 = vshll.u32 %v3008_v5, 16  ;;  %v734_v13 = vsel %vm272_vm0, %v2784_v9, 0  ;;  %v119_v14 = vshrl.u32 %v3008_v5, 16  ;;  %v3299_v55 = vld [vmem:[%s4885_s0 + $0x1c] sm:$0xff]  }
   0x5   :  { %283 = vmatpush.bf16.msra.mxu0 %v274_v8  ;;  %v126_v15 = vshll.u32 %v3009_v7, 16  ;;  %v3293_v16 = vld [vmem:[%s4885_s0 + $0x4] sm:$0xf0]   ;;  %743 = vmatpush.bf16.msra.mxu2 %v734_v13  ;;  %v575_v18 = vshrl.u32 %v3295_v11, 16  ;;  %v578_v19 = vshll.u32 %v3295_v11, 16  ;;  %v3010_v41 = vld [vmem:[%s4885_s0 + $0x10] sm:$0xff] }
   0x6   :  { %v3167_v17 = vor.u32 %v3293_v16, %v3166_v10  ;;  %v2951_v20 = vld [vmem:[%s4884_s1 + $0x4] sm:$0x3]  ;;  %v2966_v21 = vld [vmem:[%s4884_s1 + $0x6] sm:$0x3]  ;;  %2800 = vmatmul.msk.bf16.vlgmr.msra.gmra.mxu3 %vm229_vm2, %v3138_v2  ;;  %2770 = vmatmul.msk.bf16.vlgmr.msra.gmra.mxu1 %vm229_vm2, %v3008_v5  ;;  %v123_v22 = vrot.slane %v121_v12, 1  ;;  %v584_v43 = vshrl.u32 %v3297_v40, 16 }
   0x7   :  { %v128_v23 = vrot.slane %v126_v15, 1  ;;  %v2075_v24 = vsel %vm272_vm0, %v2951_v20, 0  ;;  %v2240_v25 = vsel %vm272_vm0, %v2966_v21, 0  ;;  %v2842_v26 = vld [vmem:[%s4884_s1 + $0x2] sm:$0x3]  ;;  %v577_v29 = vrot.slane %v575_v18, 3 }
   0x8   :  { %v567_v27 = vshrl.u32 %v3167_v17, 16  ;;  %v570_v28 = vshll.u32 %v3167_v17, 16  ;;  %v580_v30 = vrot.slane %v578_v19, 4  ;;  %2249 = vmatpush.bf16.msrb.mxu3 %v2240_v25  ;;  %v1390_v31 = vld [vmem:[%s4884_s1] sm:$0x3]  ;;  %v124_v32 = vor.u32 %v123_v22, %v119_v14  ;;  %v3139_v47 = vld [vmem:[%s4885_s0 + $0x10] sm:$0xff]  }
   0x9   :  { %2084 = vmatpush.bf16.msrb.mxu2 %v2075_v24  ;;  %v1617_v33 = vsel %vm272_vm0, %v2842_v26, 0  ;;  %v1728_v34 = vsel %vm272_vm0, %v1390_v31, 0  ;;  %v587_v44 = vshll.u32 %v3297_v40, 16  ;;  %v130_v45 = vshrl.u32 %v3009_v7, 16  ;;  %v3011_v56 = vld [vmem:[%s4885_s0 + $0x18] sm:$0xff]  ;;  %v3301_v5 = vld [vmem:[%s4885_s0 + $0x24] sm:$0xff]  }
   0xa   :  { %v569_v35 = vrot.slane %v567_v27, 3  ;;  %v572_v36 = vrot.slane %v570_v28, 4  ;;  %v581_v37 = vor.u32 %v580_v30, %v577_v29  ;;  %1626 = vmatpush.bf16.msrb.mxu0 %v1617_v33  ;;  %1737 = vmatpush.bf16.msrb.mxu1 %v1728_v34  ;;  %v129_v38 = vsel %vm117_vm1, %v124_v32, %v128_v23  ;;  %v3140_v61 = vld [vmem:[%s4885_s0 + $0x18] sm:$0xff]   ;;  %v3012_v6 = vld [vmem:[%s4885_s0 + $0x20] sm:$0xff]  ;;  %v3303_v19 = vld [vmem:[%s4885_s0 + $0x2c] sm:$0xff]  }
   0xb   :  { %2756 = vmatmul.msk.bf16.vlgmr.msra.gmra.mxu0 %vm229_vm2, %v129_v38  ;;  %v134_v46 = vshll.u32 %v3010_v41, 16  ;;  %v586_v48 = vrot.slane %v584_v43, 3  ;;  %v589_v49 = vrot.slane %v587_v44, 4  ;;  %v132_v50 = vor.u32 %v130_v45, %v128_v23  ;;  %v3141_v11 = vld [vmem:[%s4885_s0 + $0x20] sm:$0xff]   ;;  %v3013_v20 = vld [vmem:[%s4885_s0 + $0x28] sm:$0xff]  ;;  %v3305_v33 = vld [vmem:[%s4885_s0 + $0x34] sm:$0xff]  }
   0xc   :  { %v573_v39 = vor.u32 %v572_v36, %v569_v35  ;;  %v593_v57 = vshrl.u32 %v3299_v55, 16  ;;  %v596_v58 = vshll.u32 %v3299_v55, 16  ;;  %v138_v59 = vshrl.u32 %v3010_v41, 16  ;;  %v3142_v25 = vld [vmem:[%s4885_s0 + $0x28] sm:$0xff]   ;;  %v3014_v34 = vld [vmem:[%s4885_s0 + $0x30] sm:$0xff] }
   0xd   :  { %v136_v51 = vrot.slane %v134_v46, 1  ;;  %v590_v52 = vor.u32 %v589_v49, %v586_v48  ;;  %v142_v60 = vshll.u32 %v3011_v56, 16  ;;  %v605_v8 = vshll.u32 %v3301_v5, 16  ;;  %v3015_v48 = vld [vmem:[%s4885_s0 + $0x38] sm:$0xff] }
   0xe   :  { %v582_v42 = vsel %vm565_vm3, %v573_v39, %v581_v37  ;;  %v595_v62 = vrot.slane %v593_v57, 3  ;;  %v598_v63 = vrot.slane %v596_v58, 4  ;;  %v146_v9 = vshrl.u32 %v3011_v56, 16  ;;  %v3143_v39 = vld [vmem:[%s4885_s0 + $0x30] sm:$0xff]  }
   0xf   :  { %2785 = vmatmul.msk.bf16.vlgmr.msra.gmra.mxu2 %vm229_vm2, %v582_v42  ;;  %v137_v53 = vsel %vm117_vm1, %v132_v50, %v136_v51  ;;  %v591_v54 = vsel %vm565_vm3, %v581_v37, %v590_v52  ;;  %v140_v0 = vor.u32 %v138_v59, %v136_v51  ;;  %v144_v1 = vrot.slane %v142_v60, 1 }
  0x10   :  { %v599_v2 = vor.u32 %v598_v63, %v595_v62  ;;  %v150_v10 = vshll.u32 %v3012_v6, 16  ;;  %v607_v13 = vrot.slane %v605_v8, 4  ;;  %v611_v21 = vshrl.u32 %v3303_v19, 16  ;;  %v3016_v62 = vld [vmem:[%s4885_s0 + $0x40] sm:$0xff] }
  0x11   :  { %v145_v3 = vsel %vm117_vm1, %v140_v0, %v144_v1  ;;  %v148_v14 = vor.u32 %v146_v9, %v144_v1  ;;  %v614_v22 = vshll.u32 %v3303_v19, 16  ;;  %v154_v23 = vshrl.u32 %v3012_v6, 16 }
  0x12   :  { %v600_v4 = vsel %vm565_vm3, %v590_v52, %v599_v2  ;;  %v152_v15 = vrot.slane %v150_v10, 1  ;;  %v158_v24 = vshll.u32 %v3013_v20, 16  ;;  %v613_v26 = vrot.slane %v611_v21, 3 }
  0x13   :  { %v616_v27 = vrot.slane %v614_v22, 4  ;;  %v620_v35 = vshrl.u32 %v3305_v33, 16  ;;  %v623_v36 = vshll.u32 %v3305_v33, 16  ;;  %v162_v37 = vshrl.u32 %v3013_v20, 16 }
  0x14   :  { %v153_v17 = vsel %vm117_vm1, %v148_v14, %v152_v15  ;;  %v156_v28 = vor.u32 %v154_v23, %v152_v15  ;;  %v160_v29 = vrot.slane %v158_v24, 1  ;;  %v166_v38 = vshll.u32 %v3014_v34, 16 }
  0x15   :  { %v617_v30 = vor.u32 %v616_v27, %v613_v26  ;;  %v622_v40 = vrot.slane %v620_v35, 3  ;;  %v170_v51 = vshrl.u32 %v3014_v34, 16  ;;  %v174_v52 = vshll.u32 %v3015_v48, 16 }
  0x16   :  { %2801 = vmatmul.msk.bf16.gmra.mxu3 %vm229_vm2, %v3139_v47  ;;  %2771 = vmatmul.msk.bf16.gmra.mxu1 %vm229_vm2, %v3009_v7  ;;  %v602_v7 = vshrl.u32 %v3301_v5, 16  ;;  %v161_v31 = vsel %vm117_vm1, %v156_v28, %v160_v29  ;;  %v164_v42 = vor.u32 %v162_v37, %v160_v29  ;;  %v168_v43 = vrot.slane %v166_v38, 1  ;;  %v3307_v47 = vld [vmem:[%s4885_s0 + $0x3c] sm:$0xff]   ;;  %v3313_v29 = vld [vmem:[%s4885_s0 + $0x54] sm:$0xff]  }
  0x17   :  { %v629_v49 = vshrl.u32 %v3307_v47, 16  ;;  %v632_v50 = vshll.u32 %v3307_v47, 16  ;;  %v176_v57 = vrot.slane %v174_v52, 1  ;;  %v178_v1 = vshrl.u32 %v3015_v48, 16 }
  0x18   :  { %v604_v12 = vrot.slane %v602_v7, 3  ;;  %v169_v45 = vsel %vm117_vm1, %v164_v42, %v168_v43  ;;  %v186_v15 = vshrl.u32 %v3016_v62, 16  ;;  %v659_v33 = vshll.u32 %v3313_v29, 16  ;;  %v3147_v42 = vld [vmem:[%s4885_s0 + $0x50] sm:$0xff]  }
  0x19   :  { %v634_v55 = vrot.slane %v632_v50, 4  ;;  %vm1334_vm4 = vcmask 261120  }
  0x1a   :  { %v608_v16 = vor.u32 %v607_v13, %v604_v12  ;;  %v3017_v12 = vld [vmem:[%s4885_s0 + $0x48] sm:$0xff] }
  0x1b   :  { %2757 = vmatmul.msk.bf16.gmra.mxu0 %vm229_vm2, %v137_v53  ;;  %v3144_v53 = vld [vmem:[%s4885_s0 + $0x38] sm:$0xff]   ;;  %v194_v35 = vshrl.u32 %v3017_v12, 16 }
  0x1c   :  { %v609_v18 = vsel %vm565_vm3, %v599_v2, %v608_v16  ;;  %v618_v32 = vsel %vm565_vm3, %v608_v16, %v617_v30  ;;  %v182_v2 = vshll.u32 %v3016_v62, 16  ;;  %v190_v16 = vshll.u32 %v3017_v12, 16 }
  0x1e   :  { %v184_v7 = vrot.slane %v182_v2, 1  ;;  %v192_v22 = vrot.slane %v190_v16, 1 }
  0x1f   :  { %2786 = vmatmul.msk.bf16.gmra.mxu2 %vm229_vm2, %v591_v54  ;;  %v631_v54 = vrot.slane %v629_v49, 3 }
  0x20   :  { %v188_v21 = vor.u32 %v186_v15, %v184_v7 }
  0x21   :  { %v635_v58 = vor.u32 %v634_v55, %v631_v54 }
  0x26   :  { %2802 = vmatmul.msk.bf16.gmra.mxu3 %vm229_vm2, %v3140_v61  ;;  %2772 = vmatmul.msk.bf16.gmra.mxu1 %vm229_vm2, %v3010_v41  ;;  %v625_v41 = vrot.slane %v623_v36, 4  ;;  %v3309_v61 = vld [vmem:[%s4885_s0 + $0x44] sm:$0xff]  }
  0x27   :  { %v638_v63 = vshrl.u32 %v3309_v61, 16  ;;  %v641_v0 = vshll.u32 %v3309_v61, 16  ;;  %v3577_v61 = vld [vmem:[%s4885_s0 + $0x58] sm:$0xff] }
  0x28   :  { %v626_v44 = vor.u32 %v625_v41, %v622_v40  ;;  %v3554_v40 = vld [vmem:[%s4886_s2] ss:$0 sm:$0xff] }
  0x29   :  { %v643_v5 = vrot.slane %v641_v0, 4 }
  0x2a   :  { %v627_v46 = vsel %vm565_vm3, %v617_v30, %v626_v44  ;;  %v636_v60 = vsel %vm565_vm3, %v626_v44, %v635_v58  ;;  %v3018_v30 = vld [vmem:[%s4885_s0 + $0x50] sm:$0xff]  ;;  %v661_v44 = vrot.slane %v659_v33, 4 }
  0x2b   :  { %2758 = vmatmul.msk.bf16.gmra.mxu0 %vm229_vm2, %v145_v3  ;;  %v3145_v3 = vld [vmem:[%s4885_s0 + $0x40] sm:$0xff]   ;;  %v198_v36 = vshll.u32 %v3018_v30, 16 }
  0x2d   :  { %v200_v47 = vrot.slane %v198_v36, 1 }
  0x2f   :  { %2787 = vmatmul.msk.bf16.gmra.mxu2 %vm229_vm2, %v600_v4  ;;  %v640_v4 = vrot.slane %v638_v63, 3 }
  0x31   :  { %v644_v8 = vor.u32 %v643_v5, %v640_v4  ;;  %v202_v4 = vshrl.u32 %v3018_v30, 16  ;;  %v206_v5 = vshll.u32 %v3577_v61, 16 }
  0x33   :  { %v645_v10 = vsel %vm565_vm3, %v635_v58, %v644_v8  ;;  %v208_v15 = vrot.slane %v206_v5, 1 }
  0x36   :  { %2803 = vmatmul.msk.bf16.gmra.mxu3 %vm229_vm2, %v3141_v11  ;;  %2773 = vmatmul.msk.bf16.gmra.mxu1 %vm229_vm2, %v3011_v56  ;;  %v172_v56 = vor.u32 %v170_v51, %v168_v43  ;;  %v3311_v11 = vld [vmem:[%s4885_s0 + $0x4c] sm:$0xff]  }
  0x37   :  { %v647_v13 = vshrl.u32 %v3311_v11, 16  ;;  %v650_v14 = vshll.u32 %v3311_v11, 16 }
  0x38   :  { %v177_v59 = vsel %vm117_vm1, %v172_v56, %v176_v57 }
  0x39   :  { %v649_v19 = vrot.slane %v647_v13, 3 }
  0x3b   :  { %2759 = vmatmul.msk.bf16.gmra.mxu0 %vm229_vm2, %v153_v17 }
  0x3f   :  { %2788 = vmatmul.msk.bf16.gmra.mxu2 %vm229_vm2, %v609_v18  ;;  %v3146_v18 = vld [vmem:[%s4885_s0 + $0x48] sm:$0xff]  }
  0x46   :  { %2804 = vmatmul.msk.bf16.gmra.mxu3 %vm229_vm2, %v3142_v25  ;;  %2774 = vmatmul.msk.bf16.gmra.mxu1 %vm229_vm2, %v3012_v6  ;;  %v180_v6 = vor.u32 %v178_v1, %v176_v57  ;;  %v193_v25 = vsel %vm117_vm1, %v188_v21, %v192_v22 }
  0x48   :  { %v185_v9 = vsel %vm117_vm1, %v180_v6, %v184_v7 }
  0x4b   :  { %2760 = vmatmul.msk.bf16.gmra.mxu0 %vm229_vm2, %v161_v31 }
  0x4f   :  { %2789 = vmatmul.msk.bf16.gmra.mxu2 %vm229_vm2, %v618_v32  ;;  %v656_v32 = vshrl.u32 %v3313_v29, 16 }
  0x51   :  { %v658_v43 = vrot.slane %v656_v32, 3  ;;  %v210_v32 = vshrl.u32 %v3577_v61, 16 }
  0x53   :  { %v662_v49 = vor.u32 %v661_v44, %v658_v43  ;;  %v3149_v43 = vld [vmem:[%s4885_s0 + $0x60] sm:$0xff]   ;;  %v212_v44 = vor.u32 %v210_v32, %v208_v15 }
  0x56   :  { %2805 = vmatmul.msk.bf16.gmra.mxu3 %vm229_vm2, %v3143_v39  ;;  %2775 = vmatmul.msk.bf16.gmra.mxu1 %vm229_vm2, %v3013_v20  ;;  %v652_v20 = vrot.slane %v650_v14, 4  ;;  %v204_v14 = vor.u32 %v202_v4, %v200_v47 }
  0x58   :  { %v653_v23 = vor.u32 %v652_v20, %v649_v19  ;;  %v209_v21 = vsel %vm117_vm1, %v204_v14, %v208_v15 }
  0x5a   :  { %v654_v27 = vsel %vm565_vm3, %v644_v8, %v653_v23  ;;  %v663_v57 = vsel %vm565_vm3, %v653_v23, %v662_v49 }
  0x5b   :  { %2761 = vmatmul.msk.bf16.gmra.mxu0 %vm229_vm2, %v169_v45 }
  0x5f   :  { %2790 = vmatmul.msk.bf16.gmra.mxu2 %vm229_vm2, %v627_v46  ;;  %v196_v46 = vor.u32 %v194_v35, %v192_v22 }
  0x66   :  { %2806 = vmatmul.msk.bf16.gmra.mxu3 %vm229_vm2, %v3144_v53  ;;  %2776 = vmatmul.msk.bf16.gmra.mxu1 %vm229_vm2, %v3014_v34  ;;  %v201_v53 = vsel %vm117_vm1, %v196_v46, %v200_v47 }
  0x6b   :  { %2762 = vmatmul.msk.bf16.gmra.mxu0 %vm229_vm2, %v177_v59  ;;  %v3315_v59 = vld [vmem:[%s4885_s0 + $0x5c] sm:$0xff]  }
  0x6c   :  { %v665_v0 = vshrl.u32 %v3315_v59, 16  ;;  %v668_v1 = vshll.u32 %v3315_v59, 16 }
  0x6e   :  { %v667_v11 = vrot.slane %v665_v0, 3 }
  0x6f   :  { %2791 = vmatmul.msk.bf16.gmra.mxu2 %vm229_vm2, %v636_v60 }
  0x76   :  { %2807 = vmatmul.msk.bf16.gmra.mxu3 %vm229_vm2, %v3145_v3  ;;  %2777 = vmatmul.msk.bf16.gmra.mxu1 %vm229_vm2, %v3015_v48 }
  0x7b   :  { %2763 = vmatmul.msk.bf16.gmra.mxu0 %vm229_vm2, %v185_v9 }
  0x7f   :  { %2792 = vmatmul.msk.bf16.gmra.mxu2 %vm229_vm2, %v645_v10  ;;  %v3148_v10 = vld [vmem:[%s4885_s0 + $0x58] sm:$0xff]  }
  0x83   :  { %v396_v17 = vpop.f32.mrf.mxu1 }
  0x86   :  { %2808 = vmatmul.msk.bf16.gmra.mxu3 %vm229_vm2, %v3146_v18  ;;  %2778 = vmatmul.msk.bf16.gmra.mxu1 %vm229_vm2, %v3016_v62 }
  0x88   :  { %v285_v24 = vpop.f32.mrf.mxu0 }
  0x89   :  { %v911_v26 = vpop.f32.mrf.mxu3  ;;  %v397_v31 = vadd.f32 %v396_v17, %v285_v24 }
  0x8b   :  { %2764 = vmatmul.msk.bf16.gmra.mxu0 %vm229_vm2, %v193_v25  ;;  %v398_v28 = vpop.f32.mrf.mxu1 }
  0x8f   :  { %2793 = vmatmul.msk.bf16.gmra.mxu2 %vm229_vm2, %v654_v27  ;;  %v3606_v27 = vld [vmem:[%s4885_s0 + $0x60] sm:$0xff] }
  0x90   :  { %v287_v34 = vpop.f32.mrf.mxu0  ;;  %v214_v33 = vshll.u32 %v3606_v27, 16 }
  0x91   :  { %v913_v38 = vpop.f32.mrf.mxu3  ;;  %v399_v50 = vadd.f32 %v398_v28, %v287_v34  ;;  %v3316_v28 = vld [vmem:[%s4885_s0 + $0x64] sm:$0xff]  }
  0x92   :  { %v745_v37 = vpop.f32.mrf.mxu2  ;;  %v674_v34 = vshrl.u32 %v3316_v28, 16  ;;  %v677_v35 = vshll.u32 %v3316_v28, 16 }
  0x93   :  { %v814_v39 = vadd.f32 %v745_v37, %v397_v31  ;;  %v401_v41 = vpop.f32.mrf.mxu1 }
  0x94   :  { %v676_v46 = vrot.slane %v674_v34, 3  ;;  %v679_v47 = vrot.slane %v677_v35, 4 }
  0x95   :  { %v980_v45 = vadd.f32 %v911_v26, %v814_v39 }
  0x96   :  { %2809 = vmatmul.msk.bf16.gmra.mxu3 %vm229_vm2, %v3147_v42  ;;  %2779 = vmatmul.msk.bf16.gmra.mxu1 %vm229_vm2, %v3017_v12  ;;  %v670_v12 = vrot.slane %v668_v1, 4 }
  0x97   :  { %v3562_v48 = vadd.f32 %v3554_v40, %v980_v45  ;;  %v216_v45 = vrot.slane %v214_v33, 1 }
  0x98   :  { %v290_v52 = vpop.f32.mrf.mxu0  ;;  %v671_v17 = vor.u32 %v670_v12, %v667_v11 }
  0x99   :  { %v1037_v51 = vmax.f32 %v3562_v48, 0.0  ;;  %v916_v55 = vpop.f32.mrf.mxu3  ;;  %v402_v62 = vadd.f32 %v401_v41, %v290_v52  ;;  %v492_v52 = vld [vmem:[%s4885_s0 + $0x70] sm:$0xf] }
  0x9a   :  { %v747_v54 = vpop.f32.mrf.mxu2  ;;  %v672_v25 = vsel %vm565_vm3, %v662_v49, %v671_v17  ;;  %v3643_v59 = vunpack.c.l.b16 %v492_v52 }
  0x9b   :  { %v815_v56 = vadd.f32 %v747_v54, %v399_v50  ;;  %1091 = vrot.lane.b32.xlu0 %v1037_v51, %s3347_s13  ;;  %2765 = vmatmul.msk.bf16.gmra.mxu0 %vm229_vm2, %v201_v53  ;;  %v403_v58 = vpop.f32.mrf.mxu1  ;;  %v3150_v50 = vld [vmem:[%s4885_s0 + $0x68] sm:$0xff]  }
  0x9c   :  { %v42_v53 = vld [vmem:[%s4885_s0 + $0x68] sm:$0xf]  ;;  %v44_v54 = vld [vmem:[%s4885_s0 + $0x6c] sm:$0x1] }
  0x9d   :  { %v981_v60 = vadd.f32 %v913_v38, %v815_v56  ;;  %v217_v56 = vsel %vm117_vm1, %v212_v44, %v216_v45  ;;  %v3646_v1 = vunpack.c.l.b16 %v42_v53 }
  0x9f   :  { %2794 = vmatmul.msk.bf16.gmra.mxu2 %vm229_vm2, %v663_v57  ;;  %v3581_v63 = vadd.f32 %v3554_v40, %v981_v60  ;;  %v680_v57 = vor.u32 %v679_v47, %v676_v46 }
  0xa0   :  { %v292_v3 = vpop.f32.mrf.mxu0 }
  0xa1   :  { %v1038_v2 = vmax.f32 %v3581_v63, 0.0  ;;  %v918_v7 = vpop.f32.mrf.mxu3  ;;  %v404_v18 = vadd.f32 %v403_v58, %v292_v3  ;;  %v3085_v58 = vunpack.c.h.b16 %v3150_v50  ;;  %v102_v3 = vunpack.c.l.b16 %v44_v54 }
  0xa2   :  { %v750_v6 = vpop.f32.mrf.mxu2  ;;  %v856_v54 = vpack.c.b16 %v3643_v59, %v3643_v59 }
  0xa3   :  { %v816_v8 = vadd.f32 %v750_v6, %v402_v62  ;;  %1093 = vrot.lane.b32.xlu0 %v1038_v2, %s3347_s13  ;;  %v406_v9 = vpop.f32.mrf.mxu1 }
  0xa5   :  { %v982_v13 = vadd.f32 %v916_v55, %v816_v8  ;;  %v564_v8 = vpack.c.b16 %v3643_v59, %v3085_v58  ;;  %v3021_v59 = vld [vmem:[%s4885_s0 + $0x78] sm:$0xff] }
  0xa6   :  { %2810 = vmatmul.msk.bf16.gmra.mxu3 %vm229_vm2, %v3148_v10  ;;  %2780 = vmatmul.msk.bf16.gmra.mxu1 %vm229_vm2, %v3018_v30  ;;  %v116_v10 = vpack.c.b16 %v102_v3, %v3646_v1 }
  0xa7   :  { %v3594_v16 = vadd.f32 %v3554_v40, %v982_v13  ;;  %v683_v13 = vshrl.u32 %v564_v8, 16  ;;  %v686_v14 = vshll.u32 %v564_v8, 16 }
  0xa8   :  { %v295_v20 = vpop.f32.mrf.mxu0  ;;  %v226_v58 = vshrl.u32 %v116_v10, 16 }
  0xa9   :  { %v1039_v19 = vmax.f32 %v3594_v16, 0.0  ;;  %v921_v23 = vpop.f32.mrf.mxu3  ;;  %v407_v30 = vadd.f32 %v406_v9, %v295_v20  ;;  %v218_v20 = vshrl.u32 %v3606_v27, 16 }
  0xaa   :  { %v752_v22 = vpop.f32.mrf.mxu2 }
  0xab   :  { %v817_v24 = vadd.f32 %v752_v22, %v404_v18  ;;  %1095 = vrot.lane.b32.xlu1 %v1039_v19, %s3347_s13  ;;  %2766 = vmatmul.msk.bf16.gmra.mxu0 %vm229_vm2, %v209_v21  ;;  %v408_v26 = vpop.f32.mrf.mxu1 }
  0xad   :  { %v983_v29 = vadd.f32 %v918_v7, %v817_v24 }
  0xaf   :  { %2795 = vmatmul.msk.bf16.gmra.mxu2 %vm229_vm2, %v672_v25  ;;  %v3613_v31 = vadd.f32 %v3554_v40, %v983_v29  ;;  %v685_v25 = vrot.slane %v683_v13, 3  ;;  %v220_v29 = vor.u32 %v218_v20, %v216_v45  ;;  %v1466_v20 = vshll.u32 %v3021_v59, 16 }
  0xb0   :  { %v297_v37 = vpop.f32.mrf.mxu0 }
  0xb1   :  { %v1040_v36 = vmax.f32 %v3613_v31, 0.0  ;;  %v923_v39 = vpop.f32.mrf.mxu3  ;;  %v409_v60 = vadd.f32 %v408_v26, %v297_v37  ;;  %v688_v26 = vrot.slane %v686_v14, 4 }
  0xb2   :  { %v755_v38 = vpop.f32.mrf.mxu2 }
  0xb3   :  { %v818_v41 = vadd.f32 %v755_v38, %v407_v30  ;;  %1097 = vrot.lane.b32.xlu1 %v1040_v36, %s3347_s13  ;;  %v411_v42 = vpop.f32.mrf.mxu1  ;;  %v689_v33 = vor.u32 %v688_v26, %v685_v25 }
  0xb5   :  { %v984_v49 = vadd.f32 %v921_v23, %v818_v41 }
  0xb6   :  { %2811 = vmatmul.msk.bf16.gmra.mxu3 %vm229_vm2, %v3149_v43  ;;  %2781 = vmatmul.msk.bf16.gmra.mxu1 %vm229_vm2, %v3577_v61  ;;  %v681_v61 = vsel %vm565_vm3, %v671_v17, %v680_v57  ;;  %v222_v17 = vshll.u32 %v116_v10, 16 }
  0xb7   :  { %v3640_v55 = vadd.f32 %v3554_v40, %v984_v49 }
  0xb8   :  { %v300_v0 = vpop.f32.mrf.mxu0  ;;  %v224_v30 = vrot.slane %v222_v17, 1 }
  0xb9   :  { %v1041_v62 = vmax.f32 %v3640_v55, 0.0  ;;  %v926_v5 = vpop.f32.mrf.mxu3  ;;  %v412_v11 = vadd.f32 %v411_v42, %v300_v0 }
  0xba   :  { %v757_v4 = vpop.f32.mrf.mxu2  ;;  %v225_v38 = vsel %vm117_vm1, %v220_v29, %v224_v30  ;;  %v228_v3 = vor.u32 %v226_v58, %v224_v30  ;;  %v1464_v29 = vshrl.u32 %v3021_v59, 16  ;;  %v1468_v30 = vrot.slane %v1466_v20, 1 }
  0xbb   :  { %v819_v6 = vadd.f32 %v757_v4, %v409_v60  ;;  %1099 = vrot.lane.b32.xlu2 %v1041_v62, %s3347_s13  ;;  %2767 = vmatmul.msk.bf16.gmra.mxu0 %vm229_vm2, %v217_v56  ;;  %v413_v7 = vpop.f32.mrf.mxu1  ;;  %v354_v56 = vpack.c.b16 %v3646_v1, %v3646_v1  ;;  %v3230_v1 = vld [vmem:[%s4885_s0 + $0x7c] sm:$0x8] }
  0xbd   :  { %v985_v9 = vadd.f32 %v923_v39, %v819_v6 }
  0xbf   :  { %2796 = vmatmul.msk.bf16.gmra.mxu2 %vm229_vm2, %v681_v61  ;;  %v3657_v12 = vadd.f32 %v3554_v40, %v985_v9  ;;  %v3318_v61 = vld [vmem:[%s4885_s0 + $0x7c] sm:$0xf0]  }
  0xc0   :  { %v302_v18 = vpop.f32.mrf.mxu0  ;;  %v3231_v13 = vor.u32 %v3318_v61, %v3230_v1  ;;  %v3322_v61 = vld [vmem:[%s4885_s0 + $0x8c] sm:$0xff]  }
  0xc1   :  { %v1042_v15 = vmax.f32 %v3657_v12, 0.0  ;;  %v928_v22 = vpop.f32.mrf.mxu3  ;;  %v414_v34 = vadd.f32 %v413_v7, %v302_v18  ;;  %v3714_v18 = vld [vmem:[%s4885_s0 + $0x80] sm:$0xff] }
  0xc2   :  { %v760_v21 = vpop.f32.mrf.mxu2 }
  0xc3   :  { %v820_v23 = vadd.f32 %v760_v21, %v412_v11  ;;  %1101 = vrot.lane.b32.xlu2 %v1042_v15, %s3347_s13  ;;  %v416_v24 = vpop.f32.mrf.mxu1  ;;  %v3320_v11 = vld [vmem:[%s4885_s0 + $0x84] sm:$0xff]  }
  0xc4   :  { %v1919_v25 = vshll.u32 %v3320_v11, 16 }
  0xc5   :  { %v986_v28 = vadd.f32 %v926_v5, %v820_v23  ;;  %v1911_v23 = vshll.u32 %v3231_v13, 16 }
  0xc6   :  { %2812 = vmatmul.msk.bf16.gmra.mxu3 %vm229_vm2, %v3150_v50  ;;  %2782 = vmatmul.msk.bf16.gmra.mxu1 %vm229_vm2, %v3606_v27  ;;  %v690_v27 = vsel %vm565_vm3, %v680_v57, %v689_v33 }
  0xc7   :  { %v3668_v32 = vadd.f32 %v3554_v40, %v986_v28 }
  0xc8   :  { %v305_v37 = vpop.f32.mrf.mxu0 }
  0xc9   :  { %v1043_v35 = vmax.f32 %v3668_v32, 0.0  ;;  %v931_v41 = vpop.f32.mrf.mxu3  ;;  %v417_v45 = vadd.f32 %v416_v24, %v305_v37  ;;  %v1916_v24 = vshrl.u32 %v3320_v11, 16  ;;  %v1925_v11 = vshrl.u32 %v3322_v61, 16 }
  0xca   :  { %v762_v39 = vpop.f32.mrf.mxu2 }
  0xcb   :  { %v821_v42 = vadd.f32 %v762_v39, %v414_v34  ;;  %1103 = vrot.lane.b32.xlu0 %v1043_v35, %s3347_s13  ;;  %2768 = vmatmul.msk.bf16.gmra.mxu0 %vm229_vm2, %v225_v38  ;;  %v418_v43 = vpop.f32.mrf.mxu1  ;;  %v1471_v34 = vshll.u32 %v3714_v18, 16 }
  0xcd   :  { %v987_v44 = vadd.f32 %v928_v22, %v821_v42  ;;  %v1908_v22 = vshrl.u32 %v3231_v13, 16  ;;  %v1928_v13 = vshll.u32 %v3322_v61, 16 }
  0xcf   :  { %2797 = vmatmul.msk.bf16.gmra.mxu2 %vm229_vm2, %v690_v27  ;;  %v3679_v46 = vadd.f32 %v3554_v40, %v987_v44  ;;  %v1910_v42 = vrot.slane %v1908_v22, 3  ;;  %v1913_v27 = vrot.slane %v1911_v23, 4  ;;  %v1921_v44 = vrot.slane %v1919_v25, 4 }
  0xd0   :  { %v307_v49 = vpop.f32.mrf.mxu0 }
  0xd1   :  { %v1044_v47 = vmax.f32 %v3679_v46, 0.0  ;;  %v933_v52 = vpop.f32.mrf.mxu3  ;;  %v419_v4 = vadd.f32 %v418_v43, %v307_v49  ;;  %v1918_v43 = vrot.slane %v1916_v24, 3  ;;  %v1469_v49 = vor.u32 %v1468_v30, %v1464_v29  ;;  %v3152_v29 = vld [vmem:[%s4885_s0 + $0x88] sm:$0xff]  }
  0xd2   :  { %v765_v50 = vpop.f32.mrf.mxu2  ;;  %v1927_v30 = vrot.slane %v1925_v11, 3 }
  0xd3   :  { %v822_v53 = vadd.f32 %v765_v50, %v417_v45  ;;  %1105 = vrot.lane.b32.xlu1 %v1044_v47, %s3347_s13  ;;  %v421_v57 = vpop.f32.mrf.mxu1  ;;  %v1473_v50 = vrot.slane %v1471_v34, 1  ;;  %v1930_v34 = vrot.slane %v1928_v13, 4 }
  0xd5   :  { %v988_v60 = vadd.f32 %v931_v41, %v822_v53  ;;  %v3151_v41 = vld [vmem:[%s4885_s0 + $0x80] sm:$0xff]   ;;  %v1914_v53 = vor.u32 %v1913_v27, %v1910_v42 }
  0xd6   :  { %2813 = vmatmul.msk.bf16.gmra.mxu3 %vm229_vm2, %v856_v54  ;;  %2783 = vmatmul.msk.bf16.gmra.mxu1 %vm229_vm2, %v354_v56  ;;  %v1922_v54 = vor.u32 %v1921_v44, %v1918_v43 }
  0xd7   :  { %v3692_v0 = vadd.f32 %v3554_v40, %v988_v60  ;;  %v1474_v60 = vsel %vm117_vm1, %v1469_v49, %v1473_v50 }
  0xd8   :  { %v310_v6 = vpop.f32.mrf.mxu0 }
  0xd9   :  { %v1045_v5 = vmax.f32 %v3692_v0, 0.0  ;;  %v936_v8 = vpop.f32.mrf.mxu3  ;;  %v422_v17 = vadd.f32 %v421_v57, %v310_v6  ;;  %v3157_v0 = vld [vmem:[%s4885_s0 + $0xb0] sm:$0xff]  }
  0xda   :  { %v767_v7 = vpop.f32.mrf.mxu2 }
  0xdb   :  { %v823_v9 = vadd.f32 %v767_v7, %v419_v4  ;;  %1107 = vrot.lane.b32.xlu2 %v1045_v5, %s3347_s13  ;;  %2769 = vmatmul.msk.bf16.gmra.mxu0 %vm229_vm2, %v228_v3  ;;  %v423_v10 = vpop.f32.mrf.mxu1 }
  0xdd   :  { %v989_v14 = vadd.f32 %v933_v52, %v823_v9 }
  0xdf   :  { %2798 = vmatmul.msk.bf16.gmra.mxu2 %vm229_vm2, %v689_v33  ;;  %v3718_v21 = vadd.f32 %v3554_v40, %v989_v14 }
  0xe0   :  { %v312_v28 = vpop.f32.mrf.mxu0 }
  0xe1   :  { %v1046_v26 = vmax.f32 %v3718_v21, 0.0  ;;  %v938_v38 = vpop.f32.mrf.mxu3  ;;  %v424_v56 = vadd.f32 %v423_v10, %v312_v28 }
  0xe2   :  { %v770_v37 = vpop.f32.mrf.mxu2 }
  0xe3   :  { %v824_v39 = vadd.f32 %v770_v37, %v422_v17  ;;  %1109 = vrot.lane.b32.xlu0 %v1046_v26, %s3347_s13  ;;  %v426_v33 = vpop.f32.mrf.mxu1  ;;  %v1475_v17 = vshrl.u32 %v3714_v18, 16 }
  0xe5   :  { %v990_v45 = vadd.f32 %v936_v8, %v824_v39  ;;  %v3023_v8 = vld [vmem:[%s4885_s0 + $0x88] sm:$0xff] }
  0xe6   :  { %2967 = vmatmul.msk.bf16.vlgmr.msrb.gmra.mxu3 %vm229_vm2, %v3151_v41  ;;  %2909 = vmatmul.msk.bf16.vlgmr.msrb.gmra.mxu1 %vm229_vm2, %v3021_v59  ;;  %v1923_v59 = vsel %vm565_vm3, %v1914_v53, %v1922_v54  ;;  %v1479_v22 = vshll.u32 %v3023_v8, 16  ;;  %v1931_v41 = vor.u32 %v1930_v34, %v1927_v30  ;;  %v1483_v61 = vshrl.u32 %v3023_v8, 16 }
  0xe7   :  { %v3731_v52 = vadd.f32 %v3554_v40, %v990_v45 }
  0xe8   :  { %v315_v58 = vpop.f32.mrf.mxu0  ;;  %v1481_v39 = vrot.slane %v1479_v22, 1 }
  0xe9   :  { %v1047_v57 = vmax.f32 %v3731_v52, 0.0  ;;  %v941_v4 = vpop.f32.mrf.mxu3  ;;  %v427_v9 = vadd.f32 %v426_v33, %v315_v58 }
  0xea   :  { %v772_v3 = vpop.f32.mrf.mxu2 }
  0xeb   :  { %v825_v6 = vadd.f32 %v772_v3, %v424_v56  ;;  %1111 = vrot.lane.b32.xlu1 %v1047_v57, %s3347_s13  ;;  %2895 = vmatmul.msk.bf16.vlgmr.msrb.gmra.mxu0 %vm229_vm2, %v1474_v60  ;;  %v428_v1 = vpop.f32.mrf.mxu1  ;;  %v3324_v56 = vld [vmem:[%s4885_s0 + $0x94] sm:$0xff]  }
  0xec   :  { %v3777_v60 = vld [vmem:[%s4885_s0 + $0x90] sm:$0xff] }
  0xed   :  { %v991_v7 = vadd.f32 %v938_v38, %v825_v6  ;;  %v1477_v38 = vor.u32 %v1475_v17, %v1473_v50  ;;  %v1934_v6 = vshrl.u32 %v3324_v56, 16  ;;  %v3153_v17 = vld [vmem:[%s4885_s0 + $0x90] sm:$0xff]  }
  0xef   :  { %2952 = vmatmul.msk.bf16.vlgmr.msrb.gmra.mxu2 %vm229_vm2, %v1923_v59  ;;  %v3748_v10 = vadd.f32 %v3554_v40, %v991_v7  ;;  %v1482_v44 = vsel %vm117_vm1, %v1477_v38, %v1481_v39  ;;  %v1937_v59 = vshll.u32 %v3324_v56, 16  ;;  %v1487_v7 = vshll.u32 %v3777_v60, 16 }
  0xf0   :  { %v317_v20 = vpop.f32.mrf.mxu0  ;;  %v1936_v22 = vrot.slane %v1934_v6, 3 }
  0xf1   :  { %v1048_v14 = vmax.f32 %v3748_v10, 0.0  ;;  %v943_v24 = vpop.f32.mrf.mxu3  ;;  %v429_v42 = vadd.f32 %v428_v1, %v317_v20 }
  0xf2   :  { %v775_v23 = vpop.f32.mrf.mxu2 }
  0xf3   :  { %v826_v25 = vadd.f32 %v775_v23, %v427_v9  ;;  %1113 = vrot.lane.b32.xlu2 %v1048_v14, %s3347_s13  ;;  %v431_v28 = vpop.f32.mrf.mxu1  ;;  %v1939_v23 = vrot.slane %v1937_v59, 4  ;;  %v1491_v59 = vshrl.u32 %v3777_v60, 16 }
  0xf5   :  { %v992_v37 = vadd.f32 %v941_v4, %v826_v25  ;;  %v1485_v25 = vor.u32 %v1483_v61, %v1481_v39  ;;  %v1940_v30 = vor.u32 %v1939_v23, %v1936_v22 }
  0xf6   :  { %2968 = vmatmul.msk.bf16.gmra.mxu3 %vm229_vm2, %v3152_v29  ;;  %2910 = vmatmul.msk.bf16.gmra.mxu1 %vm229_vm2, %v3714_v18  ;;  %v1932_v18 = vsel %vm565_vm3, %v1922_v54, %v1931_v41 }
  0xf7   :  { %v3762_v33 = vadd.f32 %v3554_v40, %v992_v37 }
  0xf8   :  { %v320_v43 = vpop.f32.mrf.mxu0 }
  0xf9   :  { %v1049_v27 = vmax.f32 %v3762_v33, 0.0  ;;  %v946_v49 = vpop.f32.mrf.mxu3  ;;  %v432_v3 = vadd.f32 %v431_v28, %v320_v43  ;;  %v1489_v28 = vrot.slane %v1487_v7, 1 }
  0xfa   :  { %v777_v45 = vpop.f32.mrf.mxu2 }
  0xfb   :  { %v827_v53 = vadd.f32 %v777_v45, %v429_v42  ;;  %1115 = vrot.lane.b32.xlu0 %v1049_v27, %s3347_s13  ;;  %2896 = vmatmul.msk.bf16.gmra.mxu0 %vm229_vm2, %v1482_v44  ;;  %v433_v50 = vpop.f32.mrf.mxu1  ;;  %v1490_v42 = vsel %vm117_vm1, %v1485_v25, %v1489_v28  ;;  %v1493_v22 = vor.u32 %v1491_v59, %v1489_v28 }
  0xfd   :  { %v993_v58 = vadd.f32 %v943_v24, %v827_v53 }
  0xff   :  { %2953 = vmatmul.msk.bf16.gmra.mxu2 %vm229_vm2, %v1932_v18  ;;  %v3781_v4 = vadd.f32 %v3554_v40, %v993_v58  ;;  %v3809_v18 = vld [vmem:[%s4885_s0 + $0x98] sm:$0xff] }
 0x100   :  { %v322_v1 = vpop.f32.mrf.mxu0  ;;  %v1499_v16 = vshrl.u32 %v3809_v18, 16 }
 0x101   :  { %v1050_v54 = vmax.f32 %v3781_v4, 0.0  ;;  %v948_v11 = vpop.f32.mrf.mxu3  ;;  %v434_v34 = vadd.f32 %v433_v50, %v322_v1  ;;  %v1495_v1 = vshll.u32 %v3809_v18, 16 }
 0x102   :  { %v780_v9 = vpop.f32.mrf.mxu2 }
 0x103   :  { %v828_v13 = vadd.f32 %v780_v9, %v432_v3  ;;  %1117 = vrot.lane.b32.xlu1 %v1050_v54, %s3347_s13  ;;  %v436_v20 = vpop.f32.mrf.mxu1  ;;  %v1497_v23 = vrot.slane %v1495_v1, 1 }
 0x105   :  { %v994_v24 = vadd.f32 %v946_v49, %v828_v13  ;;  %v3326_v49 = vld [vmem:[%s4885_s0 + $0x9c] sm:$0xff]   ;;  %v1498_v63 = vsel %vm117_vm1, %v1493_v22, %v1497_v23 }
 0x106   :  { %2969 = vmatmul.msk.bf16.gmra.mxu3 %vm229_vm2, %v3153_v17  ;;  %2911 = vmatmul.msk.bf16.gmra.mxu1 %vm229_vm2, %v3023_v8  ;;  %v1941_v8 = vsel %vm565_vm3, %v1931_v41, %v1940_v30  ;;  %v1943_v41 = vshrl.u32 %v3326_v49, 16  ;;  %v1946_v3 = vshll.u32 %v3326_v49, 16  ;;  %v3328_v49 = vld [vmem:[%s4885_s0 + $0xa4] sm:$0xff]  }
 0x107   :  { %v3794_v29 = vadd.f32 %v3554_v40, %v994_v24 }
 0x108   :  { %v325_v38 = vpop.f32.mrf.mxu0  ;;  %v1945_v13 = vrot.slane %v1943_v41, 3 }
 0x109   :  { %v1051_v37 = vmax.f32 %v3794_v29, 0.0  ;;  %v951_v44 = vpop.f32.mrf.mxu3  ;;  %v437_v58 = vadd.f32 %v436_v20, %v325_v38  ;;  %v1948_v20 = vrot.slane %v1946_v3, 4 }
 0x10a   :  { %v782_v43 = vpop.f32.mrf.mxu2 }
 0x10b   :  { %v829_v45 = vadd.f32 %v782_v43, %v434_v34  ;;  %1119 = vrot.lane.b32.xlu2 %v1051_v37, %s3347_s13  ;;  %2897 = vmatmul.msk.bf16.gmra.mxu0 %vm229_vm2, %v1490_v42  ;;  %v438_v39 = vpop.f32.mrf.mxu1  ;;  %v1949_v28 = vor.u32 %v1948_v20, %v1945_v13  ;;  %v3155_v13 = vld [vmem:[%s4885_s0 + $0xa0] sm:$0xff]  }
 0x10d   :  { %v1092_v53 = vpop.permute.xlu0 %1091  ;;  %v995_v50 = vadd.f32 %v948_v11, %v829_v45  ;;  %v3154_v11 = vld [vmem:[%s4885_s0 + $0x98] sm:$0xff]  }
 0x10e   :  { %v3813_v56 = vmax.f32 %v1037_v51, %v1092_v53 }
 0x10f   :  { %2954 = vmatmul.msk.bf16.gmra.mxu2 %vm229_vm2, %v1941_v8  ;;  %v3821_v48 = vadd.f32 %v3554_v40, %v995_v50 }
 0x110   :  { %1226 = vrot.lane.b32.xlu0 %v3813_v56, %s3348_s7  ;;  %v327_v6 = vpop.f32.mrf.mxu0 }
 0x111   :  { %v953_v7 = vpop.f32.mrf.mxu3  ;;  %v1052_v34 = vmax.f32 %v3821_v48, 0.0  ;;  %v439_v38 = vadd.f32 %v438_v39, %v327_v6  ;;  %v3851_v39 = vld [vmem:[%s4885_s0 + $0xa0] sm:$0xff]  ;;  %v1955_v6 = vshll.u32 %v3328_v49, 16  ;;  %v4196_v48 = vld [vmem:[%s4885_s0 + $0xd8] sm:$0xff] }
 0x112   :  { %v785_v61 = vpop.f32.mrf.mxu2 }
 0x113   :  { %v830_v51 = vadd.f32 %v785_v61, %v437_v58  ;;  %v441_v9 = vpop.f32.mrf.mxu1 }
 0x115   :  { %v1094_v17 = vpop.permute.xlu0 %1093  ;;  %v996_v24 = vadd.f32 %v951_v44, %v830_v51  ;;  %v1100_v59 = vpop.permute.xlu2 %1099 }
 0x116   :  { %v3828_v25 = vmax.f32 %v1038_v2, %v1094_v17  ;;  %2970 = vmatmul.msk.bf16.gmra.mxu3 %vm229_vm2, %v3154_v11  ;;  %2912 = vmatmul.msk.bf16.gmra.mxu1 %vm229_vm2, %v3777_v60  ;;  %v1950_v60 = vsel %vm565_vm3, %v1940_v30, %v1949_v28  ;;  %v1952_v30 = vshrl.u32 %v3328_v49, 16  ;;  %v1957_v17 = vrot.slane %v1955_v6, 4 }
 0x117   :  { %v3841_v44 = vadd.f32 %v3554_v40, %v996_v24  ;;  %v1501_v24 = vor.u32 %v1499_v16, %v1497_v23 }
 0x118   :  { %1228 = vrot.lane.b32.xlu1 %v3828_v25, %s3348_s7  ;;  %1121 = vrot.lane.b32.xlu0 %v1052_v34, %s3347_s13  ;;  %v330_v42 = vpop.f32.mrf.mxu0  ;;  %v1954_v20 = vrot.slane %v1952_v30, 3  ;;  %v3903_v30 = vld [vmem:[%s4885_s0 + $0xa8] sm:$0xff] }
 0x119   :  { %v956_v43 = vpop.f32.mrf.mxu3  ;;  %v1053_v58 = vmax.f32 %v3841_v44, 0.0  ;;  %v442_v3 = vadd.f32 %v441_v9, %v330_v42  ;;  %v3874_v42 = vmax.f32 %v1041_v62, %v1100_v59 }
 0x11a   :  { %v787_v2 = vpop.f32.mrf.mxu2  ;;  %v1958_v55 = vor.u32 %v1957_v17, %v1954_v20  ;;  %v3156_v17 = vld [vmem:[%s4885_s0 + $0xa8] sm:$0xff]  }
 0x11b   :  { %v831_v45 = vadd.f32 %v787_v2, %v439_v38  ;;  %2898 = vmatmul.msk.bf16.gmra.mxu0 %vm229_vm2, %v1498_v63  ;;  %v443_v8 = vpop.f32.mrf.mxu1 }
 0x11d   :  { %v1096_v53 = vpop.permute.xlu1 %1095  ;;  %v997_v41 = vadd.f32 %v953_v7, %v831_v45  ;;  %v1102_v49 = vpop.permute.xlu2 %1101 }
 0x11e   :  { %v3855_v50 = vmax.f32 %v1039_v19, %v1096_v53  ;;  %v1503_v19 = vshll.u32 %v3851_v39, 16  ;;  %v1959_v53 = vsel %vm565_vm3, %v1949_v28, %v1958_v55  ;;  %v3908_v59 = vmax.f32 %v1042_v15, %v1102_v49 }
 0x11f   :  { %2955 = vmatmul.msk.bf16.gmra.mxu2 %vm229_vm2, %v1950_v60  ;;  %v3867_v9 = vadd.f32 %v3554_v40, %v997_v41  ;;  %v1507_v15 = vshrl.u32 %v3851_v39, 16 }
 0x120   :  { %1230 = vrot.lane.b32.xlu2 %v3855_v50, %s3348_s7  ;;  %1123 = vrot.lane.b32.xlu1 %v1053_v58, %s3347_s13  ;;  %v332_v1 = vpop.f32.mrf.mxu0  ;;  %v1505_v38 = vrot.slane %v1503_v19, 1 }
 0x121   :  { %v958_v7 = vpop.f32.mrf.mxu3  ;;  %v1054_v45 = vmax.f32 %v3867_v9, 0.0  ;;  %v444_v62 = vadd.f32 %v443_v8, %v332_v1  ;;  %v3330_v8 = vld [vmem:[%s4885_s0 + $0xac] sm:$0xff]  }
 0x122   :  { %v790_v61 = vpop.f32.mrf.mxu2  ;;  %v1961_v16 = vshrl.u32 %v3330_v8, 16  ;;  %v1964_v19 = vshll.u32 %v3330_v8, 16 }
 0x123   :  { %v832_v51 = vadd.f32 %v790_v61, %v442_v3  ;;  %v446_v11 = vpop.f32.mrf.mxu1 }
 0x125   :  { %v1098_v22 = vpop.permute.xlu1 %1097  ;;  %v998_v63 = vadd.f32 %v956_v43, %v832_v51 }
 0x126   :  { %v3878_v2 = vmax.f32 %v1040_v36, %v1098_v22  ;;  %2971 = vmatmul.msk.bf16.gmra.mxu3 %vm229_vm2, %v3155_v13  ;;  %2913 = vmatmul.msk.bf16.gmra.mxu1 %vm229_vm2, %v3809_v18  ;;  %v1506_v36 = vsel %vm117_vm1, %v1501_v24, %v1505_v38  ;;  %v1963_v22 = vrot.slane %v1961_v16, 3  ;;  %v1966_v24 = vrot.slane %v1964_v19, 4  ;;  %v3947_v19 = vld [vmem:[%s4885_s0 + $0xb0] sm:$0xff] }
 0x127   :  { %v3893_v60 = vadd.f32 %v3554_v40, %v998_v63 }
 0x128   :  { %1232 = vrot.lane.b32.xlu0 %v3878_v2, %s3348_s7  ;;  %1234 = vrot.lane.b32.xlu1 %v3874_v42, %s3348_s7  ;;  %v335_v31 = vpop.f32.mrf.mxu0 }
 0x129   :  { %1125 = vrot.lane.b32.xlu2 %v1054_v45, %s3347_s13  ;;  %v961_v43 = vpop.f32.mrf.mxu3  ;;  %v1055_v6 = vmax.f32 %v3893_v60, 0.0  ;;  %v447_v1 = vadd.f32 %v446_v11, %v335_v31 }
 0x12a   :  { %v792_v23 = vpop.f32.mrf.mxu2 }
 0x12b   :  { %v833_v18 = vadd.f32 %v792_v23, %v444_v62  ;;  %2899 = vmatmul.msk.bf16.gmra.mxu0 %vm229_vm2, %v1506_v36  ;;  %v448_v41 = vpop.f32.mrf.mxu1  ;;  %v1509_v62 = vor.u32 %v1507_v15, %v1505_v38  ;;  %v1967_v23 = vor.u32 %v1966_v24, %v1963_v22  ;;  %v1515_v24 = vshrl.u32 %v3903_v30, 16 }
 0x12d   :  { %v999_v3 = vadd.f32 %v958_v7, %v833_v18  ;;  %v1511_v7 = vshll.u32 %v3903_v30, 16 }
 0x12f   :  { %2956 = vmatmul.msk.bf16.gmra.mxu2 %vm229_vm2, %v1959_v53  ;;  %v3912_v28 = vadd.f32 %v3554_v40, %v999_v3  ;;  %v1513_v31 = vrot.slane %v1511_v7, 1 }
 0x130   :  { %1127 = vrot.lane.b32.xlu0 %v1055_v6, %s3347_s13  ;;  %v337_v12 = vpop.f32.mrf.mxu0 }
 0x131   :  { %1236 = vrot.lane.b32.xlu2 %v3908_v59, %s3348_s7  ;;  %v1056_v61 = vmax.f32 %v3912_v28, 0.0  ;;  %v963_v11 = vpop.f32.mrf.mxu3  ;;  %v449_v18 = vadd.f32 %v448_v41, %v337_v12  ;;  %v1514_v8 = vsel %vm117_vm1, %v1509_v62, %v1513_v31  ;;  %v3332_v41 = vld [vmem:[%s4885_s0 + $0xb4] sm:$0xff]  }
 0x132   :  { %v795_v51 = vpop.f32.mrf.mxu2 }
 0x133   :  { %v834_v13 = vadd.f32 %v795_v51, %v447_v1  ;;  %1129 = vrot.lane.b32.xlu1 %v1056_v61, %s3347_s13  ;;  %v451_v20 = vpop.f32.mrf.mxu1 }
 0x135   :  { %v1000_v63 = vadd.f32 %v961_v43, %v834_v13  ;;  %v1108_v12 = vpop.permute.xlu2 %1107  ;;  %v1973_v13 = vshll.u32 %v3332_v41, 16 }
 0x136   :  { %2972 = vmatmul.msk.bf16.gmra.mxu3 %vm229_vm2, %v3156_v17  ;;  %2914 = vmatmul.msk.bf16.gmra.mxu1 %vm229_vm2, %v3851_v39  ;;  %v1968_v39 = vsel %vm565_vm3, %v1958_v55, %v1967_v23  ;;  %v1970_v55 = vshrl.u32 %v3332_v41, 16  ;;  %v3958_v17 = vmax.f32 %v1045_v5, %v1108_v12 }
 0x137   :  { %v3932_v36 = vadd.f32 %v3554_v40, %v1000_v63 }
 0x138   :  { %v340_v53 = vpop.f32.mrf.mxu0  ;;  %v1972_v5 = vrot.slane %v1970_v55, 3 }
 0x139   :  { %v1057_v49 = vmax.f32 %v3932_v36, 0.0  ;;  %v966_v1 = vpop.f32.mrf.mxu3  ;;  %v452_v51 = vadd.f32 %v451_v20, %v340_v53 }
 0x13a   :  { %v797_v3 = vpop.f32.mrf.mxu2 }
 0x13b   :  { %v835_v43 = vadd.f32 %v797_v3, %v449_v18  ;;  %1131 = vrot.lane.b32.xlu2 %v1057_v49, %s3347_s13  ;;  %2900 = vmatmul.msk.bf16.gmra.mxu0 %vm229_vm2, %v1514_v8  ;;  %v453_v38 = vpop.f32.mrf.mxu1  ;;  %v1975_v18 = vrot.slane %v1973_v13, 4  ;;  %v1517_v8 = vor.u32 %v1515_v24, %v1513_v31  ;;  %v3334_v13 = vld [vmem:[%s4885_s0 + $0xbc] sm:$0xff]  }
 0x13d   :  { %v1104_v16 = vpop.permute.xlu0 %1103  ;;  %v1001_v15 = vadd.f32 %v963_v11, %v835_v43  ;;  %v1519_v11 = vshll.u32 %v3947_v19, 16  ;;  %v1976_v31 = vor.u32 %v1975_v18, %v1972_v5  ;;  %v1523_v5 = vshrl.u32 %v3947_v19, 16 }
 0x13e   :  { %v3951_v7 = vmax.f32 %v1043_v35, %v1104_v16 }
 0x13f   :  { %2957 = vmatmul.msk.bf16.gmra.mxu2 %vm229_vm2, %v1968_v39  ;;  %v3963_v20 = vadd.f32 %v3554_v40, %v1001_v15  ;;  %v1521_v3 = vrot.slane %v1519_v11, 1 }
 0x140   :  { %1238 = vrot.lane.b32.xlu0 %v3951_v7, %s3348_s7  ;;  %v342_v22 = vpop.f32.mrf.mxu0 }
 0x141   :  { %v968_v35 = vpop.f32.mrf.mxu3  ;;  %v1058_v41 = vmax.f32 %v3963_v20, 0.0  ;;  %v1522_v46 = vsel %vm117_vm1, %v1517_v8, %v1521_v3 }
 0x142   :  { %v800_v32 = vpop.f32.mrf.mxu2 }
 0x143   :  { %v836_v63 = vadd.f32 %v800_v32, %v452_v51  ;;  %1242 = vrot.lane.b32.xlu2 %v3958_v17, %s3348_s7  ;;  %v456_v62 = vpop.f32.mrf.mxu1 }
 0x145   :  { %v1106_v53 = vpop.permute.xlu1 %1105  ;;  %v1002_v43 = vadd.f32 %v966_v1, %v836_v63  ;;  %v454_v1 = vadd.f32 %v453_v38, %v342_v22  ;;  %v3995_v38 = vld [vmem:[%s4885_s0 + $0xb8] sm:$0xff]  ;;  %v1982_v63 = vshll.u32 %v3334_v13, 16 }
 0x146   :  { %v3972_v39 = vmax.f32 %v1044_v47, %v1106_v53  ;;  %2973 = vmatmul.msk.bf16.gmra.mxu3 %vm229_vm2, %v3157_v0  ;;  %2915 = vmatmul.msk.bf16.gmra.mxu1 %vm229_vm2, %v3903_v30  ;;  %v1977_v30 = vsel %vm565_vm3, %v1967_v23, %v1976_v31  ;;  %v1979_v23 = vshrl.u32 %v3334_v13, 16  ;;  %v1527_v18 = vshll.u32 %v3995_v38, 16 }
 0x147   :  { %v3985_v15 = vadd.f32 %v3554_v40, %v1002_v43  ;;  %v3158_v43 = vld [vmem:[%s4885_s0 + $0xb8] sm:$0xff]  }
 0x148   :  { %1240 = vrot.lane.b32.xlu1 %v3972_v39, %s3348_s7  ;;  %1133 = vrot.lane.b32.xlu0 %v1058_v41, %s3347_s13  ;;  %v345_v16 = vpop.f32.mrf.mxu0 }
 0x149   :  { %v971_v12 = vpop.f32.mrf.mxu3  ;;  %v1059_v22 = vmax.f32 %v3985_v15, 0.0  ;;  %v457_v11 = vadd.f32 %v456_v62, %v345_v16  ;;  %v1984_v16 = vrot.slane %v1982_v63, 4 }
 0x14a   :  { %v802_v47 = vpop.f32.mrf.mxu2 }
 0x14b   :  { %v837_v51 = vadd.f32 %v802_v47, %v454_v1  ;;  %2901 = vmatmul.msk.bf16.gmra.mxu0 %vm229_vm2, %v1522_v46  ;;  %v458_v55 = vpop.f32.mrf.mxu1  ;;  %v1981_v1 = vrot.slane %v1979_v23, 3  ;;  %v1525_v47 = vor.u32 %v1523_v5, %v1521_v3  ;;  %v4031_v5 = vld [vmem:[%s4886_s2] ss:$0 sm:$0xff] }
 0x14d   :  { %v1003_v24 = vadd.f32 %v968_v35, %v837_v51  ;;  %v1529_v51 = vrot.slane %v1527_v18, 1 }
 0x14f   :  { %2958 = vmatmul.msk.bf16.gmra.mxu2 %vm229_vm2, %v1977_v30  ;;  %v4000_v32 = vadd.f32 %v3554_v40, %v1003_v24  ;;  %v1114_v30 = vpop.permute.xlu2 %1113 }
 0x150   :  { %1135 = vrot.lane.b32.xlu1 %v1059_v22, %s3347_s13  ;;  %v347_v0 = vpop.f32.mrf.mxu0  ;;  %v4025_v23 = vmax.f32 %v1048_v14, %v1114_v30 }
 0x151   :  { %v1060_v35 = vmax.f32 %v4000_v32, 0.0  ;;  %v973_v62 = vpop.f32.mrf.mxu3  ;;  %v459_v3 = vadd.f32 %v458_v55, %v347_v0  ;;  %v3336_v55 = vld [vmem:[%s4885_s0 + $0xc4] sm:$0xff]  }
 0x152   :  { %v805_v53 = vpop.f32.mrf.mxu2 }
 0x153   :  { %v838_v8 = vadd.f32 %v805_v53, %v457_v11  ;;  %1137 = vrot.lane.b32.xlu2 %v1060_v35, %s3347_s13  ;;  %v461_v40 = vpop.f32.mrf.mxu1  ;;  %v1985_v11 = vor.u32 %v1984_v16, %v1981_v1  ;;  %v4046_v53 = vld [vmem:[%s4885_s0 + $0xc0] sm:$0xff] }
 0x154   :  { %v1535_v52 = vshll.u32 %v4046_v53, 16 }
 0x155   :  { %v1110_v46 = vpop.permute.xlu0 %1109  ;;  %v1004_v13 = vadd.f32 %v971_v12, %v838_v8  ;;  %v1530_v12 = vsel %vm117_vm1, %v1525_v47, %v1529_v51  ;;  %v1986_v10 = vsel %vm565_vm3, %v1976_v31, %v1985_v11  ;;  %v1988_v31 = vshrl.u32 %v3336_v55, 16 }
 0x156   :  { %v4016_v24 = vmax.f32 %v1046_v26, %v1110_v46  ;;  %2974 = vmatmul.msk.bf16.gmra.mxu3 %vm229_vm2, %v3158_v43  ;;  %2916 = vmatmul.msk.bf16.gmra.mxu1 %vm229_vm2, %v3947_v19  ;;  %v1991_v46 = vshll.u32 %v3336_v55, 16 }
 0x157   :  { %v4034_v19 = vadd.f32 %v4031_v5, %v1004_v13 }
 0x158   :  { %1244 = vrot.lane.b32.xlu0 %v4016_v24, %s3348_s7  ;;  %v350_v63 = vpop.f32.mrf.mxu0 }
 0x159   :  { %v976_v26 = vpop.f32.mrf.mxu3  ;;  %v4894_v1 = vmax.f32 %v4034_v19, 0.0  ;;  %v462_v16 = vadd.f32 %v461_v40, %v350_v63  ;;  %v3159_v63 = vld [vmem:[%s4885_s0 + $0xc0] sm:$0xff]  }
 0x15a   :  { %v807_v21 = vpop.f32.mrf.mxu2 }
 0x15b   :  { %v839_v18 = vadd.f32 %v807_v21, %v459_v3  ;;  %1248 = vrot.lane.b32.xlu2 %v4025_v23, %s3348_s7  ;;  %2902 = vmatmul.msk.bf16.gmra.mxu0 %vm229_vm2, %v1530_v12  ;;  %v463_v14 = vpop.f32.mrf.mxu1  ;;  %v1990_v12 = vrot.slane %v1988_v31, 3  ;;  %v1993_v21 = vrot.slane %v1991_v46, 4 }
 0x15c   :  { %v1537_v14 = vrot.slane %v1535_v52, 1 }
 0x15d   :  { %v1112_v0 = vpop.permute.xlu1 %1111  ;;  %v1005_v8 = vadd.f32 %v973_v62, %v839_v18  ;;  %v1531_v62 = vshrl.u32 %v3995_v38, 16 }
 0x15e   :  { %v4050_v43 = vmax.f32 %v1047_v57, %v1112_v0 }
 0x15f   :  { %2959 = vmatmul.msk.bf16.gmra.mxu2 %vm229_vm2, %v1986_v10  ;;  %v4062_v40 = vadd.f32 %v4031_v5, %v1005_v8  ;;  %v1533_v10 = vor.u32 %v1531_v62, %v1529_v51  ;;  %v1994_v8 = vor.u32 %v1993_v21, %v1990_v12  ;;  %v3338_v62 = vld [vmem:[%s4885_s0 + $0xcc] sm:$0xff]  }
 0x160   :  { %1246 = vrot.lane.b32.xlu1 %v4050_v43, %s3348_s7  ;;  %1139 = vrot.lane.b32.xlu0 %v4894_v1, %s3347_s13  ;;  %v352_v47 = vpop.f32.mrf.mxu0  ;;  %v2000_v12 = vshll.u32 %v3338_v62, 16 }
 0x161   :  { %v978_v30 = vpop.f32.mrf.mxu3  ;;  %v4888_v55 = vmax.f32 %v4062_v40, 0.0  ;;  %v1538_v51 = vsel %vm117_vm1, %v1533_v10, %v1537_v14  ;;  %v1539_v10 = vshrl.u32 %v4046_v53, 16 }
 0x162   :  { %v810_v57 = vpop.f32.mrf.mxu2  ;;  %v2002_v29 = vrot.slane %v2000_v12, 4 }
 0x163   :  { %v840_v13 = vadd.f32 %v810_v57, %v462_v16  ;;  %v1739_v3 = vpop.f32.mrf.mxu1  ;;  %v4090_v57 = vld [vmem:[%s4885_s0 + $0xc8] sm:$0xff] }
 0x165   :  { %v1006_v18 = vadd.f32 %v976_v26, %v840_v13  ;;  %v1120_v30 = vpop.permute.xlu2 %1119 }
 0x166   :  { %2975 = vmatmul.msk.bf16.gmra.mxu3 %vm229_vm2, %v3159_v63  ;;  %2917 = vmatmul.msk.bf16.gmra.mxu1 %vm229_vm2, %v3995_v38  ;;  %v1995_v38 = vsel %vm565_vm3, %v1985_v11, %v1994_v8  ;;  %v1997_v11 = vshrl.u32 %v3338_v62, 16  ;;  %v4101_v21 = vmax.f32 %v1051_v37, %v1120_v30 }
 0x167   :  { %v4072_v0 = vadd.f32 %v4031_v5, %v1006_v18 }
 0x168   :  { %1141 = vrot.lane.b32.xlu1 %v4888_v55, %s3347_s13  ;;  %v1628_v26 = vpop.f32.mrf.mxu0 }
 0x169   :  { %v4893_v16 = vmax.f32 %v4072_v0, 0.0  ;;  %v2251_v46 = vpop.f32.mrf.mxu3  ;;  %v1740_v63 = vadd.f32 %v1739_v3, %v1628_v26  ;;  %v3160_v26 = vld [vmem:[%s4885_s0 + $0xc8] sm:$0xff]  }
 0x16a   :  { %v812_v31 = vpop.f32.mrf.mxu2 }
 0x16b   :  { %1143 = vrot.lane.b32.xlu2 %v4893_v16, %s3347_s13  ;;  %2903 = vmatmul.msk.bf16.gmra.mxu0 %vm229_vm2, %v1538_v51  ;;  %v1741_v47 = vpop.f32.mrf.mxu1  ;;  %v1543_v51 = vshll.u32 %v4090_v57, 16 }
 0x16d   :  { %v1116_v52 = vpop.permute.xlu0 %1115  ;;  %v1545_v30 = vrot.slane %v1543_v51, 1 }
 0x16e   :  { %v4094_v13 = vmax.f32 %v1049_v27, %v1116_v52  ;;  %v1541_v52 = vor.u32 %v1539_v10, %v1537_v14 }
 0x16f   :  { %2960 = vmatmul.msk.bf16.gmra.mxu2 %vm229_vm2, %v1995_v38  ;;  %v1999_v38 = vrot.slane %v1997_v11, 3 }
 0x170   :  { %1250 = vrot.lane.b32.xlu0 %v4094_v13, %s3348_s7  ;;  %v1630_v18 = vpop.f32.mrf.mxu0  ;;  %v1546_v4 = vsel %vm117_vm1, %v1541_v52, %v1545_v30  ;;  %v1547_v52 = vshrl.u32 %v4090_v57, 16 }
 0x171   :  { %v2253_v27 = vpop.f32.mrf.mxu3  ;;  %v4122_v11 = vor.u32 %v2002_v29, %v1999_v38 }
 0x172   :  { %v2086_v33 = vpop.f32.mrf.mxu2 }
 0x173   :  { %v2155_v31 = vadd.f32 %v2086_v33, %v1740_v63  ;;  %1254 = vrot.lane.b32.xlu2 %v4101_v21, %s3348_s7  ;;  %v1744_v3 = vpop.f32.mrf.mxu1 }
 0x175   :  { %v2320_v37 = vadd.f32 %v2251_v46, %v2155_v31  ;;  %v1118_v62 = vpop.permute.xlu1 %1117  ;;  %v1742_v46 = vadd.f32 %v1741_v47, %v1630_v18  ;;  %v2004_v47 = vsel %vm565_vm3, %v1994_v8, %v4122_v11  ;;  %v3340_v31 = vld [vmem:[%s4885_s0 + $0xd4] sm:$0xff]  }
 0x176   :  { %v4112_v55 = vmax.f32 %v1050_v54, %v1118_v62  ;;  %2976 = vmatmul.msk.bf16.gmra.mxu3 %vm229_vm2, %v3160_v26  ;;  %2918 = vmatmul.msk.bf16.gmra.mxu1 %vm229_vm2, %v4046_v53  ;;  %v2006_v29 = vshrl.u32 %v3340_v31, 16 }
 0x177   :  { %v4118_v63 = vadd.f32 %v4031_v5, %v2320_v37  ;;  %v2009_v37 = vshll.u32 %v3340_v31, 16 }
 0x178   :  { %1252 = vrot.lane.b32.xlu1 %v4112_v55, %s3348_s7  ;;  %v1633_v12 = vpop.f32.mrf.mxu0  ;;  %v2008_v31 = vrot.slane %v2006_v29, 3 }
 0x179   :  { %v4889_v14 = vmax.f32 %v4118_v63, 0.0  ;;  %v2256_v33 = vpop.f32.mrf.mxu3  ;;  %v1745_v38 = vadd.f32 %v1744_v3, %v1633_v12 }
 0x17a   :  { %v2088_v54 = vpop.f32.mrf.mxu2  ;;  %v1231_v10 = vpop.permute.xlu2 %1230 }
 0x17b   :  { %v2156_v51 = vadd.f32 %v2088_v54, %v1742_v46  ;;  %v1309_v53 = vmax.f32 %v3855_v50, %v1231_v10  ;;  %2428 = vrot.lane.b32.xlu0 %v4889_v14, %s3347_s13  ;;  %2904 = vmatmul.msk.bf16.gmra.mxu0 %vm229_vm2, %v1546_v4  ;;  %v1746_v18 = vpop.f32.mrf.mxu1  ;;  %v4143_v50 = vld [vmem:[%s4885_s0 + $0xd0] sm:$0xff] }
 0x17c   :  { %v1551_v46 = vshll.u32 %v4143_v50, 16 }
 0x17d   :  { %v2321_v26 = vadd.f32 %v2253_v27, %v2156_v51  ;;  %1337 = vst.msk [vmem:[%s4887_s3 + $0x10] sm:$0xff] %vm1334_vm4, %v1309_v53 }
 0x17f   :  { %2961 = vmatmul.msk.bf16.gmra.mxu2 %vm229_vm2, %v2004_v47  ;;  %v4147_v8 = vadd.f32 %v4031_v5, %v2321_v26  ;;  %v3161_v47 = vld [vmem:[%s4885_s0 + $0xd0] sm:$0xff]   ;;  %v2011_v26 = vrot.slane %v2009_v37, 4 }
 0x180   :  { %v1635_v62 = vpop.f32.mrf.mxu0 }
 0x181   :  { %v4890_v27 = vmax.f32 %v4147_v8, 0.0  ;;  %v2258_v12 = vpop.f32.mrf.mxu3  ;;  %v1747_v29 = vadd.f32 %v1746_v18, %v1635_v62  ;;  %v3341_v62 = vld [vmem:[%s4885_s0 + $0xdc] sm:$0xff]  }
 0x182   :  { %v2091_v4 = vpop.f32.mrf.mxu2  ;;  %v1227_v54 = vpop.permute.xlu0 %1226 }
 0x183   :  { %v2157_v10 = vadd.f32 %v2091_v4, %v1745_v38  ;;  %v1307_v51 = vmax.f32 %v3813_v56, %v1227_v54  ;;  %v1126_v3 = vpop.permute.xlu2 %1125  ;;  %2430 = vrot.lane.b32.xlu1 %v4890_v27, %s3347_s13  ;;  %v1749_v53 = vpop.f32.mrf.mxu1  ;;  %v1549_v56 = vor.u32 %v1547_v52, %v1545_v30  ;;  %v1553_v38 = vrot.slane %v1551_v46, 1 }
 0x184   :  { %v4169_v54 = vor.u32 %v2011_v26, %v2008_v31  ;;  %v4210_v26 = vmax.f32 %v1054_v45, %v1126_v3  ;;  %v3162_v3 = vld [vmem:[%s4885_s0 + $0xd8] sm:$0xff]  }
 0x185   :  { %v2322_v14 = vadd.f32 %v2256_v33, %v2157_v10  ;;  %1335 = vst.msk [vmem:[%s4887_s3] sm:$0xff] %vm1334_vm4, %v1307_v51  ;;  %v1554_v10 = vsel %vm117_vm1, %v1549_v56, %v1553_v38 }
 0x186   :  { %2977 = vmatmul.msk.bf16.gmra.mxu3 %vm229_vm2, %v3161_v47  ;;  %2919 = vmatmul.msk.bf16.gmra.mxu1 %vm229_vm2, %v4090_v57 }
 0x187   :  { %v4167_v4 = vadd.f32 %v4031_v5, %v2322_v14 }
 0x188   :  { %v1638_v37 = vpop.f32.mrf.mxu0 }
 0x189   :  { %v4892_v33 = vmax.f32 %v4167_v4, 0.0  ;;  %v2261_v18 = vpop.f32.mrf.mxu3 }
 0x18a   :  { %v2093_v27 = vpop.f32.mrf.mxu2  ;;  %v1229_v51 = vpop.permute.xlu1 %1228 }
 0x18b   :  { %v2158_v30 = vadd.f32 %v2093_v27, %v1747_v29  ;;  %v1308_v52 = vmax.f32 %v3828_v25, %v1229_v51  ;;  %v1122_v46 = vpop.permute.xlu0 %1121  ;;  %v1237_v47 = vpop.permute.xlu2 %1236  ;;  %2432 = vrot.lane.b32.xlu2 %v4892_v33, %s3347_s13  ;;  %2905 = vmatmul.msk.bf16.gmra.mxu0 %vm229_vm2, %v1554_v10  ;;  %v2013_v27 = vsel %vm565_vm3, %v4122_v11, %v4169_v54  ;;  %v2015_v11 = vshrl.u32 %v3341_v62, 16 }
 0x18c   :  { %v4179_v57 = vmax.f32 %v1052_v34, %v1122_v46  ;;  %v1312_v14 = vmax.f32 %v3908_v59, %v1237_v47  ;;  %v1751_v25 = vpop.f32.mrf.mxu1  ;;  %v1750_v34 = vadd.f32 %v1749_v53, %v1638_v37  ;;  %v1555_v29 = vshrl.u32 %v4143_v50, 16 }
 0x18d   :  { %v2323_v31 = vadd.f32 %v2258_v12, %v2158_v30  ;;  %1336 = vst.msk [vmem:[%s4887_s3 + $0x8] sm:$0xff] %vm1334_vm4, %v1308_v52  ;;  %v2018_v12 = vshll.u32 %v3341_v62, 16  ;;  %v1559_v10 = vshll.u32 %v4196_v48, 16  ;;  %v2017_v46 = vrot.slane %v2015_v11, 3  ;;  %v3163_v62 = vld [vmem:[%s4885_s0 + $0xe0] sm:$0xff]  }
 0x18e   :  { %1340 = vst.msk [vmem:[%s4887_s3 + $0x28] sm:$0xff] %vm1334_vm4, %v1312_v14  ;;  %1256 = vrot.lane.b32.xlu0 %v4179_v57, %s3348_s7  ;;  %v1557_v44 = vor.u32 %v1555_v29, %v1553_v38  ;;  %v2841_v38 = vld [vmem:[%s4885_s0 + $0xe4] sm:$0x1] }
 0x18f   :  { %2962 = vmatmul.msk.bf16.gmra.mxu2 %vm229_vm2, %v2013_v27  ;;  %v4206_v59 = vadd.f32 %v4031_v5, %v2323_v31  ;;  %v2020_v47 = vrot.slane %v2018_v12, 4  ;;  %v2950_v31 = vld [vmem:[%s4885_s0 + $0xe8] sm:$0xf]  ;;  %v3137_v12 = vunpack.c.h.b16 %v3163_v62 }
 0x190   :  { %v1640_v56 = vpop.f32.mrf.mxu0  ;;  %v4251_v29 = vunpack.c.l.b16 %v2950_v31 }
 0x191   :  { %v2263_v37 = vpop.f32.mrf.mxu3  ;;  %v4891_v9 = vmax.f32 %v4206_v59, 0.0  ;;  %v4249_v11 = vor.u32 %v2020_v47, %v2017_v46 }
 0x192   :  { %v2096_v51 = vpop.f32.mrf.mxu2  ;;  %v1124_v30 = vpop.permute.xlu1 %1123 }
 0x193   :  { %v2159_v52 = vadd.f32 %v2096_v51, %v1750_v34  ;;  %v4216_v53 = vmax.f32 %v1053_v58, %v1124_v30  ;;  %1260 = vrot.lane.b32.xlu2 %v4210_v26, %s3348_s7  ;;  %v1561_v58 = vrot.slane %v1559_v10, 1  ;;  %v1752_v10 = vadd.f32 %v1751_v25, %v1640_v56 }
 0x194   :  { %v1754_v45 = vpop.f32.mrf.mxu1  ;;  %v2022_v25 = vsel %vm565_vm3, %v4169_v54, %v4249_v11 }
 0x195   :  { %v2324_v14 = vadd.f32 %v2261_v18, %v2159_v52  ;;  %v4224_v27 = vpop.permute.xlu2 %1131  ;;  %1258 = vrot.lane.b32.xlu1 %v4216_v53, %s3348_s7  ;;  %v2840_v18 = vld [vmem:[%s4885_s0 + $0xe0] sm:$0xf]  ;;  %v1562_v30 = vsel %vm117_vm1, %v1557_v44, %v1561_v58  ;;  %v1906_v44 = vpack.c.b16 %v4251_v29, %v3137_v12 }
 0x196   :  { %2434 = vrot.lane.b32.xlu0 %v4891_v9, %s3347_s13  ;;  %2978 = vmatmul.msk.bf16.gmra.mxu3 %vm229_vm2, %v3162_v3  ;;  %v4254_v52 = vunpack.c.l.b16 %v2840_v18  ;;  %v1448_v9 = vunpack.c.l.b16 %v2841_v38  ;;  %v1563_v38 = vshrl.u32 %v4196_v48, 16 }
 0x197   :  { %2920 = vmatmul.msk.bf16.gmra.mxu1 %vm229_vm2, %v4143_v50  ;;  %v4247_v34 = vadd.f32 %v4031_v5, %v2324_v14 }
 0x198   :  { %v1643_v51 = vpop.f32.mrf.mxu0 }
 0x199   :  { %v2378_v14 = vmax.f32 %v4247_v34, 0.0  ;;  %v2266_v47 = vpop.f32.mrf.mxu3 }
 0x19a   :  { %v2098_v33 = vpop.f32.mrf.mxu2  ;;  %v1233_v3 = vpop.permute.xlu0 %1232 }
 0x19b   :  { %v2160_v16 = vadd.f32 %v2098_v33, %v1752_v10  ;;  %v1310_v50 = vmax.f32 %v3878_v2, %v1233_v3  ;;  %v1235_v1 = vpop.permute.xlu1 %1234  ;;  %2906 = vmatmul.msk.bf16.gmra.mxu0 %vm229_vm2, %v1562_v30  ;;  %v2024_v33 = vshrl.u32 %v1906_v44, 16 }
 0x19c   :  { %v1311_v46 = vmax.f32 %v3874_v42, %v1235_v1  ;;  %v1756_v56 = vpop.f32.mrf.mxu1  ;;  %v4272_v42 = vpack.c.b16 %v1448_v9, %v4254_v52 }
 0x19d   :  { %v2325_v31 = vadd.f32 %v2263_v37, %v2160_v16  ;;  %1338 = vst.msk [vmem:[%s4887_s3 + $0x18] sm:$0xff] %vm1334_vm4, %v1310_v50  ;;  %v1243_v2 = vpop.permute.xlu2 %1242  ;;  %2436 = vrot.lane.b32.xlu1 %v2378_v14, %s3347_s13  ;;  %v1755_v16 = vadd.f32 %v1754_v45, %v1643_v51  ;;  %v2027_v37 = vshll.u32 %v1906_v44, 16  ;;  %v2026_v50 = vrot.slane %v2024_v33, 3 }
 0x19e   :  { %1339 = vst.msk [vmem:[%s4887_s3 + $0x20] sm:$0xff] %vm1334_vm4, %v1311_v46  ;;  %v1315_v1 = vmax.f32 %v3958_v17, %v1243_v2  ;;  %v1567_v17 = vshll.u32 %v4272_v42, 16 }
 0x19f   :  { %2963 = vmatmul.msk.bf16.gmra.mxu2 %vm229_vm2, %v2022_v25  ;;  %v4281_v54 = vadd.f32 %v4031_v5, %v2325_v31  ;;  %v2029_v46 = vrot.slane %v2027_v37, 4  ;;  %v1565_v31 = vor.u32 %v1563_v38, %v1561_v58  ;;  %v4314_v58 = vmax.f32 %v1057_v49, %v4224_v27 }
 0x1a0   :  { %1343 = vst.msk [vmem:[%s4887_s3 + $0x40] sm:$0xff] %vm1334_vm4, %v1315_v1  ;;  %v1645_v18 = vpop.f32.mrf.mxu0  ;;  %v1569_v2 = vrot.slane %v1567_v17, 1 }
 0x1a1   :  { %v2379_v9 = vmax.f32 %v4281_v54, 0.0  ;;  %v2268_v30 = vpop.f32.mrf.mxu3  ;;  %v1757_v28 = vadd.f32 %v1756_v56, %v1645_v18 }
 0x1a2   :  { %v2101_v45 = vpop.f32.mrf.mxu2  ;;  %v1128_v12 = vpop.permute.xlu0 %1127  ;;  %v1570_v1 = vsel %vm117_vm1, %v1565_v31, %v1569_v2 }
 0x1a3   :  { %v2161_v10 = vadd.f32 %v2101_v45, %v1755_v16  ;;  %v4292_v51 = vmax.f32 %v1055_v6, %v1128_v12  ;;  %2438 = vrot.lane.b32.xlu2 %v2379_v9, %s3347_s13 }
 0x1a4   :  { %v1759_v3 = vpop.f32.mrf.mxu1 }
 0x1a5   :  { %v2326_v25 = vadd.f32 %v2266_v47, %v2161_v10  ;;  %v1130_v44 = vpop.permute.xlu1 %1129  ;;  %1262 = vrot.lane.b32.xlu0 %v4292_v51, %s3348_s7  ;;  %v2030_v47 = vor.u32 %v2029_v46, %v2026_v50 }
 0x1a6   :  { %v4301_v60 = vmax.f32 %v1056_v61, %v1130_v44  ;;  %2979 = vmatmul.msk.bf16.gmra.mxu3 %vm229_vm2, %v3163_v62 }
 0x1a7   :  { %2921 = vmatmul.msk.bf16.gmra.mxu1 %vm229_vm2, %v4196_v48  ;;  %v4307_v6 = vadd.f32 %v4031_v5, %v2326_v25  ;;  %v2031_v37 = vsel %vm565_vm3, %v4249_v11, %v2030_v47  ;;  %v1571_v25 = vshrl.u32 %v4272_v42, 16 }
 0x1a8   :  { %1264 = vrot.lane.b32.xlu1 %v4301_v60, %s3348_s7  ;;  %v1648_v61 = vpop.f32.mrf.mxu0 }
 0x1a9   :  { %v2380_v48 = vmax.f32 %v4307_v6, 0.0  ;;  %v2271_v33 = vpop.f32.mrf.mxu3  ;;  %v1760_v56 = vadd.f32 %v1759_v3, %v1648_v61  ;;  %v1697_v3 = vpack.c.b16 %v4254_v52, %v4254_v52 }
 0x1aa   :  { %v2103_v62 = vpop.f32.mrf.mxu2 }
 0x1ab   :  { %v2162_v16 = vadd.f32 %v2103_v62, %v1757_v28  ;;  %1266 = vrot.lane.b32.xlu2 %v4314_v58, %s3348_s7  ;;  %2907 = vmatmul.msk.bf16.gmra.mxu0 %vm229_vm2, %v1570_v1 }
 0x1ac   :  { %v1761_v36 = vpop.f32.mrf.mxu1 }
 0x1ad   :  { %v2327_v49 = vadd.f32 %v2268_v30, %v2162_v16  ;;  %v1138_v27 = vpop.permute.xlu2 %1137  ;;  %2440 = vrot.lane.b32.xlu0 %v2380_v48, %s3347_s13  ;;  %v2196_v30 = vpack.c.b16 %v4251_v29, %v4251_v29  ;;  %v1573_v29 = vor.u32 %v1571_v25, %v1569_v2 }
 0x1af   :  { %2964 = vmatmul.msk.bf16.gmra.mxu2 %vm229_vm2, %v2031_v37  ;;  %v4328_v18 = vadd.f32 %v4031_v5, %v2327_v49 }
 0x1b0   :  { %v1650_v17 = vpop.f32.mrf.mxu0 }
 0x1b1   :  { %v2381_v38 = vmax.f32 %v4328_v18, 0.0  ;;  %v2273_v50 = vpop.f32.mrf.mxu3  ;;  %v1762_v52 = vadd.f32 %v1761_v36, %v1650_v17 }
 0x1b2   :  { %v2106_v45 = vpop.f32.mrf.mxu2  ;;  %v1239_v12 = vpop.permute.xlu0 %1238 }
 0x1b3   :  { %v2163_v10 = vadd.f32 %v2106_v45, %v1760_v56  ;;  %v1313_v11 = vmax.f32 %v3951_v7, %v1239_v12  ;;  %2442 = vrot.lane.b32.xlu1 %v2381_v38, %s3347_s13 }
 0x1b4   :  { %v1764_v46 = vpop.f32.mrf.mxu1 }
 0x1b5   :  { %v2328_v44 = vadd.f32 %v2271_v33, %v2163_v10  ;;  %1341 = vst.msk [vmem:[%s4887_s3 + $0x30] sm:$0xff] %vm1334_vm4, %v1313_v11  ;;  %v1249_v7 = vpop.permute.xlu2 %1248 }
 0x1b6   :  { %v1318_v31 = vmax.f32 %v4025_v23, %v1249_v7  ;;  %2980 = vmatmul.msk.bf16.gmra.mxu3 %vm229_vm2, %v2196_v30 }
 0x1b7   :  { %v4346_v28 = vadd.f32 %v4031_v5, %v2328_v44  ;;  %2922 = vmatmul.msk.bf16.gmra.mxu1 %vm229_vm2, %v1697_v3 }
 0x1b8   :  { %1346 = vst.msk [vmem:[%s4887_s3 + $0x58] sm:$0xff] %vm1334_vm4, %v1318_v31  ;;  %v1653_v61 = vpop.f32.mrf.mxu0 }
 0x1b9   :  { %v2382_v42 = vmax.f32 %v4346_v28, 0.0  ;;  %v2276_v49 = vpop.f32.mrf.mxu3 }
 0x1ba   :  { %v2108_v1 = vpop.f32.mrf.mxu2  ;;  %v1241_v62 = vpop.permute.xlu1 %1240 }
 0x1bb   :  { %v2164_v23 = vadd.f32 %v2108_v1, %v1762_v52  ;;  %v1314_v16 = vmax.f32 %v3972_v39, %v1241_v62  ;;  %v1134_v33 = vpop.permute.xlu0 %1133  ;;  %2444 = vrot.lane.b32.xlu2 %v2382_v42, %s3347_s13  ;;  %2908 = vmatmul.msk.bf16.gmra.mxu0 %vm229_vm2, %v1573_v29  ;;  %v1765_v39 = vadd.f32 %v1764_v46, %v1653_v61 }
 0x1bc   :  { %v4361_v37 = vmax.f32 %v1058_v41, %v1134_v33  ;;  %v1766_v2 = vpop.f32.mrf.mxu1  ;;  %v4376_v41 = vmax.f32 %v1060_v35, %v1138_v27 }
 0x1bd   :  { %v2329_v36 = vadd.f32 %v2273_v50, %v2164_v23  ;;  %1342 = vst.msk [vmem:[%s4887_s3 + $0x38] sm:$0xff] %vm1334_vm4, %v1314_v16 }
 0x1be   :  { %1268 = vrot.lane.b32.xlu0 %v4361_v37, %s3348_s7 }
 0x1bf   :  { %2965 = vmatmul.msk.bf16.gmra.mxu2 %vm229_vm2, %v2030_v47  ;;  %v4372_v20 = vadd.f32 %v4031_v5, %v2329_v36 }
 0x1c0   :  { %v1655_v56 = vpop.f32.mrf.mxu0 }
 0x1c1   :  { %v2278_v11 = vpop.f32.mrf.mxu3  ;;  %v2383_v47 = vmax.f32 %v4372_v20, 0.0 }
 0x1c2   :  { %v2111_v17 = vpop.f32.mrf.mxu2  ;;  %v1136_v45 = vpop.permute.xlu1 %1135 }
 0x1c3   :  { %v2165_v12 = vadd.f32 %v2111_v17, %v1765_v39  ;;  %v4380_v10 = vmax.f32 %v1059_v22, %v1136_v45  ;;  %1272 = vrot.lane.b32.xlu2 %v4376_v41, %s3348_s7  ;;  %v1767_v22 = vadd.f32 %v1766_v2, %v1655_v56 }
 0x1c4   :  { %v1769_v30 = vpop.f32.mrf.mxu1 }
 0x1c5   :  { %v2330_v3 = vadd.f32 %v2276_v49, %v2165_v12  ;;  %v1144_v50 = vpop.permute.xlu2 %1143  ;;  %1270 = vrot.lane.b32.xlu1 %v4380_v10, %s3348_s7  ;;  %v4896_v12 = vmax.f32 %v4072_v0, 0.0 }
 0x1c6   :  { %2446 = vrot.lane.b32.xlu0 %v2383_v47, %s3347_s13 }
 0x1c7   :  { %v4391_v15 = vadd.f32 %v4031_v5, %v2330_v3 }
 0x1c8   :  { %v1658_v32 = vpop.f32.mrf.mxu0 }
 0x1c9   :  { %v2384_v44 = vmax.f32 %v4391_v15, 0.0  ;;  %v2281_v7 = vpop.f32.mrf.mxu3  ;;  %v1770_v1 = vadd.f32 %v1769_v30, %v1658_v32 }
 0x1ca   :  { %v2113_v35 = vpop.f32.mrf.mxu2  ;;  %v1245_v27 = vpop.permute.xlu0 %1244 }
 0x1cb   :  { %v2166_v46 = vadd.f32 %v2113_v35, %v1767_v22  ;;  %v1316_v25 = vmax.f32 %v4016_v24, %v1245_v27  ;;  %v4897_v35 = vmax.f32 %v4062_v40, 0.0 }
 0x1cc   :  { %v1771_v31 = vpop.f32.mrf.mxu1 }
 0x1cd   :  { %v2331_v29 = vadd.f32 %v2278_v11, %v2166_v46  ;;  %1344 = vst.msk [vmem:[%s4887_s3 + $0x48] sm:$0xff] %vm1334_vm4, %v1316_v25  ;;  %v1255_v52 = vpop.permute.xlu2 %1254  ;;  %2448 = vrot.lane.b32.xlu1 %v2384_v44, %s3347_s13  ;;  %v4430_v11 = vmax.f32 %v4896_v12, %v1144_v50 }
 0x1ce   :  { %v1321_v61 = vmax.f32 %v4101_v21, %v1255_v52  ;;  %v4895_v21 = vmax.f32 %v4034_v19, 0.0 }
 0x1cf   :  { %v4404_v24 = vadd.f32 %v4031_v5, %v2331_v29 }
 0x1d0   :  { %1349 = vst.msk [vmem:[%s4887_s3 + $0x70] sm:$0xff] %vm1334_vm4, %v1321_v61  ;;  %v1660_v23 = vpop.f32.mrf.mxu0 }
 0x1d1   :  { %v2385_v62 = vmax.f32 %v4404_v24, 0.0  ;;  %v2283_v56 = vpop.f32.mrf.mxu3  ;;  %v1772_v19 = vadd.f32 %v1771_v31, %v1660_v23 }
 0x1d2   :  { %v2116_v16 = vpop.f32.mrf.mxu2  ;;  %v1247_v33 = vpop.permute.xlu1 %1246 }
 0x1d3   :  { %v2167_v49 = vadd.f32 %v2116_v16, %v1770_v1  ;;  %v1317_v2 = vmax.f32 %v4050_v43, %v1247_v33  ;;  %v1140_v36 = vpop.permute.xlu0 %1139  ;;  %2450 = vrot.lane.b32.xlu2 %v2385_v62, %s3347_s13 }
 0x1d4   :  { %v4417_v39 = vmax.f32 %v4895_v21, %v1140_v36  ;;  %v1774_v17 = vpop.f32.mrf.mxu1 }
 0x1d5   :  { %v2332_v45 = vadd.f32 %v2281_v7, %v2167_v49  ;;  %1345 = vst.msk [vmem:[%s4887_s3 + $0x50] sm:$0xff] %vm1334_vm4, %v1317_v2 }
 0x1d6   :  { %1274 = vrot.lane.b32.xlu0 %v4417_v39, %s3348_s7 }
 0x1d7   :  { %v4426_v43 = vadd.f32 %v4031_v5, %v2332_v45 }
 0x1d8   :  { %v1663_v30 = vpop.f32.mrf.mxu0 }
 0x1d9   :  { %v2286_v46 = vpop.f32.mrf.mxu3  ;;  %v2386_v25 = vmax.f32 %v4426_v43, 0.0  ;;  %v1775_v0 = vadd.f32 %v1774_v17, %v1663_v30 }
 0x1da   :  { %v2118_v3 = vpop.f32.mrf.mxu2  ;;  %v1142_v22 = vpop.permute.xlu1 %1141 }
 0x1db   :  { %v2168_v32 = vadd.f32 %v2118_v3, %v1772_v19  ;;  %v4434_v27 = vmax.f32 %v4897_v35, %v1142_v22  ;;  %1278 = vrot.lane.b32.xlu2 %v4430_v11, %s3348_s7 }
 0x1dc   :  { %v1776_v7 = vpop.f32.mrf.mxu1 }
 0x1dd   :  { %v2333_v29 = vadd.f32 %v2283_v56, %v2168_v32  ;;  %1276 = vrot.lane.b32.xlu1 %v4434_v27, %s3348_s7 }
 0x1de   :  { %2452 = vrot.lane.b32.xlu0 %v2386_v25, %s3347_s13 }
 0x1df   :  { %v4445_v40 = vadd.f32 %v4031_v5, %v2333_v29 }
 0x1e0   :  { %v1665_v50 = vpop.f32.mrf.mxu0 }
 0x1e1   :  { %v2387_v23 = vmax.f32 %v4445_v40, 0.0  ;;  %v2288_v16 = vpop.f32.mrf.mxu3  ;;  %v1777_v21 = vadd.f32 %v1776_v7, %v1665_v50 }
 0x1e2   :  { %v2121_v31 = vpop.f32.mrf.mxu2  ;;  %v1251_v52 = vpop.permute.xlu0 %1250 }
 0x1e3   :  { %v2169_v61 = vadd.f32 %v2121_v31, %v1775_v0  ;;  %v1319_v1 = vmax.f32 %v4094_v13, %v1251_v52  ;;  %v4899_v0 = vmax.f32 %v4167_v4, 0.0 }
 0x1e4   :  { %v1779_v33 = vpop.f32.mrf.mxu1 }
 0x1e5   :  { %v2334_v49 = vadd.f32 %v2286_v46, %v2169_v61  ;;  %1347 = vst.msk [vmem:[%s4887_s3 + $0x60] sm:$0xff] %vm1334_vm4, %v1319_v1  ;;  %v2433_v2 = vpop.permute.xlu2 %2432  ;;  %2454 = vrot.lane.b32.xlu1 %v2387_v23, %s3347_s13  ;;  %v4898_v46 = vmax.f32 %v4118_v63, 0.0 }
 0x1e6   :  { %v4481_v50 = vmax.f32 %v4899_v0, %v2433_v2 }
 0x1e7   :  { %v4457_v36 = vadd.f32 %v4031_v5, %v2334_v49  ;;  %v4900_v49 = vmax.f32 %v4147_v8, 0.0 }
 0x1e8   :  { %v1668_v56 = vpop.f32.mrf.mxu0 }
 0x1e9   :  { %v2388_v13 = vmax.f32 %v4457_v36, 0.0  ;;  %v2291_v30 = vpop.f32.mrf.mxu3  ;;  %v1780_v29 = vadd.f32 %v1779_v33, %v1668_v56 }
 0x1ea   :  { %v2123_v17 = vpop.f32.mrf.mxu2  ;;  %v1253_v45 = vpop.permute.xlu1 %1252 }
 0x1eb   :  { %v2170_v12 = vadd.f32 %v2123_v17, %v1777_v21  ;;  %v1320_v19 = vmax.f32 %v4112_v55, %v1253_v45  ;;  %2456 = vrot.lane.b32.xlu2 %v2388_v13, %s3347_s13 }
 0x1ec   :  { %v1781_v3 = vpop.f32.mrf.mxu1 }
 0x1ed   :  { %1348 = vst.msk [vmem:[%s4887_s3 + $0x68] sm:$0xff] %vm1334_vm4, %v1320_v19  ;;  %v2429_v22 = vpop.permute.xlu0 %2428  ;;  %v1261_v32 = vpop.permute.xlu2 %1260  ;;  %v2335_v35 = vadd.f32 %v2288_v16, %v2170_v12 }
 0x1ee   :  { %v4470_v7 = vmax.f32 %v4898_v46, %v2429_v22  ;;  %v1324_v55 = vmax.f32 %v4210_v26, %v1261_v32 }
 0x1ef   :  { %v4484_v63 = vadd.f32 %v4031_v5, %v2335_v35 }
 0x1f0   :  { %1352 = vst.msk [vmem:[%s4887_s3 + $0x88] sm:$0xff] %vm1334_vm4, %v1324_v55  ;;  %2563 = vrot.lane.b32.xlu0 %v4470_v7, %s3348_s7  ;;  %v1670_v31 = vpop.f32.mrf.mxu0 }
 0x1f1   :  { %v2293_v26 = vpop.f32.mrf.mxu3  ;;  %v2389_v4 = vmax.f32 %v4484_v63, 0.0  ;;  %v1782_v2 = vadd.f32 %v1781_v3, %v1670_v31 }
 0x1f2   :  { %v2126_v52 = vpop.f32.mrf.mxu2 }
 0x1f3   :  { %v2171_v61 = vadd.f32 %v2126_v52, %v1780_v29  ;;  %2567 = vrot.lane.b32.xlu2 %v4481_v50, %s3348_s7 }
 0x1f4   :  { %v1784_v1 = vpop.f32.mrf.mxu1 }
 0x1f5   :  { %v2431_v16 = vpop.permute.xlu1 %2430  ;;  %v2336_v33 = vadd.f32 %v2291_v30, %v2171_v61 }
 0x1f6   :  { %v4490_v21 = vmax.f32 %v4900_v49, %v2431_v16 }
 0x1f7   :  { %v4499_v45 = vadd.f32 %v4031_v5, %v2336_v33 }
 0x1f8   :  { %2565 = vrot.lane.b32.xlu1 %v4490_v21, %s3348_s7  ;;  %2458 = vrot.lane.b32.xlu0 %v2389_v4, %s3347_s13  ;;  %v1673_v56 = vpop.f32.mrf.mxu0 }
 0x1f9   :  { %v2296_v19 = vpop.f32.mrf.mxu3  ;;  %v2390_v32 = vmax.f32 %v4499_v45, 0.0  ;;  %v1785_v3 = vadd.f32 %v1784_v1, %v1673_v56 }
 0x1fa   :  { %v2128_v17 = vpop.f32.mrf.mxu2 }
 0x1fb   :  { %v2172_v12 = vadd.f32 %v2128_v17, %v1782_v2  ;;  %v4901_v17 = vmax.f32 %v4206_v59, 0.0 }
 0x1fc   :  { %v1786_v8 = vpop.f32.mrf.mxu1 }
 0x1fd   :  { %v2337_v30 = vadd.f32 %v2293_v26, %v2172_v12  ;;  %v2439_v22 = vpop.permute.xlu2 %2438 }
 0x1fe   :  { %v4525_v2 = vmax.f32 %v2379_v9, %v2439_v22 }
 0x1ff   :  { %v4503_v35 = vadd.f32 %v4031_v5, %v2337_v30 }
 0x200   :  { %v1257_v46 = vpop.permute.xlu0 %1256  ;;  %2460 = vrot.lane.b32.xlu1 %v2390_v32, %s3347_s13  ;;  %v1675_v0 = vpop.f32.mrf.mxu0 }
 0x201   :  { %v1322_v55 = vmax.f32 %v4179_v57, %v1257_v46  ;;  %v2391_v29 = vmax.f32 %v4503_v35, 0.0  ;;  %v2298_v52 = vpop.f32.mrf.mxu3 }
 0x202   :  { %v2131_v31 = vpop.f32.mrf.mxu2 }
 0x203   :  { %1350 = vst.msk [vmem:[%s4887_s3 + $0x78] sm:$0xff] %vm1334_vm4, %v1322_v55  ;;  %2462 = vrot.lane.b32.xlu2 %v2391_v29, %s3347_s13  ;;  %v2173_v26 = vadd.f32 %v2131_v31, %v1785_v3 }
 0x204   :  { %v1789_v61 = vpop.f32.mrf.mxu1 }
 0x205   :  { %v1267_v16 = vpop.permute.xlu2 %1266  ;;  %v2338_v56 = vadd.f32 %v2296_v19, %v2173_v26 }
 0x206   :  { %v1327_v1 = vmax.f32 %v4314_v58, %v1267_v16  ;;  %v1787_v58 = vadd.f32 %v1786_v8, %v1675_v0 }
 0x207   :  { %v1259_v57 = vpop.permute.xlu1 %1258  ;;  %v4540_v59 = vadd.f32 %v4031_v5, %v2338_v56 }
 0x208   :  { %1355 = vst.msk [vmem:[%s4887_s3 + $0xa0] sm:$0xff] %vm1334_vm4, %v1327_v1  ;;  %v1323_v33 = vmax.f32 %v4216_v53, %v1259_v57  ;;  %v2435_v49 = vpop.permute.xlu0 %2434  ;;  %v1678_v30 = vpop.f32.mrf.mxu0 }
 0x209   :  { %v4529_v12 = vmax.f32 %v4901_v17, %v2435_v49  ;;  %v2301_v54 = vpop.f32.mrf.mxu3  ;;  %v1790_v19 = vadd.f32 %v1789_v61, %v1678_v30  ;;  %v2392_v55 = vmax.f32 %v4540_v59, 0.0 }
 0x20a   :  { %1351 = vst.msk [vmem:[%s4887_s3 + $0x80] sm:$0xff] %vm1334_vm4, %v1323_v33  ;;  %v2133_v46 = vpop.f32.mrf.mxu2 }
 0x20b   :  { %2569 = vrot.lane.b32.xlu0 %v4529_v12, %s3348_s7  ;;  %2573 = vrot.lane.b32.xlu2 %v4525_v2, %s3348_s7  ;;  %v2174_v53 = vadd.f32 %v2133_v46, %v1787_v58 }
 0x20c   :  { %v1791_v9 = vpop.f32.mrf.mxu1 }
 0x20d   :  { %v2339_v22 = vadd.f32 %v2298_v52, %v2174_v53 }
 0x20f   :  { %v2437_v8 = vpop.permute.xlu1 %2436  ;;  %v4553_v52 = vadd.f32 %v4031_v5, %v2339_v22 }
 0x210   :  { %v4544_v3 = vmax.f32 %v2378_v14, %v2437_v8  ;;  %v1680_v0 = vpop.f32.mrf.mxu0 }
 0x211   :  { %v2303_v16 = vpop.f32.mrf.mxu3  ;;  %v2393_v49 = vmax.f32 %v4553_v52, 0.0  ;;  %v1792_v30 = vadd.f32 %v1791_v9, %v1680_v0 }
 0x212   :  { %v2136_v31 = vpop.f32.mrf.mxu2  ;;  %2571 = vrot.lane.b32.xlu1 %v4544_v3, %s3348_s7 }
 0x213   :  { %v2175_v26 = vadd.f32 %v2136_v31, %v1790_v19  ;;  %2464 = vrot.lane.b32.xlu0 %v2392_v55, %s3347_s13 }
 0x214   :  { %v1794_v61 = vpop.f32.mrf.mxu1 }
 0x215   :  { %v2340_v34 = vadd.f32 %v2301_v54, %v2175_v26  ;;  %v2445_v14 = vpop.permute.xlu2 %2444 }
 0x216   :  { %v4587_v26 = vmax.f32 %v2382_v42, %v2445_v14 }
 0x217   :  { %v1263_v1 = vpop.permute.xlu0 %1262  ;;  %v4556_v57 = vadd.f32 %v4031_v5, %v2340_v34 }
 0x218   :  { %v1325_v33 = vmax.f32 %v4292_v51, %v1263_v1  ;;  %v1683_v17 = vpop.f32.mrf.mxu0 }
 0x219   :  { %v2394_v56 = vmax.f32 %v4556_v57, 0.0  ;;  %v2306_v54 = vpop.f32.mrf.mxu3  ;;  %v1795_v22 = vadd.f32 %v1794_v61, %v1683_v17 }
 0x21a   :  { %1353 = vst.msk [vmem:[%s4887_s3 + $0x90] sm:$0xff] %vm1334_vm4, %v1325_v33  ;;  %v2138_v58 = vpop.f32.mrf.mxu2  ;;  %v1265_v46 = vpop.permute.xlu1 %1264  ;;  %2466 = vrot.lane.b32.xlu1 %v2393_v49, %s3347_s13 }
 0x21b   :  { %v1326_v53 = vmax.f32 %v4301_v60, %v1265_v46  ;;  %2468 = vrot.lane.b32.xlu2 %v2394_v56, %s3347_s13  ;;  %v2176_v51 = vadd.f32 %v2138_v58, %v1792_v30 }
 0x21c   :  { %v1796_v9 = vpop.f32.mrf.mxu1 }
 0x21d   :  { %1354 = vst.msk [vmem:[%s4887_s3 + $0x98] sm:$0xff] %vm1334_vm4, %v1326_v53  ;;  %v1273_v19 = vpop.permute.xlu2 %1272  ;;  %v2341_v31 = vadd.f32 %v2303_v16, %v2176_v51 }
 0x21e   :  { %v1330_v8 = vmax.f32 %v4376_v41, %v1273_v19 }
 0x21f   :  { %v2441_v0 = vpop.permute.xlu0 %2440  ;;  %v4594_v33 = vadd.f32 %v4031_v5, %v2341_v31 }
 0x220   :  { %1358 = vst.msk [vmem:[%s4887_s3 + $0xb8] sm:$0xff] %vm1334_vm4, %v1330_v8  ;;  %v4583_v60 = vmax.f32 %v2380_v48, %v2441_v0  ;;  %v1685_v34 = vpop.f32.mrf.mxu0 }
 0x221   :  { %v2308_v16 = vpop.f32.mrf.mxu3  ;;  %v2395_v42 = vmax.f32 %v4594_v33, 0.0  ;;  %v1797_v14 = vadd.f32 %v1796_v9, %v1685_v34  ;;  %v3346_v9 = vld [vmem:[%s4886_s2] ss:$0 sm:$0xff] }
 0x222   :  { %v2141_v1 = vpop.f32.mrf.mxu2  ;;  %2575 = vrot.lane.b32.xlu0 %v4583_v60, %s3348_s7 }
 0x223   :  { %v2177_v41 = vadd.f32 %v2141_v1, %v1795_v22  ;;  %2579 = vrot.lane.b32.xlu2 %v4587_v26, %s3348_s7 }
 0x224   :  { %v1799_v61 = vpop.f32.mrf.mxu1 }
 0x225   :  { %v2443_v6 = vpop.permute.xlu1 %2442  ;;  %v2342_v48 = vadd.f32 %v2306_v54, %v2177_v41 }
 0x226   :  { %v4598_v28 = vmax.f32 %v2381_v38, %v2443_v6 }
 0x227   :  { %v4607_v58 = vadd.f32 %v4031_v5, %v2342_v48 }
 0x228   :  { %2577 = vrot.lane.b32.xlu1 %v4598_v28, %s3348_s7  ;;  %v1688_v17 = vpop.f32.mrf.mxu0 }
 0x229   :  { %v2311_v53 = vpop.f32.mrf.mxu3  ;;  %v2396_v54 = vmax.f32 %v4607_v58, 0.0  ;;  %v1800_v19 = vadd.f32 %v1799_v61, %v1688_v17 }
 0x22a   :  { %v2143_v30 = vpop.f32.mrf.mxu2  ;;  %2470 = vrot.lane.b32.xlu0 %v2395_v42, %s3347_s13 }
 0x22b   :  { %v2178_v46 = vadd.f32 %v2143_v30, %v1797_v14 }
 0x22c   :  { %v1801_v18 = vpop.f32.mrf.mxu1 }
 0x22d   :  { %v2343_v38 = vadd.f32 %v2308_v16, %v2178_v46  ;;  %v2451_v51 = vpop.permute.xlu2 %2450 }
 0x22f   :  { %v4613_v8 = vadd.f32 %v3346_v9, %v2343_v38 }
 0x230   :  { %v1269_v22 = vpop.permute.xlu0 %1268  ;;  %2472 = vrot.lane.b32.xlu1 %v2396_v54, %s3347_s13  ;;  %v1690_v31 = vpop.f32.mrf.mxu0 }
 0x231   :  { %v1328_v5 = vmax.f32 %v4361_v37, %v1269_v22  ;;  %v2397_v0 = vmax.f32 %v4613_v8, 0.0  ;;  %v2313_v41 = vpop.f32.mrf.mxu3  ;;  %v1802_v30 = vadd.f32 %v1801_v18, %v1690_v31 }
 0x232   :  { %v2146_v34 = vpop.f32.mrf.mxu2 }
 0x233   :  { %1356 = vst.msk [vmem:[%s4887_s3 + $0xa8] sm:$0xff] %vm1334_vm4, %v1328_v5  ;;  %v2179_v1 = vadd.f32 %v2146_v34, %v1800_v19  ;;  %2474 = vrot.lane.b32.xlu2 %v2397_v0, %s3347_s13 }
 0x234   :  { %v1804_v16 = vpop.f32.mrf.mxu1 }
 0x235   :  { %v2344_v61 = vadd.f32 %v2311_v53, %v2179_v1  ;;  %v1279_v6 = vpop.permute.xlu2 %1278 }
 0x236   :  { %v1333_v37 = vmax.f32 %v4430_v11, %v1279_v6 }
 0x237   :  { %v1271_v48 = vpop.permute.xlu1 %1270  ;;  %v4628_v14 = vadd.f32 %v3346_v9, %v2344_v61 }
 0x238   :  { %1361 = vst.msk [vmem:[%s4887_s3 + $0xd0] sm:$0xff] %vm1334_vm4, %v1333_v37  ;;  %v1329_v17 = vmax.f32 %v4380_v10, %v1271_v48  ;;  %v1693_v38 = vpop.f32.mrf.mxu0  ;;  %v2447_v34 = vpop.permute.xlu0 %2446 }
 0x239   :  { %v2398_v46 = vmax.f32 %v4628_v14, 0.0  ;;  %v2316_v19 = vpop.f32.mrf.mxu3  ;;  %v1805_v10 = vadd.f32 %v1804_v16, %v1693_v38  ;;  %v4647_v31 = vmax.f32 %v2383_v47, %v2447_v34 }
 0x23a   :  { %1357 = vst.msk [vmem:[%s4887_s3 + $0xb0] sm:$0xff] %vm1334_vm4, %v1329_v17  ;;  %v2148_v11 = vpop.f32.mrf.mxu2 }
 0x23b   :  { %v2180_v53 = vadd.f32 %v2148_v11, %v1802_v30  ;;  %2476 = vrot.lane.b32.xlu0 %v2398_v46, %s3347_s13 }
 0x23c   :  { %v1806_v22 = vpop.f32.mrf.mxu1 }
 0x23d   :  { %v2345_v5 = vadd.f32 %v2313_v41, %v2180_v53  ;;  %v4680_v22 = vmax.f32 %v2385_v62, %v2451_v51 }
 0x23f   :  { %v4643_v18 = vadd.f32 %v3346_v9, %v2345_v5  ;;  %v2449_v17 = vpop.permute.xlu1 %2448 }
 0x240   :  { %v1695_v61 = vpop.f32.mrf.mxu0  ;;  %v4659_v47 = vmax.f32 %v2384_v44, %v2449_v17 }
 0x241   :  { %v2399_v1 = vmax.f32 %v4643_v18, 0.0  ;;  %v2318_v41 = vpop.f32.mrf.mxu3 }
 0x242   :  { %v2151_v6 = vpop.f32.mrf.mxu2 }
 0x243   :  { %v2181_v37 = vadd.f32 %v2151_v6, %v1805_v10  ;;  %2581 = vrot.lane.b32.xlu0 %v4647_v31, %s3348_s7  ;;  %2478 = vrot.lane.b32.xlu1 %v2399_v1, %s3347_s13 }
 0x245   :  { %v2346_v16 = vadd.f32 %v2316_v19, %v2181_v37  ;;  %v2457_v48 = vpop.permute.xlu2 %2456 }
 0x246   :  { %v4700_v62 = vmax.f32 %v2388_v13, %v2457_v48 }
 0x247   :  { %v4655_v30 = vadd.f32 %v3346_v9, %v2346_v16 }
 0x248   :  { %v1275_v20 = vpop.permute.xlu0 %1274 }
 0x249   :  { %v2400_v38 = vmax.f32 %v4655_v30, 0.0  ;;  %v1331_v11 = vmax.f32 %v4417_v39, %v1275_v20 }
 0x24a   :  { %v2153_v53 = vpop.f32.mrf.mxu2 }
 0x24b   :  { %1359 = vst.msk [vmem:[%s4887_s3 + $0xc0] sm:$0xff] %vm1334_vm4, %v1331_v11  ;;  %2583 = vrot.lane.b32.xlu1 %v4659_v47, %s3348_s7  ;;  %2480 = vrot.lane.b32.xlu2 %v2400_v38, %s3347_s13 }
 0x24d   :  { %v2568_v15 = vpop.permute.xlu2 %2567 }
 0x24e   :  { %v2646_v44 = vmax.f32 %v4481_v50, %v2568_v15 }
 0x24f   :  { %v1277_v9 = vpop.permute.xlu1 %1276 }
 0x250   :  { %2983 = vst.msk [vmem:[%s4887_s3 + $0xe8] sm:$0xff] %vm1334_vm4, %v2646_v44  ;;  %v1332_v39 = vmax.f32 %v4434_v27, %v1277_v9  ;;  %v2453_v19 = vpop.permute.xlu0 %2452 }
 0x251   :  { %v4684_v5 = vmax.f32 %v2386_v25, %v2453_v19 }
 0x252   :  { %1360 = vst.msk [vmem:[%s4887_s3 + $0xc8] sm:$0xff] %vm1334_vm4, %v1332_v39 }
 0x253   :  { %2587 = vrot.lane.b32.xlu0 %v4684_v5, %s3348_s7  ;;  %2585 = vrot.lane.b32.xlu2 %v4680_v22, %s3348_s7 }
 0x257   :  { %v2455_v27 = vpop.permute.xlu1 %2454 }
 0x258   :  { %v4696_v24 = vmax.f32 %v2387_v23, %v2455_v27 }
 0x25a   :  { %2589 = vrot.lane.b32.xlu1 %v4696_v24, %s3348_s7 }
 0x25b   :  { %2591 = vrot.lane.b32.xlu2 %v4700_v62, %s3348_s7 }
 0x25d   :  { %v2463_v43 = vpop.permute.xlu2 %2462 }
 0x25e   :  { %v4708_v25 = vmax.f32 %v2391_v29, %v2463_v43 }
 0x262   :  { %v2564_v50 = vpop.permute.xlu0 %2563 }
 0x263   :  { %v2644_v40 = vmax.f32 %v4470_v7, %v2564_v50  ;;  %2597 = vrot.lane.b32.xlu2 %v4708_v25, %s3348_s7 }
 0x265   :  { %2981 = vst.msk [vmem:[%s4887_s3 + $0xd8] sm:$0xff] %vm1334_vm4, %v2644_v40  ;;  %v2574_v23 = vpop.permute.xlu2 %2573 }
 0x266   :  { %v2649_v36 = vmax.f32 %v4525_v2, %v2574_v23 }
 0x268   :  { %2986 = vst.msk [vmem:[%s4887_s3 + $0x100] sm:$0xff] %vm1334_vm4, %v2649_v36 }
 0x26a   :  { %v2566_v13 = vpop.permute.xlu1 %2565  ;;  %v2459_v35 = vpop.permute.xlu0 %2458 }
 0x26b   :  { %v2645_v7 = vmax.f32 %v4490_v21, %v2566_v13  ;;  %v4725_v29 = vmax.f32 %v2389_v4, %v2459_v35 }
 0x26d   :  { %2982 = vst.msk [vmem:[%s4887_s3 + $0xe0] sm:$0xff] %vm1334_vm4, %v2645_v7  ;;  %2593 = vrot.lane.b32.xlu0 %v4725_v29, %s3348_s7 }
 0x272   :  { %v2461_v2 = vpop.permute.xlu1 %2460 }
 0x273   :  { %v4735_v51 = vmax.f32 %v2390_v32, %v2461_v2 }
 0x275   :  { %v2469_v34 = vpop.permute.xlu2 %2468  ;;  %2595 = vrot.lane.b32.xlu1 %v4735_v51, %s3348_s7 }
 0x276   :  { %v4741_v63 = vmax.f32 %v2394_v56, %v2469_v34 }
 0x278   :  { %2603 = vrot.lane.b32.xlu2 %v4741_v63, %s3348_s7 }
 0x27d   :  { %v2570_v21 = vpop.permute.xlu0 %2569  ;;  %v2580_v4 = vpop.permute.xlu2 %2579 }
 0x27e   :  { %v2647_v10 = vmax.f32 %v4529_v12, %v2570_v21  ;;  %v2652_v61 = vmax.f32 %v4587_v26, %v2580_v4 }
 0x280   :  { %2984 = vst.msk [vmem:[%s4887_s3 + $0xf0] sm:$0xff] %vm1334_vm4, %v2647_v10 }
 0x281   :  { %2989 = vst.msk [vmem:[%s4887_s3 + $0x118] sm:$0xff] %vm1334_vm4, %v2652_v61 }
 0x284   :  { %v2572_v45 = vpop.permute.xlu1 %2571 }
 0x285   :  { %v2648_v32 = vmax.f32 %v4544_v3, %v2572_v45  ;;  %v2465_v57 = vpop.permute.xlu0 %2464 }
 0x286   :  { %v4758_v56 = vmax.f32 %v2392_v55, %v2465_v57 }
 0x287   :  { %2985 = vst.msk [vmem:[%s4887_s3 + $0xf8] sm:$0xff] %vm1334_vm4, %v2648_v32 }
 0x288   :  { %2599 = vrot.lane.b32.xlu0 %v4758_v56, %s3348_s7 }
 0x28c   :  { %v2467_v12 = vpop.permute.xlu1 %2466 }
 0x28d   :  { %v4768_v26 = vmax.f32 %v2393_v49, %v2467_v12  ;;  %v2475_v6 = vpop.permute.xlu2 %2474 }
 0x28e   :  { %v2532_v3 = vmax.f32 %v2397_v0, %v2475_v6 }
 0x28f   :  { %2601 = vrot.lane.b32.xlu1 %v4768_v26, %s3348_s7 }
 0x290   :  { %2609 = vrot.lane.b32.xlu2 %v2532_v3, %s3348_s7 }
 0x294   :  { %v2576_v59 = vpop.permute.xlu0 %2575 }
 0x295   :  { %v2650_v55 = vmax.f32 %v4583_v60, %v2576_v59 }
 0x297   :  { %2987 = vst.msk [vmem:[%s4887_s3 + $0x108] sm:$0xff] %vm1334_vm4, %v2650_v55 }
 0x29a   :  { %v2578_v52 = vpop.permute.xlu1 %2577 }
 0x29b   :  { %v2651_v49 = vmax.f32 %v4598_v28, %v2578_v52 }
 0x29c   :  { %v2471_v37 = vpop.permute.xlu0 %2470 }
 0x29d   :  { %2988 = vst.msk [vmem:[%s4887_s3 + $0x110] sm:$0xff] %vm1334_vm4, %v2651_v49  ;;  %v2530_v8 = vmax.f32 %v2395_v42, %v2471_v37 }
 0x29f   :  { %2605 = vrot.lane.b32.xlu0 %v2530_v8, %s3348_s7 }
 0x2a2   :  { %v2473_v60 = vpop.permute.xlu1 %2472 }
 0x2a3   :  { %v2531_v0 = vmax.f32 %v2396_v54, %v2473_v60 }
 0x2a5   :  { %2607 = vrot.lane.b32.xlu1 %v2531_v0, %s3348_s7  ;;  %v2481_v41 = vpop.permute.xlu2 %2480 }
 0x2a6   :  { %v2535_v28 = vmax.f32 %v2400_v38, %v2481_v41 }
 0x2a8   :  { %2615 = vrot.lane.b32.xlu2 %v2535_v28, %s3348_s7 }
 0x2ad   :  { %v2477_v16 = vpop.permute.xlu0 %2476  ;;  %v2586_v48 = vpop.permute.xlu2 %2585 }
 0x2ae   :  { %v2533_v33 = vmax.f32 %v2398_v46, %v2477_v16  ;;  %v2655_v42 = vmax.f32 %v4680_v22, %v2586_v48 }
 0x2b0   :  { %2992 = vst.msk [vmem:[%s4887_s3 + $0x130] sm:$0xff] %vm1334_vm4, %v2655_v42  ;;  %2611 = vrot.lane.b32.xlu0 %v2533_v33, %s3348_s7 }
 0x2b5   :  { %v2582_v58 = vpop.permute.xlu0 %2581  ;;  %v2479_v54 = vpop.permute.xlu1 %2478 }
 0x2b6   :  { %v2653_v17 = vmax.f32 %v4647_v31, %v2582_v58  ;;  %v2534_v30 = vmax.f32 %v2399_v1, %v2479_v54  ;;  %v2592_v20 = vpop.permute.xlu2 %2591 }
 0x2b7   :  { %v2658_v14 = vmax.f32 %v4700_v62, %v2592_v20 }
 0x2b8   :  { %2990 = vst.msk [vmem:[%s4887_s3 + $0x120] sm:$0xff] %vm1334_vm4, %v2653_v17  ;;  %2613 = vrot.lane.b32.xlu1 %v2534_v30, %s3348_s7 }
 0x2b9   :  { %2995 = vst.msk [vmem:[%s4887_s3 + $0x148] sm:$0xff] %vm1334_vm4, %v2658_v14 }
 0x2bd   :  { %v2584_v46 = vpop.permute.xlu1 %2583 }
 0x2be   :  { %v2654_v31 = vmax.f32 %v4659_v47, %v2584_v46  ;;  %v2598_v18 = vpop.permute.xlu2 %2597 }
 0x2bf   :  { %v2661_v1 = vmax.f32 %v4708_v25, %v2598_v18 }
 0x2c0   :  { %2991 = vst.msk [vmem:[%s4887_s3 + $0x128] sm:$0xff] %vm1334_vm4, %v2654_v31 }
 0x2c1   :  { %2998 = vst.msk [vmem:[%s4887_s3 + $0x160] sm:$0xff] %vm1334_vm4, %v2661_v1 }
 0x2c5   :  { %v2588_v38 = vpop.permute.xlu0 %2587 }
 0x2c6   :  { %v2656_v11 = vmax.f32 %v4684_v5, %v2588_v38 }
 0x2c8   :  { %2993 = vst.msk [vmem:[%s4887_s3 + $0x138] sm:$0xff] %vm1334_vm4, %v2656_v11 }
 0x2cc   :  { %v2590_v47 = vpop.permute.xlu1 %2589 }
 0x2cd   :  { %v2657_v53 = vmax.f32 %v4696_v24, %v2590_v47 }
 0x2cf   :  { %2994 = vst.msk [vmem:[%s4887_s3 + $0x140] sm:$0xff] %vm1334_vm4, %v2657_v53 }
 0x2d2   :  { %v2604_v15 = vpop.permute.xlu2 %2603 }
 0x2d3   :  { %v2664_v44 = vmax.f32 %v4741_v63, %v2604_v15 }
 0x2d5   :  { %3001 = vst.msk [vmem:[%s4887_s3 + $0x178] sm:$0xff] %vm1334_vm4, %v2664_v44 }
 0x2df   :  { %v2594_v9 = vpop.permute.xlu0 %2593 }
 0x2e0   :  { %v2659_v39 = vmax.f32 %v4725_v29, %v2594_v9 }
 0x2e2   :  { %2996 = vst.msk [vmem:[%s4887_s3 + $0x150] sm:$0xff] %vm1334_vm4, %v2659_v39 }
 0x2e7   :  { %v2596_v19 = vpop.permute.xlu1 %2595 }
 0x2e8   :  { %v2660_v22 = vmax.f32 %v4735_v51, %v2596_v19 }
 0x2ea   :  { %2997 = vst.msk [vmem:[%s4887_s3 + $0x158] sm:$0xff] %vm1334_vm4, %v2660_v22  ;;  %v2610_v5 = vpop.permute.xlu2 %2609 }
 0x2eb   :  { %v2667_v27 = vmax.f32 %v2532_v3, %v2610_v5 }
 0x2ed   :  { %3004 = vst.msk [vmem:[%s4887_s3 + $0x190] sm:$0xff] %vm1334_vm4, %v2667_v27 }
 0x2fa   :  { %v2600_v24 = vpop.permute.xlu0 %2599 }
 0x2fb   :  { %v2662_v62 = vmax.f32 %v4758_v56, %v2600_v24 }
 0x2fd   :  { %2999 = vst.msk [vmem:[%s4887_s3 + $0x168] sm:$0xff] %vm1334_vm4, %v2662_v62 }
 0x301   :  { %v2602_v43 = vpop.permute.xlu1 %2601 }
 0x302   :  { %v2663_v25 = vmax.f32 %v4768_v26, %v2602_v43  ;;  %v2616_v50 = vpop.permute.xlu2 %2615 }
 0x303   :  { %v2670_v40 = vmax.f32 %v2535_v28, %v2616_v50 }
 0x304   :  { %3000 = vst.msk [vmem:[%s4887_s3 + $0x170] sm:$0xff] %vm1334_vm4, %v2663_v25 }
 0x305   :  { %3007 = vst.msk [vmem:[%s4887_s3 + $0x1a8] sm:$0xff] %vm1334_vm4, %v2670_v40 }
 0x311   :  { %v2606_v23 = vpop.permute.xlu0 %2605 }
 0x312   :  { %v2665_v36 = vmax.f32 %v2530_v8, %v2606_v23 }
 0x314   :  { %3002 = vst.msk [vmem:[%s4887_s3 + $0x180] sm:$0xff] %vm1334_vm4, %v2665_v36 }
 0x317   :  { %v2608_v13 = vpop.permute.xlu1 %2607 }
 0x318   :  { %v2666_v35 = vmax.f32 %v2531_v0, %v2608_v13 }
 0x31a   :  { %3003 = vst.msk [vmem:[%s4887_s3 + $0x188] sm:$0xff] %vm1334_vm4, %v2666_v35 }
 0x322   :  { %v2612_v7 = vpop.permute.xlu0 %2611 }
 0x323   :  { %v2668_v29 = vmax.f32 %v2533_v33, %v2612_v7 }
 0x325   :  { %3005 = vst.msk [vmem:[%s4887_s3 + $0x198] sm:$0xff] %vm1334_vm4, %v2668_v29 }
 0x32a   :  { %v2614_v2 = vpop.permute.xlu1 %2613 }
 0x32b   :  { %v2669_v51 = vmax.f32 %v2534_v30, %v2614_v2 }
 0x32d   :  { %3006 = vst.msk [vmem:[%s4887_s3 + $0x1a0] sm:$0xff] %vm1334_vm4, %v2669_v51 }

// kernel: tile.18
= control target key start
LH: loop header
LB: loop body
LE: loop exit
PB: predicated region body
PF: predicated region fallthrough
CT: control target
= control target key end

     0   :  { %s22_s0 = inlined_call_operand.vmem [shape: f32[16], index: 0, kind: input, shape index: {}]   ;;  %s23_s1 = inlined_call_operand.vmem [shape: f32[4,16], index: 1, kind: output, shape index: {}]  }
   0x1   :  { %v4_v0 = vld [vmem:[%s22_s0] ss:$0 sm:$0xff] }
   0x2   :  { %5 = vst [vmem:[%s23_s1] sm:$0xf] %v4_v0 }

// kernel: tile.19
= control target key start
LH: loop header
LB: loop body
LE: loop exit
PB: predicated region body
PF: predicated region fallthrough
CT: control target
= control target key end

     0   :  { %s37_s8 = smov 16   ;;  %s38_s9 = smov 32   ;;  %vm7_vm0 = vcmask 130048   ;;  %vm13_vm1 = vcmask 523648   ;;  %vm19_vm2 = vcmask 392448   ;;  %vm25_vm3 = vcmask 261248   ;;  %s55_s0 = inlined_call_operand.vmem [shape: f32[4,16], index: 0, kind: input, shape index: {}]   ;;  %s56_s1 = inlined_call_operand.vmem [shape: f32[1,64], index: 1, kind: output, shape index: {}]  }
   0x1   :  { %v4_v0 = vld [vmem:[%s55_s0] sm:$0xf]  ;;  %s36_s0 = smov 48  }
   0x2   :  { %5 = vst [vmem:[#allocation1] sm:$0xf] %v4_v0 }
   0x9   :  { %v10_v1 = vld [vmem:[#allocation1 + $0x3] sm:$0x1]   ;;  %v22_v2 = vld [vmem:[#allocation1 + $0x1] sm:$0x1]   ;;  %v16_v3 = vld [vmem:[#allocation1 + $0x2] sm:$0x1]  }
   0xa   :  { %11 = vrot.lane.b32.xlu0 %v10_v1, %s36_s0  ;;  %23 = vrot.lane.b32.xlu1 %v22_v2, %s37_s8  ;;  %v6_v4 = vld [vmem:[#allocation1] sm:$0x1]  }
   0xb   :  { %8 = vst.msk [vmem:[#allocation0] sm:$0x1] %vm7_vm0, %v6_v4  }
  0x12   :  { %17 = vrot.lane.b32.xlu0 %v16_v3, %s38_s9 }
  0x7c   :  { %v12_v5 = vpop.permute.xlu0 %11   ;;  %v24_v6 = vpop.permute.xlu1 %23  }
  0x7d   :  { %14 = vst.msk [vmem:[#allocation0] sm:$0x1] %vm13_vm1, %v12_v5  }
  0x84   :  { %v18_v7 = vpop.permute.xlu0 %17  }
  0x85   :  { %20 = vst.msk [vmem:[#allocation0] sm:$0x1] %vm19_vm2, %v18_v7  }
  0x86   :  { %26 = vst.msk [vmem:[#allocation0] sm:$0x1] %vm25_vm3, %v24_v6  }
  0x8d   :  { %v29_v8 = vld [vmem:[#allocation0] sm:$0x1] }
  0x8e   :  { %32 = vst [vmem:[%s56_s1] sm:$0x1] %v29_v8 }

// kernel: cnn_forward.4
= control target key start
LH: loop header
LB: loop body
LE: loop exit
PB: predicated region body
PF: predicated region fallthrough
CT: control target
= control target key end

     0   :  { %vm76_vm0 = vsmask.f32 7424  ;;  %s1804_s28 = smov 112   ;;  %vm630_vm1 = vcmask 130048   ;;  %s2314_s1 = inlined_call_operand.vmem [shape: bf16[4,128,64], index: 1, kind: input, shape index: {}]   ;;  %s2315_s0 = inlined_call_operand.vmem [shape: bf16[2,72,128], index: 0, kind: input, shape index: {}]   ;;  %s2316_s2 = inlined_call_operand.vmem [shape: f32[1,64], index: 2, kind: input, shape index: {}]   ;;  %s2317_s3 = inlined_call_operand.vmem [shape: f32[2,56,16], index: 3, kind: output, shape index: {}]  }
   0x1   :  { %v1682_v0 = vld [vmem:[%s2314_s1 + $0x78] sm:$0xff]  ;;  %v1681_v4 = vld [vmem:[%s2314_s1 + $0x70] sm:$0xff]  ;;  %v1680_v8 = vld [vmem:[%s2314_s1 + $0x68] sm:$0xff] }
   0x2   :  { %v1674_v1 = vld [vmem:[%s2314_s1 + $0x38] sm:$0xff]  ;;  %160 = vmatpush.bf16.msra.mxu0 %v1682_v0  ;;  %v1673_v5 = vld [vmem:[%s2314_s1 + $0x30] sm:$0xff]  ;;  %v1672_v9 = vld [vmem:[%s2314_s1 + $0x28] sm:$0xff] }
   0x3   :  { %v1690_v2 = vld [vmem:[%s2314_s1 + $0xb8] sm:$0xff]  ;;  %241 = vmatpush.bf16.msra.mxu1 %v1674_v1  ;;  %v1689_v6 = vld [vmem:[%s2314_s1 + $0xb0] sm:$0xff]  ;;  %v1688_v10 = vld [vmem:[%s2314_s1 + $0xa8] sm:$0xff] }
   0x4   :  { %v1702_v3 = vld [vmem:[%s2314_s1 + $0xf8] sm:$0xff]  ;;  %345 = vmatpush.bf16.msra.mxu2 %v1690_v2  ;;  %v1701_v7 = vld [vmem:[%s2314_s1 + $0xf0] sm:$0xff]  ;;  %v1700_v11 = vld [vmem:[%s2314_s1 + $0xe8] sm:$0xff] }
   0x5   :  { %508 = vmatpush.bf16.msra.mxu3 %v1702_v3  ;;  %v1679_v12 = vld [vmem:[%s2314_s1 + $0x60] sm:$0xff]  ;;  %v1678_v16 = vld [vmem:[%s2314_s1 + $0x58] sm:$0xff]  ;;  %v1677_v22 = vld [vmem:[%s2314_s1 + $0x50] sm:$0xff] }
   0x6   :  { %161 = vmatpush.bf16.msra.mxu0 %v1681_v4  ;;  %v1671_v13 = vld [vmem:[%s2314_s1 + $0x20] sm:$0xff]  ;;  %v1670_v17 = vld [vmem:[%s2314_s1 + $0x18] sm:$0xff]  ;;  %v1669_v23 = vld [vmem:[%s2314_s1 + $0x10] sm:$0xff] }
   0x7   :  { %242 = vmatpush.bf16.msra.mxu1 %v1673_v5  ;;  %v1687_v14 = vld [vmem:[%s2314_s1 + $0xa0] sm:$0xff]  ;;  %v1686_v18 = vld [vmem:[%s2314_s1 + $0x98] sm:$0xff]  ;;  %v1685_v24 = vld [vmem:[%s2314_s1 + $0x90] sm:$0xff] }
   0x8   :  { %346 = vmatpush.bf16.msra.mxu2 %v1689_v6  ;;  %v1699_v15 = vld [vmem:[%s2314_s1 + $0xe0] sm:$0xff]  ;;  %v1698_v19 = vld [vmem:[%s2314_s1 + $0xd8] sm:$0xff]  ;;  %v1697_v26 = vld [vmem:[%s2314_s1 + $0xd0] sm:$0xff] }
   0x9   :  { %509 = vmatpush.bf16.msra.mxu3 %v1701_v7  ;;  %v1740_v20 = vld [vmem:[%s2315_s0] sm:$0xff]   ;;  %v1907_v27 = vld [vmem:[%s2315_s0 + $0x8] sm:$0xff]   ;;  %v1726_v48 = vld [vmem:[%s2314_s1 + $0xb8] sm:$0xff] }
   0xa   :  { %162 = vmatpush.bf16.msra.mxu0 %v1680_v8  ;;  %v1691_v21 = vld [vmem:[%s2315_s0 + $0x4] sm:$0xff]  ;;  %v80_v25 = vshll.u32 %v1740_v20, 16  ;;  %v1912_v28 = vld [vmem:[%s2315_s0 + $0xc] sm:$0xff]  ;;  %v78_v32 = vshrl.u32 %v1740_v20, 16  ;;  %v85_v34 = vshll.u32 %v1907_v27, 16  ;;  %v1738_v49 = vld [vmem:[%s2314_s1 + $0xf8] sm:$0xff] }
   0xb   :  { %243 = vmatpush.bf16.msra.mxu1 %v1672_v9  ;;  %v428_v29 = vshll.u32 %v1691_v21, 16  ;;  %v1676_v30 = vld [vmem:[%s2314_s1 + $0x48] sm:$0xff]  ;;  %v426_v37 = vshrl.u32 %v1691_v21, 16  ;;  %v433_v39 = vshll.u32 %v1912_v28, 16  ;;  %v1675_v40 = vld [vmem:[%s2314_s1 + $0x40] sm:$0xff]  ;;  %v1718_v53 = vld [vmem:[%s2314_s1 + $0x78] sm:$0xff] }
   0xc   :  { %347 = vmatpush.bf16.msra.mxu2 %v1688_v10  ;;  %v1668_v31 = vld [vmem:[%s2314_s1 + $0x8] sm:$0xff]  ;;  %v82_v33 = vrot.slane %v80_v25, 1  ;;  %v1667_v41 = vld [vmem:[%s2314_s1] sm:$0xff]  ;;  %v87_v43 = vrot.slane %v85_v34, 1  ;;  %v1710_v54 = vld [vmem:[%s2314_s1 + $0x38] sm:$0xff]  ;;  %v89_v63 = vshrl.u32 %v1907_v27, 16 }
   0xd   :  { %510 = vmatpush.bf16.msra.mxu3 %v1700_v11  ;;  %v1684_v35 = vld [vmem:[%s2314_s1 + $0x88] sm:$0xff]  ;;  %v430_v38 = vrot.slane %v428_v29, 1  ;;  %v1683_v44 = vld [vmem:[%s2314_s1 + $0x80] sm:$0xff]  ;;  %v435_v47 = vrot.slane %v433_v39, 1  ;;  %v1725_v55 = vld [vmem:[%s2314_s1 + $0xb0] sm:$0xff]  ;;  %v437_v1 = vshrl.u32 %v1912_v28, 16 }
   0xe   :  { %163 = vmatpush.bf16.msra.mxu0 %v1679_v12  ;;  %v1696_v36 = vld [vmem:[%s2314_s1 + $0xc8] sm:$0xff]  ;;  %v83_v42 = vor.u32 %v82_v33, %v78_v32  ;;  %v1695_v45 = vld [vmem:[%s2314_s1 + $0xc0] sm:$0xff]  ;;  %v1737_v56 = vld [vmem:[%s2314_s1 + $0xf0] sm:$0xff]  ;;  %v91_v7 = vor.u32 %v89_v63, %v87_v43 }
   0xf   :  { %244 = vmatpush.bf16.msra.mxu1 %v1671_v13  ;;  %v431_v46 = vor.u32 %v430_v38, %v426_v37  ;;  %v1780_v51 = vld [vmem:[%s2315_s0 + $0x4] sm:$0xff]   ;;  %v1717_v57 = vld [vmem:[%s2314_s1 + $0x70] sm:$0xff]  ;;  %v439_v10 = vor.u32 %v437_v1, %v435_v47  ;;  %v2010_v13 = vld [vmem:[%s2315_s0 + $0x18] sm:$0xff]  }
  0x10   :  { %348 = vmatpush.bf16.msra.mxu2 %v1687_v14  ;;  %v88_v50 = vsel %vm76_vm0, %v83_v42, %v87_v43  ;;  %v1709_v58 = vld [vmem:[%s2314_s1 + $0x30] sm:$0xff]  ;;  %v1724_v61 = vld [vmem:[%s2314_s1 + $0xa8] sm:$0xff]  ;;  %v1723_v5 = vld [vmem:[%s2314_s1 + $0xa0] sm:$0xff] }
  0x11   :  { %511 = vmatpush.bf16.msra.mxu3 %v1699_v15  ;;  %v436_v52 = vsel %vm76_vm0, %v431_v46, %v435_v47  ;;  %v1972_v59 = vld [vmem:[%s2315_s0 + $0x10] sm:$0xff]   ;;  %v1736_v62 = vld [vmem:[%s2314_s1 + $0xe8] sm:$0xff]  ;;  %v1735_v6 = vld [vmem:[%s2314_s1 + $0xe0] sm:$0xff] }
  0x12   :  { %164 = vmatpush.bf16.msra.mxu0 %v1678_v16  ;;  %v1977_v60 = vld [vmem:[%s2315_s0 + $0x14] sm:$0xff]  ;;  %v93_v0 = vshll.u32 %v1972_v59, 16  ;;  %v1716_v3 = vld [vmem:[%s2314_s1 + $0x68] sm:$0xff]  ;;  %v1715_v9 = vld [vmem:[%s2314_s1 + $0x60] sm:$0xff]  ;;  %v97_v34 = vshrl.u32 %v1972_v59, 16 }
  0x13   :  { %245 = vmatpush.bf16.msra.mxu1 %v1670_v17  ;;  %v441_v2 = vshll.u32 %v1977_v60, 16  ;;  %v1708_v4 = vld [vmem:[%s2314_s1 + $0x28] sm:$0xff]  ;;  %v1707_v12 = vld [vmem:[%s2314_s1 + $0x20] sm:$0xff]  ;;  %v38_v14 = vld [vmem:[%s2315_s0 + $0x1c] sm:$0x1] }
  0x14   :  { %349 = vmatpush.bf16.msra.mxu2 %v1686_v18  ;;  %v95_v8 = vrot.slane %v93_v0, 1  ;;  %v1722_v15 = vld [vmem:[%s2314_s1 + $0x98] sm:$0xff]  ;;  %v1781_v18 = vld [vmem:[%s2315_s0 + $0xc] sm:$0xff]   ;;  %v1694_v25 = vld [vmem:[%s2315_s0 + $0x1c] sm:$0x10] }
  0x15   :  { %512 = vmatpush.bf16.msra.mxu3 %v1698_v19  ;;  %v443_v11 = vrot.slane %v441_v2, 1  ;;  %v1734_v16 = vld [vmem:[%s2314_s1 + $0xd8] sm:$0xff]  ;;  %v2026_v19 = vunpack.c.l.b16 %v2010_v13  ;;  %v1733_v28 = vld [vmem:[%s2314_s1 + $0xd0] sm:$0xff]  ;;  %v1732_v33 = vld [vmem:[%s2314_s1 + $0xc8] sm:$0xff] }
  0x16   :  { %165 = vmatpush.bf16.msra.mxu0 %v1677_v22  ;;  %v96_v17 = vsel %vm76_vm0, %v91_v7, %v95_v8  ;;  %v1417_v22 = vld [vmem:[%s2315_s0 + $0x1c] sm:$0xf]  ;;  %v1705_v32 = vld [vmem:[%s2314_s1 + $0x10] sm:$0xff]  ;;  %v1712_v38 = vld [vmem:[%s2314_s1 + $0x48] sm:$0xff]  ;;  %v99_v42 = vor.u32 %v97_v34, %v95_v8 }
  0x17   :  { %246 = vmatpush.bf16.msra.mxu1 %v1669_v23  ;;  %v444_v21 = vsel %vm76_vm0, %v439_v10, %v443_v11  ;;  %v1714_v23 = vld [vmem:[%s2314_s1 + $0x58] sm:$0xff]  ;;  %v1704_v39 = vld [vmem:[%s2314_s1 + $0x8] sm:$0xff]  ;;  %v1711_v47 = vld [vmem:[%s2314_s1 + $0x40] sm:$0xff] }
  0x18   :  { %350 = vmatpush.bf16.msra.mxu2 %v1685_v24  ;;  %v1706_v24 = vld [vmem:[%s2314_s1 + $0x18] sm:$0xff]  ;;  %v1728_v63 = vld [vmem:[%s2315_s0 + $0x30] sm:$0xff] }
  0x19   :  { %513 = vmatpush.bf16.msra.mxu3 %v1697_v26  ;;  %v1721_v26 = vld [vmem:[%s2314_s1 + $0x90] sm:$0xff] }
  0x1a   :  { %166 = vmatpush.bf16.msra.mxu0 %v1676_v30  ;;  %v1418_v30 = vor.u32 %v1694_v25, %v1417_v22  ;;  %v1458_v25 = vld [vmem:[%s2315_s0 + $0x40] sm:$0x1] }
  0x1b   :  { %247 = vmatpush.bf16.msra.mxu1 %v1668_v31  ;;  %v1713_v31 = vld [vmem:[%s2314_s1 + $0x50] sm:$0xff] }
  0x1c   :  { %351 = vmatpush.bf16.msra.mxu2 %v1684_v35  ;;  %v449_v37 = vshll.u32 %v1418_v30, 16 }
  0x1d   :  { %514 = vmatpush.bf16.msra.mxu3 %v1696_v36  ;;  %v445_v36 = vshrl.u32 %v1977_v60, 16  ;;  %v1797_v60 = vld [vmem:[%s2315_s0 + $0x24] sm:$0xff]  }
  0x1e   :  { %167 = vmatpush.bf16.msra.mxu0 %v1675_v40  ;;  %v1719_v40 = vld [vmem:[%s2314_s1 + $0x80] sm:$0xff]  ;;  %v451_v46 = vrot.slane %v449_v37, 1  ;;  %v700_v1 = vshrl.u32 %v1797_v60, 16 }
  0x1f   :  { %248 = vmatpush.bf16.msra.mxu1 %v1667_v41  ;;  %v1731_v41 = vld [vmem:[%s2314_s1 + $0xc0] sm:$0xff] }
  0x20   :  { %352 = vmatpush.bf16.msra.mxu2 %v1683_v44  ;;  %v1750_v44 = vunpack.c.h.b16 %v1972_v59 }
  0x21   :  { %515 = vmatpush.bf16.msra.mxu3 %v1695_v45  ;;  %168 = vmatmul.bf16.vlgmr.msra.gmra.mxu0 %v88_v50  ;;  %v447_v45 = vor.u32 %v445_v36, %v443_v11 }
  0x22   :  { %249 = vmatmul.bf16.vlgmr.msra.gmra.mxu1 %v1740_v20  ;;  %782 = vmatpush.bf16.msrb.mxu0 %v1718_v53  ;;  %v71_v20 = vunpack.c.l.b16 %v38_v14  ;;  %v291_v50 = vpack.c.b16 %v2026_v19, %v1750_v44  ;;  %v288_v53 = vunpack.c.h.b16 %v2010_v13  ;;  %v1800_v14 = vld [vmem:[%s2315_s0 + $0x34] sm:$0xff]  }
  0x23   :  { %353 = vmatmul.bf16.vlgmr.msra.gmra.mxu2 %v1780_v51  ;;  %863 = vmatpush.bf16.msrb.mxu1 %v1710_v54  ;;  %v452_v51 = vsel %vm76_vm0, %v447_v45, %v451_v46  ;;  %v453_v54 = vshrl.u32 %v1418_v30, 16  ;;  %v1776_v30 = vld [vmem:[%s2315_s0 + $0x30] sm:$0xff]   ;;  %v1539_v45 = vld [vmem:[%s2315_s0 + $0x40] sm:$0xf] }
  0x24   :  { %966 = vmatpush.bf16.msrb.mxu2 %v1726_v48  ;;  %516 = vmatmul.bf16.vlgmr.msra.gmra.mxu3 %v436_v52  ;;  %v75_v29 = vpack.c.b16 %v71_v20, %v2026_v19  ;;  %v1703_v48 = vld [vmem:[%s2314_s1] sm:$0xff] }
  0x25   :  { %1128 = vmatpush.bf16.msrb.mxu3 %v1738_v49 }
  0x26   :  { %783 = vmatpush.bf16.msrb.mxu0 %v1717_v57  ;;  %v101_v35 = vshll.u32 %v75_v29, 16  ;;  %v105_v52 = vshrl.u32 %v75_v29, 16  ;;  %v292_v57 = vpack.c.b16 %v288_v53, %v288_v53  ;;  %v694_v29 = vunpack.c.l.b16 %v1458_v25 }
  0x27   :  { %864 = vmatpush.bf16.msrb.mxu1 %v1709_v58  ;;  %v455_v58 = vor.u32 %v453_v54, %v451_v46 }
  0x28   :  { %967 = vmatpush.bf16.msrb.mxu2 %v1725_v55  ;;  %v103_v43 = vrot.slane %v101_v35, 1  ;;  %v719_v35 = vshrl.u32 %v1800_v14, 16 }
  0x29   :  { %1129 = vmatpush.bf16.msrb.mxu3 %v1737_v56  ;;  %v188_v56 = vpack.c.b16 %v2026_v19, %v2026_v19 }
  0x2a   :  { %784 = vmatpush.bf16.msrb.mxu0 %v1716_v3  ;;  %v104_v49 = vsel %vm76_vm0, %v99_v42, %v103_v43  ;;  %v107_v55 = vor.u32 %v105_v52, %v103_v43 }
  0x2b   :  { %865 = vmatpush.bf16.msrb.mxu1 %v1708_v4 }
  0x2c   :  { %968 = vmatpush.bf16.msrb.mxu2 %v1724_v61  ;;  %v1799_v61 = vld [vmem:[%s2315_s0 + $0x2c] sm:$0xff]  }
  0x2d   :  { %1130 = vmatpush.bf16.msrb.mxu3 %v1736_v62  ;;  %v702_v62 = vshll.u32 %v1797_v60, 16  ;;  %v707_v3 = vshll.u32 %v1799_v61, 16 }
  0x2e   :  { %785 = vmatpush.bf16.msrb.mxu0 %v1715_v9 }
  0x2f   :  { %866 = vmatpush.bf16.msrb.mxu1 %v1707_v12  ;;  %v704_v2 = vrot.slane %v702_v62, 1  ;;  %v709_v8 = vrot.slane %v707_v3, 1  ;;  %v1775_v12 = vld [vmem:[%s2315_s0 + $0x28] sm:$0xff]  }
  0x30   :  { %969 = vmatpush.bf16.msrb.mxu2 %v1723_v5 }
  0x31   :  { %1131 = vmatpush.bf16.msrb.mxu3 %v1735_v6  ;;  %173 = vmatmul.bf16.gmra.mxu0 %v96_v17  ;;  %v1053_v6 = vshll.u32 %v1728_v63, 16  ;;  %v705_v7 = vor.u32 %v704_v2, %v700_v1  ;;  %v715_v17 = vshll.u32 %v1800_v14, 16 }
  0x32   :  { %254 = vmatmul.bf16.gmra.mxu1 %v1907_v27  ;;  %786 = vmatpush.bf16.msrb.mxu0 %v1714_v23  ;;  %v1720_v27 = vld [vmem:[%s2314_s1 + $0x88] sm:$0xff] }
  0x33   :  { %358 = vmatmul.bf16.gmra.mxu2 %v1781_v18  ;;  %867 = vmatpush.bf16.msrb.mxu1 %v1706_v24  ;;  %v1055_v10 = vrot.slane %v1053_v6, 1  ;;  %v710_v11 = vsel %vm76_vm0, %v705_v7, %v709_v8  ;;  %v1057_v18 = vshrl.u32 %v1728_v63, 16  ;;  %v1777_v24 = vld [vmem:[%s2315_s0 + $0x38] sm:$0xff]  }
  0x34   :  { %970 = vmatpush.bf16.msrb.mxu2 %v1722_v15  ;;  %521 = vmatmul.bf16.gmra.mxu3 %v444_v21  ;;  %v1729_v15 = vld [vmem:[%s2315_s0 + $0x38] sm:$0xff]  ;;  %v717_v21 = vrot.slane %v715_v17, 1 }
  0x35   :  { %1132 = vmatpush.bf16.msrb.mxu3 %v1734_v16  ;;  %v711_v16 = vshrl.u32 %v1799_v61, 16  ;;  %v1061_v19 = vshll.u32 %v1729_v15, 16  ;;  %v1059_v22 = vor.u32 %v1057_v18, %v1055_v10  ;;  %v1065_v37 = vshrl.u32 %v1729_v15, 16 }
  0x36   :  { %787 = vmatpush.bf16.msrb.mxu0 %v1713_v31 }
  0x37   :  { %868 = vmatpush.bf16.msrb.mxu1 %v1705_v32  ;;  %v713_v20 = vor.u32 %v711_v16, %v709_v8  ;;  %v1063_v23 = vrot.slane %v1061_v19, 1  ;;  %v1626_v32 = vld [vmem:[%s2315_s0 + $0x40] sm:$0xf] }
  0x38   :  { %971 = vmatpush.bf16.msrb.mxu2 %v1721_v26 }
  0x39   :  { %1133 = vmatpush.bf16.msrb.mxu3 %v1733_v28  ;;  %v718_v26 = vsel %vm76_vm0, %v713_v20, %v717_v21  ;;  %v1762_v28 = vunpack.c.h.b16 %v1777_v24  ;;  %v1064_v31 = vsel %vm76_vm0, %v1059_v22, %v1063_v23 }
  0x3a   :  { %788 = vmatpush.bf16.msrb.mxu0 %v1712_v38 }
  0x3b   :  { %869 = vmatpush.bf16.msrb.mxu1 %v1704_v39  ;;  %v721_v39 = vor.u32 %v719_v35, %v717_v21 }
  0x3c   :  { %972 = vmatpush.bf16.msrb.mxu2 %v1720_v27  ;;  %v1730_v27 = vld [vmem:[%s2315_s0 + $0x40] sm:$0x10] }
  0x3d   :  { %1134 = vmatpush.bf16.msrb.mxu3 %v1732_v33  ;;  %v698_v33 = vpack.c.b16 %v694_v29, %v1762_v28  ;;  %v1627_v34 = vor.u32 %v1730_v27, %v1626_v32 }
  0x3e   :  { %789 = vmatpush.bf16.msrb.mxu0 %v1711_v47  ;;  %v909_v47 = vunpack.c.l.b16 %v1539_v45 }
  0x3f   :  { %870 = vmatpush.bf16.msrb.mxu1 %v1703_v48  ;;  %v723_v36 = vshll.u32 %v698_v33, 16  ;;  %v1069_v38 = vshll.u32 %v1627_v34, 16  ;;  %v727_v46 = vshrl.u32 %v698_v33, 16  ;;  %v1073_v48 = vshrl.u32 %v1627_v34, 16 }
  0x40   :  { %973 = vmatpush.bf16.msrb.mxu2 %v1719_v40 }
  0x41   :  { %1135 = vmatpush.bf16.msrb.mxu3 %v1731_v41  ;;  %178 = vmatmul.bf16.gmra.mxu0 %v104_v49  ;;  %v725_v40 = vrot.slane %v723_v36, 1  ;;  %v1067_v41 = vor.u32 %v1065_v37, %v1063_v23  ;;  %v1071_v42 = vrot.slane %v1069_v38, 1 }
  0x42   :  { %259 = vmatmul.bf16.gmra.mxu1 %v1972_v59  ;;  %v1727_v59 = vld [vmem:[%s2315_s0 + $0x28] sm:$0xff] }
  0x43   :  { %363 = vmatmul.bf16.gmra.mxu2 %v291_v50  ;;  %v1048_v0 = vshll.u32 %v1727_v59, 16  ;;  %v1046_v4 = vshrl.u32 %v1727_v59, 16  ;;  %v726_v43 = vsel %vm76_vm0, %v721_v39, %v725_v40  ;;  %v1072_v44 = vsel %vm76_vm0, %v1067_v41, %v1071_v42 }
  0x44   :  { %526 = vmatmul.bf16.gmra.mxu3 %v452_v51  ;;  %v729_v49 = vor.u32 %v727_v46, %v725_v40  ;;  %v810_v50 = vpack.c.b16 %v1762_v28, %v1762_v28  ;;  %v913_v51 = vpack.c.b16 %v909_v47, %v909_v47  ;;  %v1075_v52 = vor.u32 %v1073_v48, %v1071_v42 }
  0x45   :  { %v1050_v5 = vrot.slane %v1048_v0, 1 }
  0x47   :  { %v1051_v9 = vor.u32 %v1050_v5, %v1046_v4 }
  0x49   :  { %v1056_v13 = vsel %vm76_vm0, %v1051_v9, %v1055_v10 }
  0x51   :  { %183 = vmatmul.bf16.gmra.mxu0 %v107_v55 }
  0x52   :  { %264 = vmatmul.bf16.gmra.mxu1 %v188_v56 }
  0x53   :  { %368 = vmatmul.bf16.gmra.mxu2 %v292_v57 }
  0x54   :  { %531 = vmatmul.bf16.gmra.mxu3 %v455_v58 }
  0x61   :  { %790 = vmatmul.bf16.vlgmr.msrb.gmra.mxu0 %v710_v11 }
  0x62   :  { %871 = vmatmul.bf16.vlgmr.msrb.gmra.mxu1 %v1797_v60 }
  0x63   :  { %974 = vmatmul.bf16.vlgmr.msrb.gmra.mxu2 %v1775_v12 }
  0x64   :  { %1136 = vmatmul.bf16.vlgmr.msrb.gmra.mxu3 %v1056_v13 }
  0x71   :  { %795 = vmatmul.bf16.gmra.mxu0 %v718_v26 }
  0x72   :  { %876 = vmatmul.bf16.gmra.mxu1 %v1799_v61  ;;  %v2137_v61 = vld [vmem:[%s2316_s2] ss:$0 sm:$0xff]  ;;  %s1805_s2 = smov 96  }
  0x73   :  { %979 = vmatmul.bf16.gmra.mxu2 %v1776_v30 }
  0x74   :  { %1141 = vmatmul.bf16.gmra.mxu3 %v1064_v31 }
  0x81   :  { %800 = vmatmul.bf16.gmra.mxu0 %v726_v43 }
  0x82   :  { %881 = vmatmul.bf16.gmra.mxu1 %v1800_v14 }
  0x83   :  { %984 = vmatmul.bf16.gmra.mxu2 %v1777_v24 }
  0x84   :  { %1146 = vmatmul.bf16.gmra.mxu3 %v1072_v44 }
  0x91   :  { %805 = vmatmul.bf16.gmra.mxu0 %v729_v49 }
  0x92   :  { %886 = vmatmul.bf16.gmra.mxu1 %v810_v50 }
  0x93   :  { %989 = vmatmul.bf16.gmra.mxu2 %v913_v51 }
  0x94   :  { %1151 = vmatmul.bf16.gmra.mxu3 %v1075_v52 }
  0x9e   :  { %v169_v53 = vpop.f32.mrf.mxu0 }
  0x9f   :  { %v250_v54 = vpop.f32.mrf.mxu1 }
  0xa0   :  { %v251_v55 = vadd.f32 %v250_v54, %v169_v53 }
  0xa6   :  { %v354_v56 = vpop.f32.mrf.mxu2  ;;  %v171_v60 = vpop.f32.mrf.mxu0 }
  0xa7   :  { %v517_v57 = vpop.f32.mrf.mxu3  ;;  %v373_v58 = vadd.f32 %v354_v56, %v251_v55  ;;  %v252_v59 = vpop.f32.mrf.mxu1 }
  0xa8   :  { %v253_v0 = vadd.f32 %v252_v59, %v171_v60 }
  0xa9   :  { %v536_v62 = vadd.f32 %v517_v57, %v373_v58 }
  0xab   :  { %v2140_v63 = vadd.f32 %v2137_v61, %v536_v62 }
  0xad   :  { %v553_v1 = vmax.f32 %v2140_v63, 0.0 }
  0xae   :  { %v356_v2 = vpop.f32.mrf.mxu2  ;;  %v174_v5 = vpop.f32.mrf.mxu0 }
  0xaf   :  { %v519_v3 = vpop.f32.mrf.mxu3  ;;  %v374_v4 = vadd.f32 %v356_v2, %v253_v0  ;;  %567 = vrot.lane.b32.xlu0 %v553_v1, %s1804_s28  ;;  %v255_v6 = vpop.f32.mrf.mxu1 }
  0xb0   :  { %v256_v9 = vadd.f32 %v255_v6, %v174_v5 }
  0xb1   :  { %v537_v7 = vadd.f32 %v519_v3, %v374_v4 }
  0xb3   :  { %v2147_v8 = vadd.f32 %v2137_v61, %v537_v7 }
  0xb5   :  { %v554_v10 = vmax.f32 %v2147_v8, 0.0 }
  0xb6   :  { %v359_v11 = vpop.f32.mrf.mxu2  ;;  %v176_v14 = vpop.f32.mrf.mxu0 }
  0xb7   :  { %v522_v12 = vpop.f32.mrf.mxu3  ;;  %v375_v13 = vadd.f32 %v359_v11, %v256_v9  ;;  %569 = vrot.lane.b32.xlu0 %v554_v10, %s1804_s28  ;;  %v257_v15 = vpop.f32.mrf.mxu1 }
  0xb8   :  { %v258_v18 = vadd.f32 %v257_v15, %v176_v14 }
  0xb9   :  { %v538_v16 = vadd.f32 %v522_v12, %v375_v13 }
  0xbb   :  { %v2154_v17 = vadd.f32 %v2137_v61, %v538_v16 }
  0xbd   :  { %v555_v19 = vmax.f32 %v2154_v17, 0.0 }
  0xbe   :  { %v361_v20 = vpop.f32.mrf.mxu2  ;;  %v179_v23 = vpop.f32.mrf.mxu0 }
  0xbf   :  { %v524_v21 = vpop.f32.mrf.mxu3  ;;  %v376_v22 = vadd.f32 %v361_v20, %v258_v18  ;;  %571 = vrot.lane.b32.xlu1 %v555_v19, %s1804_s28  ;;  %v260_v24 = vpop.f32.mrf.mxu1 }
  0xc0   :  { %v261_v28 = vadd.f32 %v260_v24, %v179_v23 }
  0xc1   :  { %v539_v25 = vadd.f32 %v524_v21, %v376_v22 }
  0xc3   :  { %v2161_v26 = vadd.f32 %v2137_v61, %v539_v25 }
  0xc5   :  { %v556_v29 = vmax.f32 %v2161_v26, 0.0 }
  0xc6   :  { %v364_v30 = vpop.f32.mrf.mxu2  ;;  %v181_v27 = vpop.f32.mrf.mxu0 }
  0xc7   :  { %v527_v31 = vpop.f32.mrf.mxu3  ;;  %v377_v32 = vadd.f32 %v364_v30, %v261_v28  ;;  %573 = vrot.lane.b32.xlu1 %v556_v29, %s1804_s28  ;;  %v262_v33 = vpop.f32.mrf.mxu1 }
  0xc8   :  { %v263_v36 = vadd.f32 %v262_v33, %v181_v27 }
  0xc9   :  { %v540_v34 = vadd.f32 %v527_v31, %v377_v32 }
  0xcb   :  { %v2168_v35 = vadd.f32 %v2137_v61, %v540_v34 }
  0xcd   :  { %v557_v37 = vmax.f32 %v2168_v35, 0.0 }
  0xce   :  { %v366_v38 = vpop.f32.mrf.mxu2  ;;  %v184_v41 = vpop.f32.mrf.mxu0 }
  0xcf   :  { %v529_v39 = vpop.f32.mrf.mxu3  ;;  %v378_v40 = vadd.f32 %v366_v38, %v263_v36  ;;  %575 = vrot.lane.b32.xlu2 %v557_v37, %s1804_s28  ;;  %v265_v42 = vpop.f32.mrf.mxu1 }
  0xd0   :  { %v266_v45 = vadd.f32 %v265_v42, %v184_v41 }
  0xd1   :  { %v541_v43 = vadd.f32 %v529_v39, %v378_v40 }
  0xd3   :  { %v2175_v44 = vadd.f32 %v2137_v61, %v541_v43 }
  0xd5   :  { %v558_v46 = vmax.f32 %v2175_v44, 0.0 }
  0xd6   :  { %v369_v47 = vpop.f32.mrf.mxu2  ;;  %v186_v50 = vpop.f32.mrf.mxu0 }
  0xd7   :  { %v532_v48 = vpop.f32.mrf.mxu3  ;;  %v379_v49 = vadd.f32 %v369_v47, %v266_v45  ;;  %577 = vrot.lane.b32.xlu2 %v558_v46, %s1804_s28  ;;  %v267_v51 = vpop.f32.mrf.mxu1 }
  0xd9   :  { %v542_v52 = vadd.f32 %v532_v48, %v379_v49 }
  0xdb   :  { %v2182_v53 = vadd.f32 %v2137_v61, %v542_v52 }
  0xdd   :  { %v559_v54 = vmax.f32 %v2182_v53, 0.0 }
  0xde   :  { %v371_v55 = vpop.f32.mrf.mxu2  ;;  %v791_v57 = vpop.f32.mrf.mxu0 }
  0xdf   :  { %v534_v56 = vpop.f32.mrf.mxu3  ;;  %579 = vrot.lane.b32.xlu0 %v559_v54, %s1804_s28  ;;  %v872_v58 = vpop.f32.mrf.mxu1 }
  0xe0   :  { %v873_v60 = vadd.f32 %v872_v58, %v791_v57 }
  0xe6   :  { %v975_v59 = vpop.f32.mrf.mxu2  ;;  %v793_v2 = vpop.f32.mrf.mxu0 }
  0xe7   :  { %v1137_v62 = vpop.f32.mrf.mxu3  ;;  %v994_v0 = vadd.f32 %v975_v59, %v873_v60  ;;  %v874_v3 = vpop.f32.mrf.mxu1 }
  0xe8   :  { %v875_v7 = vadd.f32 %v874_v3, %v793_v2 }
  0xe9   :  { %v1156_v4 = vadd.f32 %v1137_v62, %v994_v0 }
  0xeb   :  { %v2189_v5 = vadd.f32 %v2137_v61, %v1156_v4 }
  0xed   :  { %v1170_v6 = vmax.f32 %v2189_v5, 0.0 }
  0xee   :  { %v977_v9 = vpop.f32.mrf.mxu2  ;;  %v796_v13 = vpop.f32.mrf.mxu0 }
  0xef   :  { %v1139_v11 = vpop.f32.mrf.mxu3  ;;  %v995_v12 = vadd.f32 %v977_v9, %v875_v7  ;;  %1184 = vrot.lane.b32.xlu1 %v1170_v6, %s1804_s28  ;;  %v877_v14 = vpop.f32.mrf.mxu1 }
  0xf0   :  { %v878_v18 = vadd.f32 %v877_v14, %v796_v13 }
  0xf1   :  { %v1157_v15 = vadd.f32 %v1139_v11, %v995_v12 }
  0xf3   :  { %v2196_v16 = vadd.f32 %v2137_v61, %v1157_v15 }
  0xf5   :  { %v1171_v20 = vmax.f32 %v2196_v16, 0.0 }
  0xf6   :  { %v980_v21 = vpop.f32.mrf.mxu2  ;;  %v798_v24 = vpop.f32.mrf.mxu0 }
  0xf7   :  { %v1142_v22 = vpop.f32.mrf.mxu3  ;;  %v996_v23 = vadd.f32 %v980_v21, %v878_v18  ;;  %1186 = vrot.lane.b32.xlu2 %v1171_v20, %s1804_s28  ;;  %v879_v25 = vpop.f32.mrf.mxu1 }
  0xf8   :  { %v880_v32 = vadd.f32 %v879_v25, %v798_v24 }
  0xf9   :  { %v1158_v28 = vadd.f32 %v1142_v22, %v996_v23 }
  0xfb   :  { %v2203_v30 = vadd.f32 %v2137_v61, %v1158_v28 }
  0xfd   :  { %v1172_v31 = vmax.f32 %v2203_v30, 0.0 }
  0xfe   :  { %v982_v27 = vpop.f32.mrf.mxu2  ;;  %v801_v36 = vpop.f32.mrf.mxu0 }
  0xff   :  { %v1144_v33 = vpop.f32.mrf.mxu3  ;;  %v997_v34 = vadd.f32 %v982_v27, %v880_v32  ;;  %1188 = vrot.lane.b32.xlu0 %v1172_v31, %s1804_s28  ;;  %v882_v38 = vpop.f32.mrf.mxu1 }
 0x100   :  { %v883_v41 = vadd.f32 %v882_v38, %v801_v36 }
 0x101   :  { %v1159_v39 = vadd.f32 %v1144_v33, %v997_v34 }
 0x103   :  { %v2210_v40 = vadd.f32 %v2137_v61, %v1159_v39 }
 0x105   :  { %v1173_v42 = vmax.f32 %v2210_v40, 0.0 }
 0x106   :  { %v985_v43 = vpop.f32.mrf.mxu2  ;;  %v803_v48 = vpop.f32.mrf.mxu0 }
 0x107   :  { %v1147_v45 = vpop.f32.mrf.mxu3  ;;  %v998_v47 = vadd.f32 %v985_v43, %v883_v41  ;;  %1190 = vrot.lane.b32.xlu1 %v1173_v42, %s1804_s28  ;;  %v884_v49 = vpop.f32.mrf.mxu1 }
 0x108   :  { %v885_v55 = vadd.f32 %v884_v49, %v803_v48 }
 0x109   :  { %v1160_v50 = vadd.f32 %v1147_v45, %v998_v47 }
 0x10b   :  { %v1167_v51 = vadd.f32 %v2137_v61, %v1160_v50 }
 0x10d   :  { %v1174_v52 = vmax.f32 %v1167_v51, 0.0 }
 0x10e   :  { %v987_v56 = vpop.f32.mrf.mxu2  ;;  %v806_v60 = vpop.f32.mrf.mxu0 }
 0x10f   :  { %v1149_v57 = vpop.f32.mrf.mxu3  ;;  %v999_v58 = vadd.f32 %v987_v56, %v885_v55  ;;  %1192 = vrot.lane.b32.xlu2 %v1174_v52, %s1804_s28  ;;  %v887_v59 = vpop.f32.mrf.mxu1 }
 0x110   :  { %v888_v2 = vadd.f32 %v887_v59, %v806_v60 }
 0x111   :  { %v1161_v62 = vadd.f32 %v1149_v57, %v999_v58 }
 0x113   :  { %v1168_v0 = vadd.f32 %v2137_v61, %v1161_v62 }
 0x115   :  { %v1175_v3 = vmax.f32 %v1168_v0, 0.0 }
 0x116   :  { %v990_v4 = vpop.f32.mrf.mxu2  ;;  %v808_v11 = vpop.f32.mrf.mxu0 }
 0x117   :  { %v1152_v7 = vpop.f32.mrf.mxu3  ;;  %v1000_v9 = vadd.f32 %v990_v4, %v888_v2  ;;  %1194 = vrot.lane.b32.xlu0 %v1175_v3, %s1804_s28  ;;  %v889_v12 = vpop.f32.mrf.mxu1 }
 0x119   :  { %v1162_v13 = vadd.f32 %v1152_v7, %v1000_v9 }
 0x11b   :  { %v1169_v14 = vadd.f32 %v2137_v61, %v1162_v13 }
 0x11d   :  { %v1176_v15 = vmax.f32 %v1169_v14, 0.0 }
 0x11e   :  { %v992_v18 = vpop.f32.mrf.mxu2 }
 0x11f   :  { %v1154_v21 = vpop.f32.mrf.mxu3  ;;  %1196 = vrot.lane.b32.xlu1 %v1176_v15, %s1804_s28 }
 0x121   :  { %v568_v22 = vpop.permute.xlu0 %567 }
 0x122   :  { %v588_v23 = vmax.f32 %v553_v1, %v568_v22 }
 0x124   :  { %602 = vrot.lane.b32.xlu2 %v588_v23, %s1805_s2 }
 0x129   :  { %v570_v24 = vpop.permute.xlu0 %569  ;;  %v576_v28 = vpop.permute.xlu2 %575 }
 0x12a   :  { %v589_v25 = vmax.f32 %v554_v10, %v570_v24  ;;  %v592_v32 = vmax.f32 %v557_v37, %v576_v28 }
 0x12c   :  { %604 = vrot.lane.b32.xlu0 %v589_v25, %s1805_s2 }
 0x131   :  { %v572_v61 = vpop.permute.xlu1 %571  ;;  %v578_v63 = vpop.permute.xlu2 %577 }
 0x132   :  { %v590_v27 = vmax.f32 %v555_v19, %v572_v61  ;;  %v593_v8 = vmax.f32 %v558_v46, %v578_v63 }
 0x134   :  { %610 = vrot.lane.b32.xlu0 %v592_v32, %s1805_s2  ;;  %606 = vrot.lane.b32.xlu1 %v590_v27, %s1805_s2 }
 0x139   :  { %v574_v1 = vpop.permute.xlu1 %573 }
 0x13a   :  { %v591_v10 = vmax.f32 %v556_v29, %v574_v1 }
 0x13c   :  { %608 = vrot.lane.b32.xlu2 %v591_v10, %s1805_s2  ;;  %612 = vrot.lane.b32.xlu1 %v593_v8, %s1805_s2 }
 0x151   :  { %v580_v35 = vpop.permute.xlu0 %579  ;;  %v1187_v37 = vpop.permute.xlu2 %1186 }
 0x152   :  { %v594_v17 = vmax.f32 %v559_v54, %v580_v35  ;;  %v1206_v19 = vmax.f32 %v1171_v20, %v1187_v37 }
 0x154   :  { %614 = vrot.lane.b32.xlu2 %v594_v17, %s1805_s2  ;;  %1221 = vrot.lane.b32.xlu1 %v1206_v19, %s1805_s2 }
 0x161   :  { %v1185_v44 = vpop.permute.xlu1 %1184 }
 0x162   :  { %v1205_v26 = vmax.f32 %v1170_v6, %v1185_v44 }
 0x164   :  { %1219 = vrot.lane.b32.xlu0 %v1205_v26, %s1805_s2 }
 0x169   :  { %v1193_v29 = vpop.permute.xlu2 %1192 }
 0x16a   :  { %v1209_v46 = vmax.f32 %v1174_v52, %v1193_v29 }
 0x16c   :  { %1227 = vrot.lane.b32.xlu1 %v1209_v46, %s1805_s2 }
 0x171   :  { %v1189_v33 = vpop.permute.xlu0 %1188 }
 0x172   :  { %v1207_v53 = vmax.f32 %v1172_v31, %v1189_v33 }
 0x174   :  { %1223 = vrot.lane.b32.xlu2 %v1207_v53, %s1805_s2 }
 0x179   :  { %v1191_v54 = vpop.permute.xlu1 %1190 }
 0x17a   :  { %v1208_v16 = vmax.f32 %v1173_v42, %v1191_v54 }
 0x17c   :  { %1225 = vrot.lane.b32.xlu0 %v1208_v16, %s1805_s2 }
 0x17e   :  { %v603_v5 = vpop.permute.xlu2 %602 }
 0x17f   :  { %v623_v6 = vmax.f32 %v588_v23, %v603_v5 }
 0x181   :  { %631 = vst.msk [vmem:[%s2317_s3] sm:$0xff] %vm630_vm1, %v623_v6 }
 0x189   :  { %v1195_v20 = vpop.permute.xlu0 %1194 }
 0x18a   :  { %v1210_v34 = vmax.f32 %v1175_v3, %v1195_v20 }
 0x18c   :  { %1229 = vrot.lane.b32.xlu2 %v1210_v34, %s1805_s2 }
 0x191   :  { %v1197_v30 = vpop.permute.xlu1 %1196 }
 0x192   :  { %v1211_v31 = vmax.f32 %v1176_v15, %v1197_v30 }
 0x194   :  { %1231 = vrot.lane.b32.xlu0 %v1211_v31, %s1805_s2 }
 0x196   :  { %v609_v36 = vpop.permute.xlu2 %608 }
 0x197   :  { %v626_v38 = vmax.f32 %v591_v10, %v609_v36 }
 0x199   :  { %634 = vst.msk [vmem:[%s2317_s3 + $0x18] sm:$0xff] %vm630_vm1, %v626_v38 }
 0x19e   :  { %v605_v39 = vpop.permute.xlu0 %604 }
 0x19f   :  { %v624_v40 = vmax.f32 %v589_v25, %v605_v39 }
 0x1a1   :  { %632 = vst.msk [vmem:[%s2317_s3 + $0x8] sm:$0xff] %vm630_vm1, %v624_v40 }
 0x1a6   :  { %v611_v41 = vpop.permute.xlu0 %610  ;;  %v607_v42 = vpop.permute.xlu1 %606 }
 0x1a7   :  { %v627_v43 = vmax.f32 %v592_v32, %v611_v41  ;;  %v625_v45 = vmax.f32 %v590_v27, %v607_v42 }
 0x1a9   :  { %635 = vst.msk [vmem:[%s2317_s3 + $0x20] sm:$0xff] %vm630_vm1, %v627_v43 }
 0x1aa   :  { %633 = vst.msk [vmem:[%s2317_s3 + $0x10] sm:$0xff] %vm630_vm1, %v625_v45 }
 0x1ae   :  { %v615_v47 = vpop.permute.xlu2 %614  ;;  %v613_v48 = vpop.permute.xlu1 %612 }
 0x1af   :  { %v629_v49 = vmax.f32 %v594_v17, %v615_v47  ;;  %v628_v50 = vmax.f32 %v593_v8, %v613_v48 }
 0x1b1   :  { %637 = vst.msk [vmem:[%s2317_s3 + $0x30] sm:$0xff] %vm630_vm1, %v629_v49 }
 0x1b2   :  { %636 = vst.msk [vmem:[%s2317_s3 + $0x28] sm:$0xff] %vm630_vm1, %v628_v50 }
 0x1c6   :  { %v1222_v51 = vpop.permute.xlu1 %1221 }
 0x1c7   :  { %v1241_v52 = vmax.f32 %v1206_v19, %v1222_v51 }
 0x1c9   :  { %1661 = vst.msk [vmem:[%s2317_s3 + $0x40] sm:$0xff] %vm630_vm1, %v1241_v52 }
 0x1ce   :  { %v1224_v55 = vpop.permute.xlu2 %1223 }
 0x1cf   :  { %v1242_v56 = vmax.f32 %v1207_v53, %v1224_v55 }
 0x1d1   :  { %1662 = vst.msk [vmem:[%s2317_s3 + $0x48] sm:$0xff] %vm630_vm1, %v1242_v56 }
 0x1d6   :  { %v1220_v57 = vpop.permute.xlu0 %1219 }
 0x1d7   :  { %v1240_v58 = vmax.f32 %v1205_v26, %v1220_v57 }
 0x1d9   :  { %1660 = vst.msk [vmem:[%s2317_s3 + $0x38] sm:$0xff] %vm630_vm1, %v1240_v58 }
 0x1de   :  { %v1228_v60 = vpop.permute.xlu1 %1227 }
 0x1df   :  { %v1244_v59 = vmax.f32 %v1209_v46, %v1228_v60 }
 0x1e1   :  { %1664 = vst.msk [vmem:[%s2317_s3 + $0x58] sm:$0xff] %vm630_vm1, %v1244_v59 }
 0x1e6   :  { %v1230_v62 = vpop.permute.xlu2 %1229 }
 0x1e7   :  { %v1245_v0 = vmax.f32 %v1210_v34, %v1230_v62 }
 0x1e9   :  { %1665 = vst.msk [vmem:[%s2317_s3 + $0x60] sm:$0xff] %vm630_vm1, %v1245_v0 }
 0x1ee   :  { %v1226_v2 = vpop.permute.xlu0 %1225 }
 0x1ef   :  { %v1243_v3 = vmax.f32 %v1208_v16, %v1226_v2 }
 0x1f1   :  { %1663 = vst.msk [vmem:[%s2317_s3 + $0x50] sm:$0xff] %vm630_vm1, %v1243_v3 }
 0x206   :  { %v1232_v4 = vpop.permute.xlu0 %1231 }
 0x207   :  { %v1246_v7 = vmax.f32 %v1211_v31, %v1232_v4 }
 0x209   :  { %1666 = vst.msk [vmem:[%s2317_s3 + $0x68] sm:$0xff] %vm630_vm1, %v1246_v7 }

// kernel: cnn_forward.5
= control target key start
LH: loop header
LB: loop body
LE: loop exit
PB: predicated region body
PF: predicated region fallthrough
CT: control target
= control target key end

     0   :  { %s2510_s1 = inlined_call_operand.vmem [shape: bf16[896,256], index: 1, kind: input, shape index: {}]   ;;  %s2511_s0 = inlined_call_operand.vmem [shape: f32[8,896], index: 0, kind: input, shape index: {}]   ;;  %s2512_s3 = inlined_call_operand.vmem [shape: bf16[256,128], index: 3, kind: input, shape index: {}]   ;;  %s2513_s4 = inlined_call_operand.vmem [shape: f32[1,128], index: 4, kind: input, shape index: {}]   ;;  %s2514_s2 = inlined_call_operand.vmem [shape: f32[1,256], index: 2, kind: input, shape index: {}]   ;;  %s2515_s5 = inlined_call_operand.vmem [shape: f32[8,128], index: 5, kind: output, shape index: {}]  }
   0x1   :  { %v1119_v0 = vld [vmem:[%s2510_s1 + $0x70] sm:$0xf]  ;;  %v1588_v1 = vld [vmem:[%s2510_s1 + $0x74] sm:$0xf0]  ;;  %v1111_v9 = vld [vmem:[%s2510_s1 + $0x60] sm:$0xf] }
   0x2   :  { %v1183_v2 = vld [vmem:[%s2510_s1 + $0xf0] sm:$0xf]  ;;  %v1120_v3 = vor.u32 %v1588_v1, %v1119_v0  ;;  %v1604_v4 = vld [vmem:[%s2510_s1 + $0xf4] sm:$0xf0]  ;;  %v1586_v10 = vld [vmem:[%s2510_s1 + $0x64] sm:$0xf0] }
   0x3   :  { %v1247_v5 = vld [vmem:[%s2510_s1 + $0x170] sm:$0xf]  ;;  %v1620_v6 = vld [vmem:[%s2510_s1 + $0x174] sm:$0xf0]  ;;  %v1184_v7 = vor.u32 %v1604_v4, %v1183_v2  ;;  %v1175_v11 = vld [vmem:[%s2510_s1 + $0xe0] sm:$0xf]  ;;  %v1112_v12 = vor.u32 %v1586_v10, %v1111_v9 }
   0x4   :  { %v1248_v8 = vor.u32 %v1620_v6, %v1247_v5  ;;  %712 = vmatpush.bf16.msra.mxu0 %v1120_v3  ;;  %v1602_v13 = vld [vmem:[%s2510_s1 + $0xe4] sm:$0xf0]  ;;  %v1239_v14 = vld [vmem:[%s2510_s1 + $0x160] sm:$0xf]  ;;  %v1103_v18 = vld [vmem:[%s2510_s1 + $0x50] sm:$0xf] }
   0x5   :  { %v1618_v15 = vld [vmem:[%s2510_s1 + $0x164] sm:$0xf0]  ;;  %725 = vmatpush.bf16.msra.mxu1 %v1184_v7  ;;  %v1176_v16 = vor.u32 %v1602_v13, %v1175_v11  ;;  %v1584_v19 = vld [vmem:[%s2510_s1 + $0x54] sm:$0xf0]  ;;  %v1167_v20 = vld [vmem:[%s2510_s1 + $0xd0] sm:$0xf] }
   0x6   :  { %738 = vmatpush.bf16.msra.mxu2 %v1248_v8  ;;  %v1240_v17 = vor.u32 %v1618_v15, %v1239_v14  ;;  %v1600_v21 = vld [vmem:[%s2510_s1 + $0xd4] sm:$0xf0]  ;;  %v1231_v22 = vld [vmem:[%s2510_s1 + $0x150] sm:$0xf]  ;;  %v1104_v24 = vor.u32 %v1584_v19, %v1103_v18  ;;  %v1095_v25 = vld [vmem:[%s2510_s1 + $0x40] sm:$0xf] }
   0x7   :  { %v1616_v23 = vld [vmem:[%s2510_s1 + $0x154] sm:$0xf0]  ;;  %v1582_v26 = vld [vmem:[%s2510_s1 + $0x44] sm:$0xf0]  ;;  %v1168_v27 = vor.u32 %v1600_v21, %v1167_v20  ;;  %v1159_v29 = vld [vmem:[%s2510_s1 + $0xc0] sm:$0xf] }
   0x8   :  { %713 = vmatpush.bf16.msra.mxu0 %v1112_v12  ;;  %v1232_v28 = vor.u32 %v1616_v23, %v1231_v22  ;;  %v1311_v30 = vld [vmem:[%s2510_s1 + $0x1f0] sm:$0xf]  ;;  %v1636_v31 = vld [vmem:[%s2510_s1 + $0x1f4] sm:$0xf0]  ;;  %v1598_v32 = vld [vmem:[%s2510_s1 + $0xc4] sm:$0xf0]  ;;  %v1096_v37 = vor.u32 %v1582_v26, %v1095_v25 }
   0x9   :  { %726 = vmatpush.bf16.msra.mxu1 %v1176_v16  ;;  %v1223_v33 = vld [vmem:[%s2510_s1 + $0x140] sm:$0xf]  ;;  %v1614_v34 = vld [vmem:[%s2510_s1 + $0x144] sm:$0xf0]  ;;  %v1312_v35 = vor.u32 %v1636_v31, %v1311_v30  ;;  %v1087_v38 = vld [vmem:[%s2510_s1 + $0x30] sm:$0xf]  ;;  %v1160_v41 = vor.u32 %v1598_v32, %v1159_v29 }
   0xa   :  { %739 = vmatpush.bf16.msra.mxu2 %v1240_v17  ;;  %v1303_v36 = vld [vmem:[%s2510_s1 + $0x1e0] sm:$0xf]  ;;  %v1580_v39 = vld [vmem:[%s2510_s1 + $0x34] sm:$0xf0]  ;;  %v1634_v40 = vld [vmem:[%s2510_s1 + $0x1e4] sm:$0xf0]  ;;  %v1224_v42 = vor.u32 %v1614_v34, %v1223_v33 }
   0xb   :  { %751 = vmatpush.bf16.msra.mxu3 %v1312_v35  ;;  %v1151_v43 = vld [vmem:[%s2510_s1 + $0xb0] sm:$0xf]  ;;  %v1596_v44 = vld [vmem:[%s2510_s1 + $0xb4] sm:$0xf0]  ;;  %v1304_v46 = vor.u32 %v1634_v40, %v1303_v36  ;;  %v1088_v50 = vor.u32 %v1580_v39, %v1087_v38  ;;  %v1079_v51 = vld [vmem:[%s2510_s1 + $0x20] sm:$0xf] }
   0xc   :  { %714 = vmatpush.bf16.msra.mxu0 %v1104_v24  ;;  %v1215_v45 = vld [vmem:[%s2510_s1 + $0x130] sm:$0xf]  ;;  %v1612_v47 = vld [vmem:[%s2510_s1 + $0x134] sm:$0xf0]  ;;  %v1578_v52 = vld [vmem:[%s2510_s1 + $0x24] sm:$0xf0]  ;;  %v1152_v54 = vor.u32 %v1596_v44, %v1151_v43 }
   0xd   :  { %727 = vmatpush.bf16.msra.mxu1 %v1168_v27  ;;  %v1295_v48 = vld [vmem:[%s2510_s1 + $0x1d0] sm:$0xf]  ;;  %v1632_v49 = vld [vmem:[%s2510_s1 + $0x1d4] sm:$0xf0]  ;;  %v1216_v55 = vor.u32 %v1612_v47, %v1215_v45  ;;  %v1143_v56 = vld [vmem:[%s2510_s1 + $0xa0] sm:$0xf]  ;;  %v1080_v62 = vor.u32 %v1578_v52, %v1079_v51 }
   0xe   :  { %740 = vmatpush.bf16.msra.mxu2 %v1232_v28  ;;  %v1296_v53 = vor.u32 %v1632_v49, %v1295_v48  ;;  %v1287_v57 = vld [vmem:[%s2510_s1 + $0x1c0] sm:$0xf]  ;;  %v1630_v58 = vld [vmem:[%s2510_s1 + $0x1c4] sm:$0xf0]  ;;  %v1071_v63 = vld [vmem:[%s2510_s1 + $0x10] sm:$0xf] }
   0xf   :  { %752 = vmatpush.bf16.msra.mxu3 %v1304_v46  ;;  %v1594_v59 = vld [vmem:[%s2510_s1 + $0xa4] sm:$0xf0]  ;;  %v1207_v60 = vld [vmem:[%s2510_s1 + $0x120] sm:$0xf]  ;;  %v1576_v0 = vld [vmem:[%s2510_s1 + $0x14] sm:$0xf0]  ;;  %v1288_v1 = vor.u32 %v1630_v58, %v1287_v57 }
  0x10   :  { %715 = vmatpush.bf16.msra.mxu0 %v1096_v37  ;;  %v1610_v61 = vld [vmem:[%s2510_s1 + $0x124] sm:$0xf0]  ;;  %v1144_v2 = vor.u32 %v1594_v59, %v1143_v56  ;;  %v1135_v4 = vld [vmem:[%s2510_s1 + $0x90] sm:$0xf]  ;;  %v1628_v6 = vld [vmem:[%s2510_s1 + $0x1b4] sm:$0xf0]  ;;  %v1072_v10 = vor.u32 %v1576_v0, %v1071_v63 }
  0x11   :  { %728 = vmatpush.bf16.msra.mxu1 %v1160_v41  ;;  %v1208_v3 = vor.u32 %v1610_v61, %v1207_v60  ;;  %v1279_v5 = vld [vmem:[%s2510_s1 + $0x1b0] sm:$0xf]  ;;  %v1592_v7 = vld [vmem:[%s2510_s1 + $0x94] sm:$0xf0]  ;;  %v1063_v11 = vld [vmem:[%s2510_s1] sm:$0xf] }
  0x12   :  { %741 = vmatpush.bf16.msra.mxu2 %v1224_v42  ;;  %v1199_v8 = vld [vmem:[%s2510_s1 + $0x110] sm:$0xf]  ;;  %v1608_v9 = vld [vmem:[%s2510_s1 + $0x114] sm:$0xf0]  ;;  %v1574_v12 = vld [vmem:[%s2510_s1 + $0x4] sm:$0xf0]  ;;  %v1280_v14 = vor.u32 %v1628_v6, %v1279_v5  ;;  %v1136_v15 = vor.u32 %v1592_v7, %v1135_v4 }
  0x13   :  { %753 = vmatpush.bf16.msra.mxu3 %v1296_v53  ;;  %v1127_v13 = vld [vmem:[%s2510_s1 + $0x80] sm:$0xf]  ;;  %v1200_v16 = vor.u32 %v1608_v9, %v1199_v8  ;;  %v1590_v17 = vld [vmem:[%s2510_s1 + $0x84] sm:$0xf0]  ;;  %v1375_v22 = vld [vmem:[%s2510_s1 + $0x270] sm:$0xf]  ;;  %v1064_v26 = vor.u32 %v1574_v12, %v1063_v11 }
  0x14   :  { %716 = vmatpush.bf16.msra.mxu0 %v1088_v50  ;;  %v1271_v18 = vld [vmem:[%s2510_s1 + $0x1a0] sm:$0xf]  ;;  %v1626_v19 = vld [vmem:[%s2510_s1 + $0x1a4] sm:$0xf0]  ;;  %v1652_v23 = vld [vmem:[%s2510_s1 + $0x274] sm:$0xf0]  ;;  %v1128_v30 = vor.u32 %v1590_v17, %v1127_v13 }
  0x15   :  { %729 = vmatpush.bf16.msra.mxu1 %v1152_v54  ;;  %v1191_v20 = vld [vmem:[%s2510_s1 + $0x100] sm:$0xf]  ;;  %v1606_v21 = vld [vmem:[%s2510_s1 + $0x104] sm:$0xf0]  ;;  %v1439_v24 = vld [vmem:[%s2510_s1 + $0x2f0] sm:$0xf]  ;;  %v1272_v29 = vor.u32 %v1626_v19, %v1271_v18  ;;  %v1376_v34 = vor.u32 %v1652_v23, %v1375_v22 }
  0x16   :  { %742 = vmatpush.bf16.msra.mxu2 %v1216_v55  ;;  %v1668_v25 = vld [vmem:[%s2510_s1 + $0x2f4] sm:$0xf0]  ;;  %v1503_v27 = vld [vmem:[%s2510_s1 + $0x370] sm:$0xf]  ;;  %v1192_v31 = vor.u32 %v1606_v21, %v1191_v20  ;;  %v1367_v36 = vld [vmem:[%s2510_s1 + $0x260] sm:$0xf] }
  0x17   :  { %754 = vmatpush.bf16.msra.mxu3 %v1288_v1  ;;  %v1684_v28 = vld [vmem:[%s2510_s1 + $0x374] sm:$0xf0]  ;;  %v1263_v32 = vld [vmem:[%s2510_s1 + $0x190] sm:$0xf]  ;;  %v1440_v35 = vor.u32 %v1668_v25, %v1439_v24  ;;  %v1650_v37 = vld [vmem:[%s2510_s1 + $0x264] sm:$0xf0] }
  0x18   :  { %717 = vmatpush.bf16.msra.mxu0 %v1080_v62  ;;  %v1624_v33 = vld [vmem:[%s2510_s1 + $0x194] sm:$0xf0]  ;;  %v1504_v38 = vor.u32 %v1684_v28, %v1503_v27  ;;  %v1431_v39 = vld [vmem:[%s2510_s1 + $0x2e0] sm:$0xf]  ;;  %v1666_v40 = vld [vmem:[%s2510_s1 + $0x2e4] sm:$0xf0]  ;;  %v1368_v50 = vor.u32 %v1650_v37, %v1367_v36 }
  0x19   :  { %730 = vmatpush.bf16.msra.mxu1 %v1144_v2  ;;  %v22_v41 = vld [vmem:[%s2511_s0 + $0x10] sm:$0xff]  ;;  %v1495_v42 = vld [vmem:[%s2510_s1 + $0x360] sm:$0xf]  ;;  %v1682_v43 = vld [vmem:[%s2510_s1 + $0x364] sm:$0xf0]  ;;  %v1264_v44 = vor.u32 %v1624_v33, %v1263_v32  ;;  %v1432_v51 = vor.u32 %v1666_v40, %v1431_v39 }
  0x1a   :  { %743 = vmatpush.bf16.msra.mxu2 %v1208_v3  ;;  %v1957_v45 = vpack.c.bf16 %v22_v41, %v22_v41  ;;  %v1359_v46 = vld [vmem:[%s2510_s1 + $0x250] sm:$0xf]  ;;  %v1255_v47 = vld [vmem:[%s2510_s1 + $0x180] sm:$0xf]  ;;  %v1622_v48 = vld [vmem:[%s2510_s1 + $0x184] sm:$0xf0]  ;;  %v1496_v56 = vor.u32 %v1682_v43, %v1495_v42 }
  0x1b   :  { %755 = vmatpush.bf16.msra.mxu3 %v1280_v14  ;;  %v20_v49 = vld [vmem:[%s2511_s0] sm:$0xff]  ;;  %v1587_v52 = vld [vmem:[%s2510_s1 + $0x74] sm:$0xf]  ;;  %v1121_v53 = vld [vmem:[%s2510_s1 + $0x78] sm:$0xf0]  ;;  %v1256_v63 = vor.u32 %v1622_v48, %v1255_v47 }
  0x1c   :  { %718 = vmatpush.bf16.msra.mxu0 %v1072_v10  ;;  %v1977_v54 = vpack.c.bf16 %v20_v49, %v20_v49  ;;  %v21_v55 = vld [vmem:[%s2511_s0 + $0x8] sm:$0xff]  ;;  %v1648_v57 = vld [vmem:[%s2510_s1 + $0x254] sm:$0xf0]  ;;  %v1423_v58 = vld [vmem:[%s2510_s1 + $0x2d0] sm:$0xf]  ;;  %v1124_v1 = vor.u32 %v1587_v52, %v1121_v53 }
  0x1d   :  { %731 = vmatpush.bf16.msra.mxu1 %v1136_v15  ;;  %v1664_v59 = vld [vmem:[%s2510_s1 + $0x2d4] sm:$0xf0]  ;;  %v1991_v60 = vpack.c.bf16 %v21_v55, %v21_v55  ;;  %v1487_v61 = vld [vmem:[%s2510_s1 + $0x350] sm:$0xf]  ;;  %v1351_v0 = vld [vmem:[%s2510_s1 + $0x240] sm:$0xf]  ;;  %v1360_v2 = vor.u32 %v1648_v57, %v1359_v46 }
  0x1e   :  { %744 = vmatpush.bf16.msra.mxu2 %v1200_v16  ;;  %v1680_v62 = vld [vmem:[%s2510_s1 + $0x354] sm:$0xf0]  ;;  %v1424_v3 = vor.u32 %v1664_v59, %v1423_v58  ;;  %v1646_v4 = vld [vmem:[%s2510_s1 + $0x244] sm:$0xf0]  ;;  %v1585_v5 = vld [vmem:[%s2510_s1 + $0x64] sm:$0xf] }
  0x1f   :  { %756 = vmatpush.bf16.msra.mxu3 %v1272_v29  ;;  %v1113_v6 = vld [vmem:[%s2510_s1 + $0x68] sm:$0xf0]  ;;  %v1488_v7 = vor.u32 %v1680_v62, %v1487_v61  ;;  %v1415_v8 = vld [vmem:[%s2510_s1 + $0x2c0] sm:$0xf]  ;;  %v1662_v9 = vld [vmem:[%s2510_s1 + $0x2c4] sm:$0xf0]  ;;  %v1352_v15 = vor.u32 %v1646_v4, %v1351_v0 }
  0x20   :  { %719 = vmatpush.bf16.msra.mxu0 %v1064_v26  ;;  %v23_v10 = vld [vmem:[%s2511_s0 + $0x18] sm:$0xff]  ;;  %v1479_v11 = vld [vmem:[%s2510_s1 + $0x340] sm:$0xf]  ;;  %v1678_v12 = vld [vmem:[%s2510_s1 + $0x344] sm:$0xf0]  ;;  %v1116_v14 = vor.u32 %v1585_v5, %v1113_v6  ;;  %v1416_v16 = vor.u32 %v1662_v9, %v1415_v8 }
  0x21   :  { %732 = vmatpush.bf16.msra.mxu1 %v1128_v30  ;;  %v2029_v13 = vpack.c.bf16 %v23_v10, %v23_v10  ;;  %v1343_v17 = vld [vmem:[%s2510_s1 + $0x230] sm:$0xf]  ;;  %v1583_v18 = vld [vmem:[%s2510_s1 + $0x54] sm:$0xf]  ;;  %v1105_v19 = vld [vmem:[%s2510_s1 + $0x58] sm:$0xf0]  ;;  %v1480_v20 = vor.u32 %v1678_v12, %v1479_v11 }
  0x22   :  { %745 = vmatpush.bf16.msra.mxu2 %v1192_v31  ;;  %v1644_v21 = vld [vmem:[%s2510_s1 + $0x234] sm:$0xf0]  ;;  %v1407_v22 = vld [vmem:[%s2510_s1 + $0x2b0] sm:$0xf]  ;;  %v1108_v26 = vor.u32 %v1583_v18, %v1105_v19  ;;  %v1335_v29 = vld [vmem:[%s2510_s1 + $0x220] sm:$0xf] }
  0x23   :  { %757 = vmatpush.bf16.msra.mxu3 %v1264_v44  ;;  %720 = vmatmul.bf16.vlgmr.msra.gmra.mxu0 %v1977_v54  ;;  %v1660_v23 = vld [vmem:[%s2510_s1 + $0x2b4] sm:$0xf0]  ;;  %v1471_v24 = vld [vmem:[%s2510_s1 + $0x330] sm:$0xf]  ;;  %v1344_v27 = vor.u32 %v1644_v21, %v1343_v17  ;;  %v1581_v30 = vld [vmem:[%s2510_s1 + $0x44] sm:$0xf] }
  0x24   :  { %764 = vmatpush.bf16.msrb.mxu0 %v1376_v34  ;;  %733 = vmatmul.bf16.vlgmr.msra.gmra.mxu1 %v1991_v60  ;;  %v1676_v25 = vld [vmem:[%s2510_s1 + $0x334] sm:$0xf0]  ;;  %v1408_v28 = vor.u32 %v1660_v23, %v1407_v22  ;;  %v1097_v31 = vld [vmem:[%s2510_s1 + $0x48] sm:$0xf0]  ;;  %v1642_v33 = vld [vmem:[%s2510_s1 + $0x224] sm:$0xf0] }
  0x25   :  { %777 = vmatpush.bf16.msrb.mxu1 %v1440_v35  ;;  %746 = vmatmul.bf16.vlgmr.msra.gmra.mxu2 %v1957_v45  ;;  %v1472_v32 = vor.u32 %v1676_v25, %v1471_v24  ;;  %v1399_v34 = vld [vmem:[%s2510_s1 + $0x2a0] sm:$0xf]  ;;  %v1658_v35 = vld [vmem:[%s2510_s1 + $0x2a4] sm:$0xf0]  ;;  %v1336_v39 = vor.u32 %v1642_v33, %v1335_v29  ;;  %v1327_v41 = vld [vmem:[%s2510_s1 + $0x210] sm:$0xf] }
  0x26   :  { %790 = vmatpush.bf16.msrb.mxu2 %v1504_v38  ;;  %v1463_v36 = vld [vmem:[%s2510_s1 + $0x320] sm:$0xf]  ;;  %v1674_v37 = vld [vmem:[%s2510_s1 + $0x324] sm:$0xf0]  ;;  %v1100_v38 = vor.u32 %v1581_v30, %v1097_v31  ;;  %v1400_v40 = vor.u32 %v1658_v35, %v1399_v34  ;;  %v1579_v42 = vld [vmem:[%s2510_s1 + $0x34] sm:$0xf] }
  0x27   :  { %758 = vmatpush.bf16.msra.mxu3 %v1256_v63  ;;  %v1089_v43 = vld [vmem:[%s2510_s1 + $0x38] sm:$0xf0]  ;;  %v1464_v44 = vor.u32 %v1674_v37, %v1463_v36  ;;  %v1640_v46 = vld [vmem:[%s2510_s1 + $0x214] sm:$0xf0]  ;;  %v1391_v47 = vld [vmem:[%s2510_s1 + $0x290] sm:$0xf] }
  0x28   :  { %765 = vmatpush.bf16.msrb.mxu0 %v1368_v50  ;;  %v1656_v48 = vld [vmem:[%s2510_s1 + $0x294] sm:$0xf0]  ;;  %v1455_v49 = vld [vmem:[%s2510_s1 + $0x310] sm:$0xf]  ;;  %v1638_v52 = vld [vmem:[%s2510_s1 + $0x204] sm:$0xf0]  ;;  %v1092_v53 = vor.u32 %v1579_v42, %v1089_v43  ;;  %v1328_v55 = vor.u32 %v1640_v46, %v1327_v41 }
  0x29   :  { %778 = vmatpush.bf16.msrb.mxu1 %v1432_v51  ;;  %v1672_v50 = vld [vmem:[%s2510_s1 + $0x314] sm:$0xf0]  ;;  %v1319_v51 = vld [vmem:[%s2510_s1 + $0x200] sm:$0xf]  ;;  %v1577_v58 = vld [vmem:[%s2510_s1 + $0x24] sm:$0xf] }
  0x2a   :  { %791 = vmatpush.bf16.msrb.mxu2 %v1496_v56  ;;  %759 = vmatmul.bf16.vlgmr.msra.gmra.mxu3 %v2029_v13  ;;  %v1392_v56 = vor.u32 %v1656_v48, %v1391_v47  ;;  %v1383_v57 = vld [vmem:[%s2510_s1 + $0x280] sm:$0xf]  ;;  %v1081_v59 = vld [vmem:[%s2510_s1 + $0x28] sm:$0xf0]  ;;  %v1456_v61 = vor.u32 %v1672_v50, %v1455_v49  ;;  %v1654_v62 = vld [vmem:[%s2510_s1 + $0x284] sm:$0xf0]  ;;  %v1320_v8 = vor.u32 %v1638_v52, %v1319_v51 }
  0x2b   :  { %803 = vmatpush.bf16.msrb.mxu3 %v1124_v1  ;;  %v1447_v63 = vld [vmem:[%s2510_s1 + $0x300] sm:$0xf]  ;;  %v1670_v0 = vld [vmem:[%s2510_s1 + $0x304] sm:$0xf0]  ;;  %v1603_v1 = vld [vmem:[%s2510_s1 + $0xf4] sm:$0xf]  ;;  %v1084_v5 = vor.u32 %v1577_v58, %v1081_v59  ;;  %v1384_v9 = vor.u32 %v1654_v62, %v1383_v57 }
  0x2c   :  { %766 = vmatpush.bf16.msrb.mxu0 %v1360_v2  ;;  %v1185_v2 = vld [vmem:[%s2510_s1 + $0xf8] sm:$0xf0]  ;;  %v1635_v6 = vld [vmem:[%s2510_s1 + $0x1f4] sm:$0xf]  ;;  %v24_v10 = vld [vmem:[%s2511_s0 + $0x20] sm:$0xff]  ;;  %v1448_v12 = vor.u32 %v1670_v0, %v1447_v63 }
  0x2d   :  { %779 = vmatpush.bf16.msrb.mxu1 %v1424_v3  ;;  %v1619_v3 = vld [vmem:[%s2510_s1 + $0x174] sm:$0xf]  ;;  %v1249_v4 = vld [vmem:[%s2510_s1 + $0x178] sm:$0xf0]  ;;  %v25_v11 = vld [vmem:[%s2511_s0 + $0x28] sm:$0xff]  ;;  %v2170_v23 = vpack.c.bf16 %v24_v10, %v24_v10 }
  0x2e   :  { %792 = vmatpush.bf16.msrb.mxu2 %v1488_v7  ;;  %v1313_v7 = vld [vmem:[%s2510_s1 + $0x1f8] sm:$0xf0]  ;;  %v1252_v18 = vor.u32 %v1619_v3, %v1249_v4  ;;  %v1601_v19 = vld [vmem:[%s2510_s1 + $0xe4] sm:$0xf]  ;;  %v1241_v24 = vld [vmem:[%s2510_s1 + $0x168] sm:$0xf0]  ;;  %v2175_v25 = vpack.c.bf16 %v25_v11, %v25_v11 }
  0x2f   :  { %804 = vmatpush.bf16.msrb.mxu3 %v1116_v14  ;;  %v1188_v14 = vor.u32 %v1603_v1, %v1185_v2  ;;  %v1073_v17 = vld [vmem:[%s2510_s1 + $0x18] sm:$0xf0]  ;;  %v1617_v21 = vld [vmem:[%s2510_s1 + $0x164] sm:$0xf]  ;;  %v1316_v22 = vor.u32 %v1635_v6, %v1313_v7  ;;  %v1599_v30 = vld [vmem:[%s2510_s1 + $0xd4] sm:$0xf] }
  0x30   :  { %767 = vmatpush.bf16.msrb.mxu0 %v1352_v15  ;;  %v26_v15 = vld [vmem:[%s2511_s0 + $0x30] sm:$0xff]  ;;  %v1573_v33 = vld [vmem:[%s2510_s1 + $0x4] sm:$0xf]  ;;  %v1065_v34 = vld [vmem:[%s2510_s1 + $0x8] sm:$0xf0]  ;;  %v1244_v35 = vor.u32 %v1617_v21, %v1241_v24 }
  0x31   :  { %780 = vmatpush.bf16.msrb.mxu1 %v1416_v16  ;;  %v1575_v16 = vld [vmem:[%s2510_s1 + $0x14] sm:$0xf]  ;;  %v1297_v42 = vld [vmem:[%s2510_s1 + $0x1d8] sm:$0xf0]  ;;  %v1068_v43 = vor.u32 %v1573_v33, %v1065_v34  ;;  %v1597_v46 = vld [vmem:[%s2510_s1 + $0xc4] sm:$0xf] }
  0x32   :  { %793 = vmatpush.bf16.msrb.mxu2 %v1480_v20  ;;  %v1177_v20 = vld [vmem:[%s2510_s1 + $0xe8] sm:$0xf0]  ;;  %v1076_v29 = vor.u32 %v1575_v16, %v1073_v17  ;;  %v1615_v36 = vld [vmem:[%s2510_s1 + $0x154] sm:$0xf]  ;;  %v1613_v50 = vld [vmem:[%s2510_s1 + $0x144] sm:$0xf] }
  0x33   :  { %805 = vmatpush.bf16.msrb.mxu3 %v1108_v26  ;;  %v1633_v26 = vld [vmem:[%s2510_s1 + $0x1e4] sm:$0xf]  ;;  %v1180_v31 = vor.u32 %v1601_v19, %v1177_v20  ;;  %v1651_v37 = vld [vmem:[%s2510_s1 + $0x274] sm:$0xf]  ;;  %v1161_v47 = vld [vmem:[%s2510_s1 + $0xc8] sm:$0xf0] }
  0x34   :  { %768 = vmatpush.bf16.msrb.mxu0 %v1344_v27  ;;  %v1305_v27 = vld [vmem:[%s2510_s1 + $0x1e8] sm:$0xf0]  ;;  %v1631_v41 = vld [vmem:[%s2510_s1 + $0x1d4] sm:$0xf]  ;;  %v1649_v51 = vld [vmem:[%s2510_s1 + $0x264] sm:$0xf]  ;;  %v1164_v58 = vor.u32 %v1597_v46, %v1161_v47 }
  0x35   :  { %781 = vmatpush.bf16.msrb.mxu1 %v1408_v28  ;;  %v2183_v28 = vpack.c.bf16 %v26_v15, %v26_v15  ;;  %v1369_v52 = vld [vmem:[%s2510_s1 + $0x268] sm:$0xf0]  ;;  %v1595_v59 = vld [vmem:[%s2510_s1 + $0xb4] sm:$0xf]  ;;  %v1361_v2 = vld [vmem:[%s2510_s1 + $0x258] sm:$0xf0] }
  0x36   :  { %794 = vmatpush.bf16.msrb.mxu2 %v1472_v32  ;;  %v1169_v32 = vld [vmem:[%s2510_s1 + $0xd8] sm:$0xf0]  ;;  %v1289_v57 = vld [vmem:[%s2510_s1 + $0x1c8] sm:$0xf0]  ;;  %v1372_v62 = vor.u32 %v1649_v51, %v1369_v52  ;;  %v1611_v0 = vld [vmem:[%s2510_s1 + $0x134] sm:$0xf] }
  0x37   :  { %806 = vmatpush.bf16.msrb.mxu3 %v1100_v38  ;;  %v1377_v38 = vld [vmem:[%s2510_s1 + $0x278] sm:$0xf0]  ;;  %v1647_v1 = vld [vmem:[%s2510_s1 + $0x254] sm:$0xf]  ;;  %v1209_v16 = vld [vmem:[%s2510_s1 + $0x128] sm:$0xf0] }
  0x38   :  { %769 = vmatpush.bf16.msrb.mxu0 %v1336_v39  ;;  %v1308_v39 = vor.u32 %v1633_v26, %v1305_v27  ;;  %v1380_v48 = vor.u32 %v1651_v37, %v1377_v38  ;;  %v1217_v4 = vld [vmem:[%s2510_s1 + $0x138] sm:$0xf0]  ;;  %v1364_v10 = vor.u32 %v1647_v1, %v1361_v2  ;;  %v1625_v17 = vld [vmem:[%s2510_s1 + $0x1a4] sm:$0xf]  ;;  %v1591_v20 = vld [vmem:[%s2510_s1 + $0x94] sm:$0xf] }
  0x39   :  { %782 = vmatpush.bf16.msrb.mxu1 %v1400_v40  ;;  %v1233_v40 = vld [vmem:[%s2510_s1 + $0x158] sm:$0xf0]  ;;  %v1220_v11 = vor.u32 %v1611_v0, %v1217_v4  ;;  %v1607_v26 = vld [vmem:[%s2510_s1 + $0x114] sm:$0xf]  ;;  %v1605_v37 = vld [vmem:[%s2510_s1 + $0x104] sm:$0xf] }
  0x3a   :  { %795 = vmatpush.bf16.msrb.mxu2 %v1464_v44  ;;  %v1172_v44 = vor.u32 %v1599_v30, %v1169_v32  ;;  %v1236_v49 = vor.u32 %v1615_v36, %v1233_v40  ;;  %v1281_v6 = vld [vmem:[%s2510_s1 + $0x1b8] sm:$0xf0]  ;;  %v1643_v27 = vld [vmem:[%s2510_s1 + $0x234] sm:$0xf]  ;;  %v1129_v36 = vld [vmem:[%s2510_s1 + $0x88] sm:$0xf0] }
  0x3b   :  { %807 = vmatpush.bf16.msrb.mxu3 %v1092_v53  ;;  %v1300_v53 = vor.u32 %v1631_v41, %v1297_v42  ;;  %v1137_v21 = vld [vmem:[%s2510_s1 + $0x98] sm:$0xf0]  ;;  %v1623_v32 = vld [vmem:[%s2510_s1 + $0x194] sm:$0xf]  ;;  %v1193_v40 = vld [vmem:[%s2510_s1 + $0x108] sm:$0xf0] }
  0x3c   :  { %770 = vmatpush.bf16.msrb.mxu0 %v1328_v55  ;;  %v1225_v55 = vld [vmem:[%s2510_s1 + $0x148] sm:$0xf0]  ;;  %v1265_v33 = vld [vmem:[%s2510_s1 + $0x198] sm:$0xf0]  ;;  %v1140_v34 = vor.u32 %v1591_v20, %v1137_v21  ;;  %v1641_v41 = vld [vmem:[%s2510_s1 + $0x224] sm:$0xf] }
  0x3d   :  { %783 = vmatpush.bf16.msrb.mxu1 %v1392_v56  ;;  %v1629_v56 = vld [vmem:[%s2510_s1 + $0x1c4] sm:$0xf]  ;;  %v1228_v63 = vor.u32 %v1613_v50, %v1225_v55  ;;  %v1337_v42 = vld [vmem:[%s2510_s1 + $0x228] sm:$0xf0]  ;;  %v1441_v46 = vld [vmem:[%s2510_s1 + $0x2f8] sm:$0xf0] }
  0x3e   :  { %796 = vmatpush.bf16.msrb.mxu2 %v1456_v61  ;;  %v1153_v61 = vld [vmem:[%s2510_s1 + $0xb8] sm:$0xf0]  ;;  %v1292_v3 = vor.u32 %v1629_v56, %v1289_v57  ;;  %v1683_v47 = vld [vmem:[%s2510_s1 + $0x374] sm:$0xf]  ;;  %v1257_v50 = vld [vmem:[%s2510_s1 + $0x188] sm:$0xf0]  ;;  %v1340_v52 = vor.u32 %v1641_v41, %v1337_v42 }
  0x3f   :  { %808 = vmatpush.bf16.msrb.mxu3 %v1084_v5  ;;  %v1627_v5 = vld [vmem:[%s2510_s1 + $0x1b4] sm:$0xf]  ;;  %v1156_v7 = vor.u32 %v1595_v59, %v1153_v61  ;;  %v1329_v57 = vld [vmem:[%s2510_s1 + $0x218] sm:$0xf0]  ;;  %v1665_v59 = vld [vmem:[%s2510_s1 + $0x2e4] sm:$0xf] }
  0x40   :  { %771 = vmatpush.bf16.msrb.mxu0 %v1320_v8  ;;  %v1593_v8 = vld [vmem:[%s2510_s1 + $0xa4] sm:$0xf]  ;;  %v1284_v15 = vor.u32 %v1627_v5, %v1281_v6  ;;  %v1639_v56 = vld [vmem:[%s2510_s1 + $0x214] sm:$0xf]  ;;  %v1433_v61 = vld [vmem:[%s2510_s1 + $0x2e8] sm:$0xf0] }
  0x41   :  { %784 = vmatpush.bf16.msrb.mxu1 %v1384_v9  ;;  %v1145_v9 = vld [vmem:[%s2510_s1 + $0xa8] sm:$0xf0]  ;;  %v1332_v1 = vor.u32 %v1639_v56, %v1329_v57  ;;  %v1436_v2 = vor.u32 %v1665_v59, %v1433_v61  ;;  %v1692_v5 = vld [vmem:[%s2512_s3 + $0x38] sm:$0xff] }
  0x42   :  { %797 = vmatpush.bf16.msrb.mxu2 %v1448_v12  ;;  %v1609_v12 = vld [vmem:[%s2510_s1 + $0x124] sm:$0xf]  ;;  %v1148_v19 = vor.u32 %v1593_v8, %v1145_v9  ;;  %v1497_v0 = vld [vmem:[%s2510_s1 + $0x368] sm:$0xf0]  ;;  %v1425_v8 = vld [vmem:[%s2510_s1 + $0x2d8] sm:$0xf0] }
  0x43   :  { %772 = vmatmul.bf16.vlgmr.msrb.gmra.mxu0 %v2170_v23  ;;  %809 = vmatpush.bf16.msrb.mxu3 %v1076_v29  ;;  %v1212_v24 = vor.u32 %v1609_v12, %v1209_v16  ;;  %v1345_v29 = vld [vmem:[%s2510_s1 + $0x238] sm:$0xf0]  ;;  %v1321_v4 = vld [vmem:[%s2510_s1 + $0x208] sm:$0xf0]  ;;  %v1679_v9 = vld [vmem:[%s2510_s1 + $0x354] sm:$0xf] }
  0x44   :  { %816 = vmatpush.bf16.msra.mxu0 %v1188_v14  ;;  %785 = vmatmul.bf16.vlgmr.msrb.gmra.mxu1 %v2175_v25  ;;  %v1353_v14 = vld [vmem:[%s2510_s1 + $0x248] sm:$0xf0]  ;;  %v1348_v38 = vor.u32 %v1643_v27, %v1345_v29  ;;  %v1473_v20 = vld [vmem:[%s2510_s1 + $0x338] sm:$0xf0] }
  0x45   :  { %829 = vmatpush.bf16.msra.mxu1 %v1252_v18  ;;  %798 = vmatmul.bf16.vlgmr.msrb.gmra.mxu2 %v2183_v28  ;;  %v1273_v18 = vld [vmem:[%s2510_s1 + $0x1a8] sm:$0xf0] }
  0x46   :  { %842 = vmatpush.bf16.msra.mxu2 %v1316_v22  ;;  %v1276_v30 = vor.u32 %v1625_v17, %v1273_v18  ;;  %v1659_v17 = vld [vmem:[%s2510_s1 + $0x2b4] sm:$0xf]  ;;  %v1409_v18 = vld [vmem:[%s2510_s1 + $0x2b8] sm:$0xf0]  ;;  %v1465_v27 = vld [vmem:[%s2510_s1 + $0x328] sm:$0xf0] }
  0x47   :  { %810 = vmatpush.bf16.msrb.mxu3 %v1068_v43  ;;  %v1268_v43 = vor.u32 %v1623_v32, %v1265_v33  ;;  %v1412_v21 = vor.u32 %v1659_v17, %v1409_v18  ;;  %v1393_v32 = vld [vmem:[%s2510_s1 + $0x298] sm:$0xf0]  ;;  %v1671_v33 = vld [vmem:[%s2510_s1 + $0x314] sm:$0xf]  ;;  %v1694_v17 = vld [vmem:[%s2512_s3 + $0x48] sm:$0xff] }
  0x48   :  { %817 = vmatpush.bf16.msra.mxu0 %v1180_v31  ;;  %v1201_v31 = vld [vmem:[%s2510_s1 + $0x118] sm:$0xf0] }
  0x49   :  { %830 = vmatpush.bf16.msra.mxu1 %v1244_v35  ;;  %v1589_v35 = vld [vmem:[%s2510_s1 + $0x84] sm:$0xf] }
  0x4a   :  { %843 = vmatpush.bf16.msra.mxu2 %v1308_v39  ;;  %811 = vmatmul.bf16.vlgmr.msrb.gmra.mxu3 %v1977_v54  ;;  %v1645_v54 = vld [vmem:[%s2510_s1 + $0x244] sm:$0xf]  ;;  %v1204_v39 = vor.u32 %v1607_v26, %v1201_v31  ;;  %v1132_v51 = vor.u32 %v1589_v35, %v1129_v36  ;;  %v1655_v31 = vld [vmem:[%s2510_s1 + $0x294] sm:$0xf] }
  0x4b   :  { %855 = vmatpush.bf16.msra.mxu3 %v1380_v48  ;;  %v1356_v22 = vor.u32 %v1645_v54, %v1353_v14  ;;  %v1505_v48 = vld [vmem:[%s2510_s1 + $0x378] sm:$0xf0]  ;;  %v1417_v14 = vld [vmem:[%s2510_s1 + $0x2c8] sm:$0xf0]  ;;  %v1673_v26 = vld [vmem:[%s2510_s1 + $0x324] sm:$0xf]  ;;  %v1396_v35 = vor.u32 %v1655_v31, %v1393_v32 }
  0x4c   :  { %818 = vmatpush.bf16.msra.mxu0 %v1172_v44  ;;  %v1667_v44 = vld [vmem:[%s2510_s1 + $0x2f4] sm:$0xf] }
  0x4d   :  { %831 = vmatpush.bf16.msra.mxu1 %v1236_v49  ;;  %v1621_v49 = vld [vmem:[%s2510_s1 + $0x184] sm:$0xf]  ;;  %v1444_v55 = vor.u32 %v1667_v44, %v1441_v46  ;;  %v1690_v44 = vld [vmem:[%s2512_s3 + $0x28] sm:$0xff] }
  0x4e   :  { %844 = vmatpush.bf16.msra.mxu2 %v1300_v53  ;;  %v1196_v53 = vor.u32 %v1605_v37, %v1193_v40  ;;  %v1653_v37 = vld [vmem:[%s2510_s1 + $0x284] sm:$0xf]  ;;  %v1449_v40 = vld [vmem:[%s2510_s1 + $0x308] sm:$0xf0] }
  0x4f   :  { %856 = vmatpush.bf16.msra.mxu3 %v1372_v62  ;;  %v1260_v62 = vor.u32 %v1621_v49, %v1257_v50  ;;  %v1689_v46 = vld [vmem:[%s2512_s3 + $0x20] sm:$0xff]  ;;  %v1686_v49 = vld [vmem:[%s2512_s3 + $0x8] sm:$0xff] }
  0x50   :  { %819 = vmatpush.bf16.msra.mxu0 %v1164_v58  ;;  %v1508_v58 = vor.u32 %v1683_v47, %v1505_v48 }
  0x51   :  { %832 = vmatpush.bf16.msra.mxu1 %v1228_v63  ;;  %v1681_v63 = vld [vmem:[%s2510_s1 + $0x364] sm:$0xf] }
  0x52   :  { %845 = vmatpush.bf16.msra.mxu2 %v1292_v3  ;;  %v1637_v3 = vld [vmem:[%s2510_s1 + $0x204] sm:$0xf]  ;;  %v1500_v6 = vor.u32 %v1681_v63, %v1497_v0 }
  0x53   :  { %857 = vmatpush.bf16.msra.mxu3 %v1364_v10  ;;  %v1489_v10 = vld [vmem:[%s2510_s1 + $0x358] sm:$0xf0] }
  0x54   :  { %820 = vmatpush.bf16.msra.mxu0 %v1156_v7  ;;  %v1663_v7 = vld [vmem:[%s2510_s1 + $0x2d4] sm:$0xf]  ;;  %v1492_v54 = vor.u32 %v1679_v9, %v1489_v10 }
  0x55   :  { %833 = vmatpush.bf16.msra.mxu1 %v1220_v11  ;;  %v1324_v11 = vor.u32 %v1637_v3, %v1321_v4  ;;  %v1428_v12 = vor.u32 %v1663_v7, %v1425_v8  ;;  %v1700_v3 = vld [vmem:[%s2512_s3 + $0x78] sm:$0xff]  ;;  %v1698_v7 = vld [vmem:[%s2512_s3 + $0x68] sm:$0xff] }
  0x56   :  { %846 = vmatpush.bf16.msra.mxu2 %v1284_v15  ;;  %v1677_v15 = vld [vmem:[%s2510_s1 + $0x344] sm:$0xf] }
  0x57   :  { %858 = vmatpush.bf16.msra.mxu3 %v1356_v22 }
  0x58   :  { %821 = vmatpush.bf16.msra.mxu0 %v1148_v19  ;;  %v1675_v19 = vld [vmem:[%s2510_s1 + $0x334] sm:$0xf] }
  0x59   :  { %834 = vmatpush.bf16.msra.mxu1 %v1212_v24  ;;  %v1476_v22 = vor.u32 %v1675_v19, %v1473_v20  ;;  %v1657_v24 = vld [vmem:[%s2510_s1 + $0x2a4] sm:$0xf] }
  0x5a   :  { %847 = vmatpush.bf16.msra.mxu2 %v1276_v30  ;;  %v1468_v30 = vor.u32 %v1673_v26, %v1465_v27  ;;  %v1693_v20 = vld [vmem:[%s2512_s3 + $0x40] sm:$0xff] }
  0x5b   :  { %859 = vmatpush.bf16.msra.mxu3 %v1348_v38  ;;  %v1385_v38 = vld [vmem:[%s2510_s1 + $0x288] sm:$0xf0] }
  0x5c   :  { %822 = vmatpush.bf16.msra.mxu0 %v1140_v34  ;;  %v1457_v34 = vld [vmem:[%s2510_s1 + $0x318] sm:$0xf0]  ;;  %v1388_v41 = vor.u32 %v1653_v37, %v1385_v38 }
  0x5d   :  { %835 = vmatpush.bf16.msra.mxu1 %v1204_v39  ;;  %v1460_v36 = vor.u32 %v1671_v33, %v1457_v34  ;;  %v1669_v39 = vld [vmem:[%s2510_s1 + $0x304] sm:$0xf] }
  0x5e   :  { %848 = vmatpush.bf16.msra.mxu2 %v1268_v43  ;;  %v1452_v42 = vor.u32 %v1669_v39, %v1449_v40  ;;  %v1691_v43 = vld [vmem:[%s2512_s3 + $0x30] sm:$0xff] }
  0x5f   :  { %860 = vmatpush.bf16.msra.mxu3 %v1340_v52  ;;  %v146_v52 = vld [vmem:[%s2514_s2] sm:$0x3] }
  0x60   :  { %823 = vmatpush.bf16.msra.mxu0 %v1132_v51  ;;  %v1685_v51 = vld [vmem:[%s2512_s3] sm:$0xff]  ;;  %v148_v56 = vperm.slane %v146_v52, 0 }
  0x61   :  { %836 = vmatpush.bf16.msra.mxu1 %v1196_v53 }
  0x62   :  { %849 = vmatpush.bf16.msra.mxu2 %v1260_v62 }
  0x63   :  { %824 = vmatmul.bf16.vlgmr.msra.gmra.mxu0 %v1991_v60  ;;  %861 = vmatpush.bf16.msra.mxu3 %v1332_v1  ;;  %v1661_v60 = vld [vmem:[%s2510_s1 + $0x2c4] sm:$0xf] }
  0x64   :  { %868 = vmatpush.bf16.msrb.mxu0 %v1444_v55  ;;  %837 = vmatmul.bf16.vlgmr.msra.gmra.mxu1 %v1957_v45  ;;  %v1481_v45 = vld [vmem:[%s2510_s1 + $0x348] sm:$0xf0] }
  0x65   :  { %881 = vmatpush.bf16.msrb.mxu1 %v1508_v58  ;;  %850 = vmatmul.bf16.vlgmr.msra.gmra.mxu2 %v2029_v13  ;;  %v1420_v13 = vor.u32 %v1661_v60, %v1417_v14  ;;  %v1484_v16 = vor.u32 %v1677_v15, %v1481_v45  ;;  %v1697_v60 = vld [vmem:[%s2512_s3 + $0x60] sm:$0xff]  ;;  %v1696_v15 = vld [vmem:[%s2512_s3 + $0x58] sm:$0xff] }
  0x66   :  { %1030 = vmatpush.bf16.msrb.mxu2 %v1692_v5  ;;  %v1699_v5 = vld [vmem:[%s2512_s3 + $0x70] sm:$0xff] }
  0x67   :  { %862 = vmatpush.bf16.msra.mxu3 %v1324_v11 }
  0x68   :  { %869 = vmatpush.bf16.msrb.mxu0 %v1436_v2 }
  0x69   :  { %882 = vmatpush.bf16.msrb.mxu1 %v1500_v6 }
  0x6a   :  { %863 = vmatmul.bf16.vlgmr.msra.gmra.mxu3 %v2170_v23  ;;  %v1401_v23 = vld [vmem:[%s2510_s1 + $0x2a8] sm:$0xf0]  ;;  %1031 = vmatpush.bf16.msrb.mxu2 %v1691_v43 }
  0x6b   :  { %v1404_v29 = vor.u32 %v1657_v24, %v1401_v23  ;;  %1043 = vmatpush.bf16.msrb.mxu3 %v1700_v3 }
  0x6c   :  { %870 = vmatpush.bf16.msrb.mxu0 %v1428_v12 }
  0x6d   :  { %883 = vmatpush.bf16.msrb.mxu1 %v1492_v54 }
  0x6e   :  { %1032 = vmatpush.bf16.msrb.mxu2 %v1690_v44 }
  0x6f   :  { %1044 = vmatpush.bf16.msrb.mxu3 %v1699_v5 }
  0x70   :  { %871 = vmatpush.bf16.msrb.mxu0 %v1420_v13  ;;  %v1695_v13 = vld [vmem:[%s2512_s3 + $0x50] sm:$0xff] }
  0x71   :  { %884 = vmatpush.bf16.msrb.mxu1 %v1484_v16 }
  0x72   :  { %1033 = vmatpush.bf16.msrb.mxu2 %v1689_v46  ;;  %v1701_v46 = vld [vmem:[%s2513_s4] ss:$0 sm:$0xff] }
  0x73   :  { %1045 = vmatpush.bf16.msrb.mxu3 %v1698_v7 }
  0x74   :  { %872 = vmatpush.bf16.msrb.mxu0 %v1412_v21  ;;  %v149_v21 = vperm.slane %v146_v52, 1 }
  0x75   :  { %885 = vmatpush.bf16.msrb.mxu1 %v1476_v22 }
  0x77   :  { %1046 = vmatpush.bf16.msrb.mxu3 %v1697_v60 }
  0x78   :  { %873 = vmatpush.bf16.msrb.mxu0 %v1404_v29 }
  0x79   :  { %886 = vmatpush.bf16.msrb.mxu1 %v1468_v30 }
  0x7b   :  { %1047 = vmatpush.bf16.msrb.mxu3 %v1696_v15 }
  0x7c   :  { %874 = vmatpush.bf16.msrb.mxu0 %v1396_v35 }
  0x7d   :  { %887 = vmatpush.bf16.msrb.mxu1 %v1460_v36 }
  0x7f   :  { %1048 = vmatpush.bf16.msrb.mxu3 %v1695_v13 }
  0x80   :  { %875 = vmatpush.bf16.msrb.mxu0 %v1388_v41 }
  0x81   :  { %888 = vmatpush.bf16.msrb.mxu1 %v1452_v42 }
  0x83   :  { %876 = vmatmul.bf16.vlgmr.msrb.gmra.mxu0 %v2175_v25  ;;  %v1688_v25 = vld [vmem:[%s2512_s3 + $0x18] sm:$0xff]  ;;  %1049 = vmatpush.bf16.msrb.mxu3 %v1694_v17 }
  0x84   :  { %889 = vmatmul.bf16.vlgmr.msrb.gmra.mxu1 %v2183_v28  ;;  %1034 = vmatpush.bf16.msrb.mxu2 %v1688_v25  ;;  %v1687_v28 = vld [vmem:[%s2512_s3 + $0x10] sm:$0xff] }
  0x87   :  { %1050 = vmatpush.bf16.msrb.mxu3 %v1693_v20 }
  0x88   :  { %1035 = vmatpush.bf16.msrb.mxu2 %v1687_v28 }
  0x8c   :  { %1036 = vmatpush.bf16.msrb.mxu2 %v1686_v49 }
  0x90   :  { %1037 = vmatpush.bf16.msrb.mxu2 %v1685_v51 }
  0xa0   :  { %v721_v47 = vpop.f32.mrf.mxu0 }
  0xa1   :  { %v734_v48 = vpop.f32.mrf.mxu1  ;;  %v722_v58 = vadd.f32 %v721_v47, %v148_v56 }
  0xa3   :  { %v735_v61 = vadd.f32 %v734_v48, %v722_v58 }
  0xa8   :  { %v747_v50 = vpop.f32.mrf.mxu2  ;;  %v723_v53 = vpop.f32.mrf.mxu0 }
  0xa9   :  { %v736_v55 = vpop.f32.mrf.mxu1  ;;  %v748_v63 = vadd.f32 %v747_v50, %v735_v61 }
  0xad   :  { %v760_v57 = vpop.f32.mrf.mxu3 }
  0xae   :  { %v761_v0 = vadd.f32 %v760_v57, %v748_v63 }
  0xb0   :  { %v749_v59 = vpop.f32.mrf.mxu2 }
  0xb5   :  { %v762_v62 = vpop.f32.mrf.mxu3 }
  0xc0   :  { %v773_v1 = vpop.f32.mrf.mxu0 }
  0xc1   :  { %v786_v2 = vpop.f32.mrf.mxu1  ;;  %v774_v4 = vadd.f32 %v773_v1, %v761_v0 }
  0xc3   :  { %v787_v6 = vadd.f32 %v786_v2, %v774_v4 }
  0xc8   :  { %v799_v8 = vpop.f32.mrf.mxu2  ;;  %v775_v10 = vpop.f32.mrf.mxu0 }
  0xc9   :  { %v800_v9 = vadd.f32 %v799_v8, %v787_v6  ;;  %v788_v11 = vpop.f32.mrf.mxu1 }
  0xcb   :  { %v894_v12 = vmax.f32 %v800_v9, 0.0 }
  0xcd   :  { %v896_v54 = vpack.c.bf16 %v894_v12, %v894_v12  ;;  %v812_v14 = vpop.f32.mrf.mxu3 }
  0xce   :  { %v813_v26 = vadd.f32 %v812_v14, %v149_v21 }
  0xcf   :  { %1038 = vmatmul.bf16.vlgmr.msrb.gmra.mxu2 %v896_v54 }
  0xd0   :  { %v801_v45 = vpop.f32.mrf.mxu2 }
  0xd5   :  { %v814_v16 = vpop.f32.mrf.mxu3 }
  0xe0   :  { %v825_v18 = vpop.f32.mrf.mxu0 }
  0xe1   :  { %v838_v19 = vpop.f32.mrf.mxu1  ;;  %v826_v29 = vadd.f32 %v825_v18, %v813_v26 }
  0xe3   :  { %v839_v31 = vadd.f32 %v838_v19, %v826_v29 }
  0xe8   :  { %v827_v22 = vpop.f32.mrf.mxu0  ;;  %v851_v24 = vpop.f32.mrf.mxu2 }
  0xe9   :  { %v840_v23 = vpop.f32.mrf.mxu1  ;;  %v852_v33 = vadd.f32 %v851_v24, %v839_v31 }
  0xed   :  { %v864_v27 = vpop.f32.mrf.mxu3 }
  0xee   :  { %v865_v34 = vadd.f32 %v864_v27, %v852_v33 }
  0xf0   :  { %v853_v30 = vpop.f32.mrf.mxu2 }
  0xf5   :  { %v866_v32 = vpop.f32.mrf.mxu3 }
 0x100   :  { %v877_v35 = vpop.f32.mrf.mxu0 }
 0x101   :  { %v878_v36 = vadd.f32 %v877_v35, %v865_v34  ;;  %v890_v37 = vpop.f32.mrf.mxu1 }
 0x103   :  { %v891_v38 = vadd.f32 %v890_v37, %v878_v36 }
 0x105   :  { %v895_v39 = vmax.f32 %v891_v38, 0.0 }
 0x107   :  { %v897_v40 = vpack.c.bf16 %v895_v39, %v895_v39 }
 0x108   :  { %v879_v41 = vpop.f32.mrf.mxu0 }
 0x109   :  { %v892_v42 = vpop.f32.mrf.mxu1  ;;  %1051 = vmatmul.bf16.vlgmr.msrb.gmra.mxu3 %v897_v40 }
 0x152   :  { %v1039_v43 = vpop.f32.mrf.mxu2 }
 0x153   :  { %v1040_v25 = vadd.f32 %v1701_v46, %v1039_v43 }
 0x15a   :  { %v1041_v44 = vpop.f32.mrf.mxu2 }
 0x18c   :  { %v1052_v28 = vpop.f32.mrf.mxu3 }
 0x18d   :  { %v1053_v47 = vadd.f32 %v1052_v28, %v1040_v25 }
 0x18f   :  { %1056 = vst [vmem:[%s2515_s5] sm:$0xff] %v1053_v47 }
 0x194   :  { %v1054_v48 = vpop.f32.mrf.mxu3 }

</bundles_post_ra>
